<compile_context>
chip_gen: v7x
topology: tpu7x:2x2x1
jax: 0.10.0
libtpu: 0.0.40
codegen_flags: <defaults>
</compile_context>

<pallas_src>
import functools
import numpy as np
import jax
import jax.numpy as jnp
from jax import lax
from jax.experimental import pallas as pl
from jax.experimental.pallas import tpu as pltpu


def _round_up(a, m):
    return (a + m - 1) // m * m


# ------------------------------ Pallas kernel ------------------------------- #

def _fused_conv_kernel(cur_ref, nxt_ref, w_ref, b_ref, *rest,
                       tap_offsets, relu, res_mode):
    """3x3 conv (9 shifted-row dots) + folded-BN bias + optional residual + ReLU.

    cur_ref / nxt_ref : (TM, Cin) f32  current and next row blocks of the
                        zero-padded, row-flattened input (halo source).
    w_ref             : (9, Cin, TN) bf16, BN scale already folded in.
    b_ref             : (1, TN) f32 folded BN bias.
    res_mode == "add" : rest = (res_ref(TM,TN) f32, o_ref, buf_ref)
    res_mode == "proj": rest = (res_ref(TM,Csc) bf16, wsc_ref(Csc,TN) bf16,
                                bsc_ref(1,TN) f32, o_ref, buf_ref)
    res_mode == "none": rest = (o_ref, buf_ref)
    """
    if res_mode == "none":
        o_ref, buf_ref = rest
        res_ref = wsc_ref = bsc_ref = None
    elif res_mode == "add":
        res_ref, o_ref, buf_ref = rest
        wsc_ref = bsc_ref = None
    else:  # "proj"
        res_ref, wsc_ref, bsc_ref, o_ref, buf_ref = rest

    tm = cur_ref.shape[0]

    # Halo buffer: rows [i*TM, (i+1)*TM + halo). All 9 taps slice from VMEM, so
    # HBM is read only ~2x (cur + nxt) instead of 9x via im2col.
    buf_ref[pl.ds(0, tm), :] = cur_ref[...]
    buf_ref[pl.ds(tm, tm), :] = nxt_ref[...]

    acc = jnp.zeros(o_ref.shape, jnp.float32)
    for t, d in enumerate(tap_offsets):           # static, unrolled: 9 MXU dots
        lhs = buf_ref[pl.ds(d, tm), :].astype(jnp.bfloat16)
        acc = acc + jnp.dot(lhs, w_ref[t], preferred_element_type=jnp.float32)

    y = acc + b_ref[...]                          # BN scale folded into weights
    if res_mode == "add":                         # identity shortcut
        y = y + res_ref[...]
    elif res_mode == "proj":                      # fused 1x1 conv + BN shortcut
        y = y + jnp.dot(res_ref[...], wsc_ref[...],
                        preferred_element_type=jnp.float32) + bsc_ref[...]
    if relu:
        y = jnp.maximum(y, 0.0)
    o_ref[...] = y.astype(o_ref.dtype)


# ------------------------------ conv wrapper -------------------------------- #

def conv3x3_bn_pallas(x, w, scale, bias, *, stride=1, relu=True,
                      residual=None, res_w=None, res_scale=None, res_bias=None,
                      tm=512):
    """Fused 3x3 conv (pad=1) + folded BN + optional residual/projection + ReLU.

    x: (B, H, W, Cin) f32 NHWC.  w: (3, 3, Cin, Cout).  scale/bias: folded BN.
    residual (optional): (B, Ho, Wo, C) added at the output.  If res_w is given,
    the residual goes through a fused 1x1 conv (res_w, BN-folded res_scale /
    res_bias) inside the kernel (projection shortcut).
    """
    B, H, W, Cin = x.shape
    KH, KW, wcin, Cout = w.shape
    assert (KH, KW) == (3, 3) and wcin == Cin
    P = 1
    Hp, Wp = H + 2 * P, W + 2 * P
    Ho = (H + 2 * P - KH) // stride + 1
    Wo = (W + 2 * P - KW) // stride + 1

    # Lane-dense output channels (multiple of 128), tiled by a parallel grid axis.
    Cout_p = _round_up(Cout, 128)
    TN = 256 if Cout_p % 256 == 0 else 128

    # Row tile: fixed, (8,128)-aligned, large enough to hold the 3x3 halo.
    tm = max(tm, _round_up(2 * Wp + 2, 8))

    # Fold BN scale into the weights (f32), pad Cout, cast operands to bf16.
    wf = (w * scale[None, None, None, :]).reshape(KH * KW, Cin, Cout)
    wf = jnp.pad(wf, ((0, 0), (0, 0), (0, Cout_p - Cout))).astype(jnp.bfloat16)
    bz = jnp.pad(bias, (0, Cout_p - Cout)).reshape(1, Cout_p).astype(jnp.float32)

    # Zero-pad spatially and flatten rows. Output pixel with window top-left at
    # padded coords (oh, ow) lives at flattened row r = b*Hp*Wp + oh*Wp + ow and
    # reads rows r + kh*Wp + kw -- constant per-tap offsets handled in-kernel.
    # TODO(synk): activations kept f32 in HBM (unaligned halo slices in a
    # well-supported layout); ship bf16 activations end-to-end once verified.
    xp = jnp.pad(x, ((0, 0), (P, P), (P, P), (0, 0)))
    R = B * Hp * Wp
    nblk = pl.cdiv(R, tm)
    Rp = (nblk + 1) * tm                     # +1 zero block backs the halo view
    xf = jnp.pad(xp.reshape(R, Cin), ((0, Rp - R), (0, 0)))

    tap_offsets = tuple(kh * Wp + kw for kh in range(KH) for kw in range(KW))

    grid = (nblk, Cout_p // TN)
    in_specs = [
        pl.BlockSpec((tm, Cin), lambda i, j: (i, 0)),        # current row block
        pl.BlockSpec((tm, Cin), lambda i, j: (i + 1, 0)),    # next row block
        pl.BlockSpec((KH * KW, Cin, TN), lambda i, j: (0, 0, j)),
        pl.BlockSpec((1, TN), lambda i, j: (0, j)),
    ]
    args = [xf, xf, wf, bz]
    res_bytes = 0

    if residual is None:
        res_mode = "none"
    else:
        assert stride == 1, "fused residual path expects a stride-1 conv (conv2)"
        rB, rH, rW, rC = residual.shape
        assert (rB, rH, rW) == (B, Ho, Wo)
        # Align residual pixels with the padded-row index of their output pixel.
        resp = jnp.pad(residual, ((0, 0), (0, Hp - Ho), (0, Wp - Wo), (0, 0)))
        res_rows = jnp.pad(resp.reshape(R, rC), ((0, nblk * tm - R), (0, 0)))
        if res_w is None:                                    # identity shortcut
            res_mode = "add"
            assert rC == Cout
            res_rows = jnp.pad(res_rows, ((0, 0), (0, Cout_p - Cout)))
            res_rows = res_rows.astype(jnp.float32)
            in_specs.append(pl.BlockSpec((tm, TN), lambda i, j: (i, j)))
            args.append(res_rows)
        else:                                                # 1x1 conv + BN
            res_mode = "proj"
            assert res_w.shape == (rC, Cout)
            wsc = jnp.pad(res_w * res_scale[None, :],
                          ((0, 0), (0, Cout_p - Cout))).astype(jnp.bfloat16)
            bsc = jnp.pad(res_bias, (0, Cout_p - Cout)).reshape(
                1, Cout_p).astype(jnp.float32)
            res_rows = res_rows.astype(jnp.bfloat16)
            in_specs += [
                pl.BlockSpec((tm, rC), lambda i, j: (i, 0)),
                pl.BlockSpec((rC, TN), lambda i, j: (0, j)),
                pl.BlockSpec((1, TN), lambda i, j: (0, j)),
            ]
            args += [res_rows, wsc, bsc]
        res_bytes = res_rows.size * res_rows.dtype.itemsize

    kernel = functools.partial(_fused_conv_kernel, tap_offsets=tap_offsets,
                               relu=relu, res_mode=res_mode)

    flops = 2 * (nblk * tm) * (KH * KW * Cin) * Cout_p
    if res_mode == "proj":
        flops += 2 * (nblk * tm) * res_w.shape[0] * Cout_p
    bytes_accessed = (2 * xf.size * xf.dtype.itemsize
                      + wf.size * wf.dtype.itemsize
                      + nblk * tm * Cout_p * 4 + res_bytes)

    out = pl.pallas_call(
        kernel,
        out_shape=jax.ShapeDtypeStruct((nblk * tm, Cout_p), jnp.float32),
        grid=grid,
        in_specs=in_specs,
        out_specs=pl.BlockSpec((tm, TN), lambda i, j: (i, j)),
        scratch_shapes=[pltpu.VMEM((2 * tm, Cin), jnp.float32)],
        compiler_params=pltpu.CompilerParams(
            dimension_semantics=("parallel", "parallel"),
            vmem_limit_bytes=48 * 1024 * 1024),
        cost_estimate=pl.CostEstimate(flops=flops, transcendentals=0,
                                      bytes_accessed=bytes_accessed),
    )(*args)

    # Extract valid output pixels (and apply stride by subsampling the dense
    # stride-1 result).  TODO(synk): stride>1 convs compute a dense stride-1
    # output and subsample (s^2 extra MXU work on the few downsampling convs).
    y = out[:R].reshape(B, Hp, Wp, Cout_p)
    return y[:, 0:stride * Ho:stride, 0:stride * Wo:stride, :Cout]


# ------------------------ pure-JAX reference (check) ------------------------ #

def _conv_bn_ref(x, w, scale, bias, *, stride, padding):
    y = lax.conv_general_dilated(
        x, w, (stride, stride), [(padding, padding), (padding, padding)],
        dimension_numbers=("NHWC", "HWIO", "NHWC"))
    return y * scale + bias


def basic_block_ref(x, x_hash, params):
    stride = params["stride"]
    s1, b1 = params["bn1"]
    s2, b2 = params["bn2"]

    def one(stream):
        h = jnp.maximum(
            _conv_bn_ref(stream, params["w1"], s1, b1, stride=stride, padding=1), 0.0)
        y = _conv_bn_ref(h, params["w2"], s2, b2, stride=1, padding=1)
        if "w_sc" in params:
            ss, bs = params["bn_sc"]
            sc = _conv_bn_ref(stream, params["w_sc"], ss, bs, stride=stride, padding=0)
        else:
            sc = stream
        return jnp.maximum(y + sc, 0.0)

    return {0: one(x), 1: one(x_hash)}


# ------------------------------ parameters ---------------------------------- #

def _hashed_conv_weight(key, kh, kw, cin, cout, buckets=16):
    # TODO(synk): HashedConv2d source not provided; approximated as a conv whose
    # weights are drawn from `buckets` shared values via a polynomial hash,
    # applied identically to both the x and x_hash streams.
    vals = jax.random.normal(key, (buckets,), dtype=jnp.float32) * 0.1
    n = kh * kw * cin * cout
    idx = (np.arange(n, dtype=np.int64) * 1315423911 + 2654435761) % buckets
    return vals[jnp.asarray(idx)].reshape(kh, kw, cin, cout)


def _bn_params(key, c, eps=1e-5):
    # Eval-mode BatchNorm folded to per-channel scale/bias.
    # TODO(synk): training-mode batch statistics (and the double running-stat
    # update from calling bn on both streams) are not reproduced.
    k1, k2, k3, k4 = jax.random.split(key, 4)
    gamma = jax.random.uniform(k1, (c,), minval=0.5, maxval=1.5)
    beta = jax.random.normal(k2, (c,)) * 0.1
    mean = jax.random.normal(k3, (c,)) * 0.1
    var = jax.random.uniform(k4, (c,), minval=0.5, maxval=1.5)
    scale = gamma / jnp.sqrt(var + eps)
    bias = beta - mean * scale
    return scale.astype(jnp.float32), bias.astype(jnp.float32)


def init_basic_block(key, in_planes, planes, stride):
    keys = jax.random.split(key, 6)
    params = {
        "w1": _hashed_conv_weight(keys[0], 3, 3, in_planes, planes),
        "bn1": _bn_params(keys[1], planes),
        "w2": _hashed_conv_weight(keys[2], 3, 3, planes, planes),
        "bn2": _bn_params(keys[3], planes),
        "stride": stride,
    }
    if stride != 1 or in_planes != planes:    # ShortCut(in_planes, planes, k=1, stride)
        params["w_sc"] = _hashed_conv_weight(keys[4], 1, 1, in_planes, planes)
        params["bn_sc"] = _bn_params(keys[5], planes)
    return params


# ------------------------------ forward pass -------------------------------- #

def basic_block_forward(x, x_hash, params):
    """Pallas BasicBlock forward. Both streams are stacked along the batch/row
    axis so each conv is a single pallas_call; the shortcut (identity add or
    1x1 conv + bn projection) is fused into the conv2 kernel."""
    B = x.shape[0]
    stride = params["stride"]
    s1, b1 = params["bn1"]
    s2, b2 = params["bn2"]

    xb = jnp.concatenate([x, x_hash], axis=0)        # fuse x / x_hash streams

    # conv1 -> bn1 -> relu (shared weights / bn across both streams)
    h = conv3x3_bn_pallas(xb, params["w1"], s1, b1, stride=stride, relu=True)

    # conv2 -> bn2 -> (+= shortcut) -> relu, all in one kernel
    if "w_sc" in params:
        ss, bs = params["bn_sc"]
        sc_in = xb[:, ::stride, ::stride, :]         # 1x1 stride-s conv input pixels
        out = conv3x3_bn_pallas(h, params["w2"], s2, b2, stride=1, relu=True,
                                residual=sc_in, res_w=params["w_sc"][0, 0],
                                res_scale=ss, res_bias=bs)
    else:
        out = conv3x3_bn_pallas(h, params["w2"], s2, b2, stride=1, relu=True,
                                residual=xb)

    return {0: out[:B], 1: out[B:]}


# ----------------------------------- main ----------------------------------- #

if __name__ == "__main__":
    key = jax.random.PRNGKey(0)
    kx, kxh, kb1, kb2 = jax.random.split(key, 4)

    N, Cin, H, W = 2, 4, 16, 16
    # PyTorch inputs are NCHW; generate NCHW then transpose to NHWC.
    x_nchw = jax.random.normal(kx, (N, Cin, H, W), dtype=jnp.float32)
    xh_nchw = jax.random.normal(kxh, (N, Cin, H, W), dtype=jnp.float32)
    x = jnp.transpose(x_nchw, (0, 2, 3, 1))
    xh = jnp.transpose(xh_nchw, (0, 2, 3, 1))

    # Block 1: stride=1, in_planes == planes  -> Identity shortcut (fused add)
    p1 = init_basic_block(kb1, in_planes=4, planes=4, stride=1)
    # Block 2: stride=2, in_planes != planes  -> ShortCut(1x1 conv + bn), fused
    p2 = init_basic_block(kb2, in_planes=4, planes=8, stride=2)

    out1 = basic_block_forward(x, xh, p1)
    out2 = basic_block_forward(out1[0], out1[1], p2)
    jax.block_until_ready(out2[0])
    jax.block_until_ready(out2[1])

    # Cross-check against a pure-f32 lax.conv reference.  The Pallas path uses
    # bf16 MXU operands (f32 accumulation / epilogue), hence the looser tolerance.
    r1 = basic_block_ref(x, xh, p1)
    r2 = basic_block_ref(r1[0], r1[1], p2)
    for a, b in ((out1[0], r1[0]), (out1[1], r1[1]),
                 (out2[0], r2[0]), (out2[1], r2[1])):
        np.testing.assert_allclose(np.asarray(a), np.asarray(b),
                                   rtol=5e-2, atol=5e-2)

    print("KERNEL_OK")
</pallas_src>

<mosaic_0001>
module attributes {stable_mosaic.version = 11 : i64} {
  func.func @_fused_conv_kernel(%arg0: i32, %arg1: i32, %arg2: memref<512x4xf32, #tpu.memory_space<vmem>>, %arg3: memref<512x4xf32, #tpu.memory_space<vmem>>, %arg4: memref<9x4x128xbf16, #tpu.memory_space<vmem>>, %arg5: memref<1x128xf32, #tpu.memory_space<vmem>>, %arg6: memref<512x128xf32, #tpu.memory_space<vmem>>, %arg7: memref<1024x4xf32, #tpu.memory_space<vmem>>) attributes {dimension_semantics = [#tpu.dimension_semantics<parallel>, #tpu.dimension_semantics<parallel>], iteration_bounds = array<i64: 3, 1>, scalar_prefetch = 0 : i64, scratch_operands = 1 : i64, tpu.core_type = #tpu.core_type<tc>, window_params = [{transform_indices = @transform_0, window_bounds = array<i64: 512, 4>}, {transform_indices = @transform_1, window_bounds = array<i64: 512, 4>}, {transform_indices = @transform_2, window_bounds = array<i64: 9, 4, 128>}, {transform_indices = @transform_3, window_bounds = array<i64: 1, 128>}, {transform_indices = @transform_4, window_bounds = array<i64: 512, 128>}]} {
    %c0 = arith.constant 0 : index
    %c0_0 = arith.constant 0 : index
    %0 = vector.load %arg2[%c0, %c0_0] : memref<512x4xf32, #tpu.memory_space<vmem>>, vector<512x4xf32>
    %c0_1 = arith.constant 0 : index
    %c0_2 = arith.constant 0 : index
    %1 = vector.load %arg7[%c0_1, %c0_2] : memref<1024x4xf32, #tpu.memory_space<vmem>>, vector<512x4xf32>
    tpu.vector_store %arg7[%c0_1, %c0_2], %0 {strides = array<i32>} : memref<1024x4xf32, #tpu.memory_space<vmem>>, vector<512x4xf32>,
    %c0_3 = arith.constant 0 : index
    %c0_4 = arith.constant 0 : index
    %2 = vector.load %arg3[%c0_3, %c0_4] : memref<512x4xf32, #tpu.memory_space<vmem>>, vector<512x4xf32>
    %c512 = arith.constant 512 : index
    %c0_5 = arith.constant 0 : index
    %3 = vector.load %arg7[%c512, %c0_5] : memref<1024x4xf32, #tpu.memory_space<vmem>>, vector<512x4xf32>
    tpu.vector_store %arg7[%c512, %c0_5], %2 {strides = array<i32>} : memref<1024x4xf32, #tpu.memory_space<vmem>>, vector<512x4xf32>,
    %cst = arith.constant 0.000000e+00 : f32
    %4 = vector.broadcast %cst : f32 to vector<512x128xf32>
    %c0_6 = arith.constant 0 : index
    %c0_7 = arith.constant 0 : index
    %5 = vector.load %arg7[%c0_6, %c0_7] : memref<1024x4xf32, #tpu.memory_space<vmem>>, vector<512x4xf32>
    %6 = arith.truncf %5 : vector<512x4xf32> to vector<512x4xbf16>
    %c0_8 = arith.constant 0 : index
    %c0_9 = arith.constant 0 : index
    %c0_10 = arith.constant 0 : index
    %7 = vector.load %arg4[%c0_8, %c0_9, %c0_10] : memref<9x4x128xbf16, #tpu.memory_space<vmem>>, vector<1x4x128xbf16>
    %8 = vector.shape_cast %7 : vector<1x4x128xbf16> to vector<4x128xbf16>
    %cst_11 = arith.constant dense<0.000000e+00> : vector<512x128xf32>
    %9 = tpu.matmul %6, %8, %cst_11 {dimension_numbers = #tpu.dot_dimension_numbers<[1], [0], [0], [1], [0, 0, 1, 1], [], []>} : vector<512x4xbf16>, vector<4x128xbf16>, vector<512x128xf32> -> vector<512x128xf32>
    %10 = arith.addf %4, %9 : vector<512x128xf32>
    %c1 = arith.constant 1 : index
    %c0_12 = arith.constant 0 : index
    %11 = vector.load %arg7[%c1, %c0_12] : memref<1024x4xf32, #tpu.memory_space<vmem>>, vector<512x4xf32>
    %12 = arith.truncf %11 : vector<512x4xf32> to vector<512x4xbf16>
    %c1_13 = arith.constant 1 : index
    %c0_14 = arith.constant 0 : index
    %c0_15 = arith.constant 0 : index
    %13 = vector.load %arg4[%c1_13, %c0_14, %c0_15] : memref<9x4x128xbf16, #tpu.memory_space<vmem>>, vector<1x4x128xbf16>
    %14 = vector.shape_cast %13 : vector<1x4x128xbf16> to vector<4x128xbf16>
    %cst_16 = arith.constant dense<0.000000e+00> : vector<512x128xf32>
    %15 = tpu.matmul %12, %14, %cst_16 {dimension_numbers = #tpu.dot_dimension_numbers<[1], [0], [0], [1], [0, 0, 1, 1], [], []>} : vector<512x4xbf16>, vector<4x128xbf16>, vector<512x128xf32> -> vector<512x128xf32>
    %16 = arith.addf %10, %15 : vector<512x128xf32>
    %c2 = arith.constant 2 : index
    %c0_17 = arith.constant 0 : index
    %17 = vector.load %arg7[%c2, %c0_17] : memref<1024x4xf32, #tpu.memory_space<vmem>>, vector<512x4xf32>
    %18 = arith.truncf %17 : vector<512x4xf32> to vector<512x4xbf16>
    %c2_18 = arith.constant 2 : index
    %c0_19 = arith.constant 0 : index
    %c0_20 = arith.constant 0 : index
    %19 = vector.load %arg4[%c2_18, %c0_19, %c0_20] : memref<9x4x128xbf16, #tpu.memory_space<vmem>>, vector<1x4x128xbf16>
    %20 = vector.shape_cast %19 : vector<1x4x128xbf16> to vector<4x128xbf16>
    %cst_21 = arith.constant dense<0.000000e+00> : vector<512x128xf32>
    %21 = tpu.matmul %18, %20, %cst_21 {dimension_numbers = #tpu.dot_dimension_numbers<[1], [0], [0], [1], [0, 0, 1, 1], [], []>} : vector<512x4xbf16>, vector<4x128xbf16>, vector<512x128xf32> -> vector<512x128xf32>
    %22 = arith.addf %16, %21 : vector<512x128xf32>
    %c18 = arith.constant 18 : index
    %c0_22 = arith.constant 0 : index
    %23 = vector.load %arg7[%c18, %c0_22] : memref<1024x4xf32, #tpu.memory_space<vmem>>, vector<512x4xf32>
    %24 = arith.truncf %23 : vector<512x4xf32> to vector<512x4xbf16>
    %c3 = arith.constant 3 : index
    %c0_23 = arith.constant 0 : index
    %c0_24 = arith.constant 0 : index
    %25 = vector.load %arg4[%c3, %c0_23, %c0_24] : memref<9x4x128xbf16, #tpu.memory_space<vmem>>, vector<1x4x128xbf16>
    %26 = vector.shape_cast %25 : vector<1x4x128xbf16> to vector<4x128xbf16>
    %cst_25 = arith.constant dense<0.000000e+00> : vector<512x128xf32>
    %27 = tpu.matmul %24, %26, %cst_25 {dimension_numbers = #tpu.dot_dimension_numbers<[1], [0], [0], [1], [0, 0, 1, 1], [], []>} : vector<512x4xbf16>, vector<4x128xbf16>, vector<512x128xf32> -> vector<512x128xf32>
    %28 = arith.addf %22, %27 : vector<512x128xf32>
    %c19 = arith.constant 19 : index
    %c0_26 = arith.constant 0 : index
    %29 = vector.load %arg7[%c19, %c0_26] : memref<1024x4xf32, #tpu.memory_space<vmem>>, vector<512x4xf32>
    %30 = arith.truncf %29 : vector<512x4xf32> to vector<512x4xbf16>
    %c4 = arith.constant 4 : index
    %c0_27 = arith.constant 0 : index
    %c0_28 = arith.constant 0 : index
    %31 = vector.load %arg4[%c4, %c0_27, %c0_28] : memref<9x4x128xbf16, #tpu.memory_space<vmem>>, vector<1x4x128xbf16>
    %32 = vector.shape_cast %31 : vector<1x4x128xbf16> to vector<4x128xbf16>
    %cst_29 = arith.constant dense<0.000000e+00> : vector<512x128xf32>
    %33 = tpu.matmul %30, %32, %cst_29 {dimension_numbers = #tpu.dot_dimension_numbers<[1], [0], [0], [1], [0, 0, 1, 1], [], []>} : vector<512x4xbf16>, vector<4x128xbf16>, vector<512x128xf32> -> vector<512x128xf32>
    %34 = arith.addf %28, %33 : vector<512x128xf32>
    %c20 = arith.constant 20 : index
    %c0_30 = arith.constant 0 : index
    %35 = vector.load %arg7[%c20, %c0_30] : memref<1024x4xf32, #tpu.memory_space<vmem>>, vector<512x4xf32>
    %36 = arith.truncf %35 : vector<512x4xf32> to vector<512x4xbf16>
    %c5 = arith.constant 5 : index
    %c0_31 = arith.constant 0 : index
    %c0_32 = arith.constant 0 : index
    %37 = vector.load %arg4[%c5, %c0_31, %c0_32] : memref<9x4x128xbf16, #tpu.memory_space<vmem>>, vector<1x4x128xbf16>
    %38 = vector.shape_cast %37 : vector<1x4x128xbf16> to vector<4x128xbf16>
    %cst_33 = arith.constant dense<0.000000e+00> : vector<512x128xf32>
    %39 = tpu.matmul %36, %38, %cst_33 {dimension_numbers = #tpu.dot_dimension_numbers<[1], [0], [0], [1], [0, 0, 1, 1], [], []>} : vector<512x4xbf16>, vector<4x128xbf16>, vector<512x128xf32> -> vector<512x128xf32>
    %40 = arith.addf %34, %39 : vector<512x128xf32>
    %c36 = arith.constant 36 : index
    %c0_34 = arith.constant 0 : index
    %41 = vector.load %arg7[%c36, %c0_34] : memref<1024x4xf32, #tpu.memory_space<vmem>>, vector<512x4xf32>
    %42 = arith.truncf %41 : vector<512x4xf32> to vector<512x4xbf16>
    %c6 = arith.constant 6 : index
    %c0_35 = arith.constant 0 : index
    %c0_36 = arith.constant 0 : index
    %43 = vector.load %arg4[%c6, %c0_35, %c0_36] : memref<9x4x128xbf16, #tpu.memory_space<vmem>>, vector<1x4x128xbf16>
    %44 = vector.shape_cast %43 : vector<1x4x128xbf16> to vector<4x128xbf16>
    %cst_37 = arith.constant dense<0.000000e+00> : vector<512x128xf32>
    %45 = tpu.matmul %42, %44, %cst_37 {dimension_numbers = #tpu.dot_dimension_numbers<[1], [0], [0], [1], [0, 0, 1, 1], [], []>} : vector<512x4xbf16>, vector<4x128xbf16>, vector<512x128xf32> -> vector<512x128xf32>
    %46 = arith.addf %40, %45 : vector<512x128xf32>
    %c37 = arith.constant 37 : index
    %c0_38 = arith.constant 0 : index
    %47 = vector.load %arg7[%c37, %c0_38] : memref<1024x4xf32, #tpu.memory_space<vmem>>, vector<512x4xf32>
    %48 = arith.truncf %47 : vector<512x4xf32> to vector<512x4xbf16>
    %c7 = arith.constant 7 : index
    %c0_39 = arith.constant 0 : index
    %c0_40 = arith.constant 0 : index
    %49 = vector.load %arg4[%c7, %c0_39, %c0_40] : memref<9x4x128xbf16, #tpu.memory_space<vmem>>, vector<1x4x128xbf16>
    %50 = vector.shape_cast %49 : vector<1x4x128xbf16> to vector<4x128xbf16>
    %cst_41 = arith.constant dense<0.000000e+00> : vector<512x128xf32>
    %51 = tpu.matmul %48, %50, %cst_41 {dimension_numbers = #tpu.dot_dimension_numbers<[1], [0], [0], [1], [0, 0, 1, 1], [], []>} : vector<512x4xbf16>, vector<4x128xbf16>, vector<512x128xf32> -> vector<512x128xf32>
    %52 = arith.addf %46, %51 : vector<512x128xf32>
    %c38 = arith.constant 38 : index
    %c0_42 = arith.constant 0 : index
    %53 = vector.load %arg7[%c38, %c0_42] : memref<1024x4xf32, #tpu.memory_space<vmem>>, vector<512x4xf32>
    %54 = arith.truncf %53 : vector<512x4xf32> to vector<512x4xbf16>
    %c8 = arith.constant 8 : index
    %c0_43 = arith.constant 0 : index
    %c0_44 = arith.constant 0 : index
    %55 = vector.load %arg4[%c8, %c0_43, %c0_44] : memref<9x4x128xbf16, #tpu.memory_space<vmem>>, vector<1x4x128xbf16>
    %56 = vector.shape_cast %55 : vector<1x4x128xbf16> to vector<4x128xbf16>
    %cst_45 = arith.constant dense<0.000000e+00> : vector<512x128xf32>
    %57 = tpu.matmul %54, %56, %cst_45 {dimension_numbers = #tpu.dot_dimension_numbers<[1], [0], [0], [1], [0, 0, 1, 1], [], []>} : vector<512x4xbf16>, vector<4x128xbf16>, vector<512x128xf32> -> vector<512x128xf32>
    %58 = arith.addf %52, %57 : vector<512x128xf32>
    %c0_46 = arith.constant 0 : index
    %c0_47 = arith.constant 0 : index
    %59 = vector.load %arg5[%c0_46, %c0_47] : memref<1x128xf32, #tpu.memory_space<vmem>>, vector<1x128xf32>
    %60 = vector.broadcast %59 : vector<1x128xf32> to vector<512x128xf32>
    %61 = arith.addf %58, %60 : vector<512x128xf32>
    %cst_48 = arith.constant 0.000000e+00 : f32
    %62 = vector.broadcast %cst_48 : f32 to vector<512x128xf32>
    %63 = arith.maximumf %61, %62 : vector<512x128xf32>
    %c0_49 = arith.constant 0 : index
    %c0_50 = arith.constant 0 : index
    %64 = vector.load %arg6[%c0_49, %c0_50] : memref<512x128xf32, #tpu.memory_space<vmem>>, vector<512x128xf32>
    tpu.vector_store %arg6[%c0_49, %c0_50], %63 {strides = array<i32>} : memref<512x128xf32, #tpu.memory_space<vmem>>, vector<512x128xf32>,
    return
  }
  func.func @transform_0(%arg0: i32, %arg1: i32) -> (i32, i32) {
    %c0_i32 = arith.constant 0 : i32
    %c0_i32_0 = arith.constant 0 : i32
    return %arg0, %c0_i32 : i32, i32
  }
  func.func @transform_1(%arg0: i32, %arg1: i32) -> (i32, i32) {
    %c1_i32 = arith.constant 1 : i32
    %0 = arith.addi %arg0, %c1_i32 : i32
    %c0_i32 = arith.constant 0 : i32
    %c0_i32_0 = arith.constant 0 : i32
    return %0, %c0_i32 : i32, i32
  }
  func.func @transform_2(%arg0: i32, %arg1: i32) -> (i32, i32, i32) {
    %c0_i32 = arith.constant 0 : i32
    %c0_i32_0 = arith.constant 0 : i32
    %c0_i32_1 = arith.constant 0 : i32
    return %c0_i32, %c0_i32_0, %arg1 : i32, i32, i32
  }
  func.func @transform_3(%arg0: i32, %arg1: i32) -> (i32, i32) {
    %c0_i32 = arith.constant 0 : i32
    %c0_i32_0 = arith.constant 0 : i32
    return %c0_i32, %arg1 : i32, i32
  }
  func.func @transform_4(%arg0: i32, %arg1: i32) -> (i32, i32) {
    %c0_i32 = arith.constant 0 : i32
    return %arg0, %arg1 : i32, i32
  }
}

</mosaic_0001>

<bundles_post_ra>
// kernel: tpu_custom_call.1
= control target key start
LH: loop header
LB: loop body
LE: loop exit
PB: predicated region body
PF: predicated region fallthrough
CT: control target
= control target key end

     0   :  { %9 = vsyncpa [#allocation4], 0  ;;  %s8682_s0 = inlined_call_operand.vmem [shape: f32[2048,4], index: 0, kind: input, shape index: {}]   ;;  %s8683_s1 = inlined_call_operand.vmem [shape: f32[2048,4], index: 1, kind: input, shape index: {}]   ;;  %s8684_s2 = inlined_call_operand.vmem [shape: bf16[9,4,128], index: 2, kind: input, shape index: {}]   ;;  %s8685_s3 = inlined_call_operand.vmem [shape: f32[1,128], index: 3, kind: input, shape index: {}]   ;;  %s8686_s4 = inlined_call_operand.hbm [shape: f32[1536,128], index: 4, kind: output, shape index: {}]  }
   0x1   :  { %11 = vsyncpa [#allocation4 + $0x1], 0  ;;  %s7576_s15 = smov 0   ;;  %s7578_s16 = smov 0  }
   0x2   :  { %s7580_s17 = smov 0   ;;  %s7582_s18 = smov 0  }
   0x3   :  { %s7584_s19 = smov 0   ;;  %s7586_s20 = smov 0  }
   0x4 LB: > { %s5678_s21 = sadd.s32 4294967295, %s7546_s20   ;;  %s5679_s22 = sadd.s32 4294967294, %s7546_s20   ;;  %s7546_s20 = sphi %s7586_s20, %s17_s20   ;;  %s7542_s19 = sphi %s7584_s19, %s8694_s19   ;;  %s7538_s18 = sphi %s7582_s18, %s8693_s18   ;;  %s7534_s17 = sphi %s7580_s17, %s8692_s17   ;;  %s7530_s16 = sphi %s7578_s16, %s8691_s16   ;;  %s7526_s15 = sphi %s7576_s15, %s8690_s15  }
   0x5   : > { %s29_s23 = sadd.s32 1, %s7542_s19  ;;  %s144_s24 = sadd.s32 1, %s7534_s17 }
   0x6   : > { %p31_p0 = scmp.ge.s32.totalorder %s29_s23, 3  ;;  %p154_p1 = scmp.ne.s32.totalorder %s7534_s17, %s7530_s16 }
   0x7   : > { %p155_p2 = scmp.eq.s32.totalorder %s5678_s21, 2  ;;  %p160_p3 = scmp.ne.s32.totalorder %s7530_s16, %s7526_s15 }
   0x8   : > { %s8696_s23 = smov (%p31_p0, %s29_s23), 0  ;;  %p161_p5 = scmp.eq.s32.totalorder %s5679_s22, 2 }
   0x9   : > { %p7616_p4 = por %p155_p2, %p154_p1  ;;  %s139_s26 = ssub.s32 %s7542_s19, %s8696_s23 }
   0xa   : > { %p5684_p6 = scmp.ge.s32.totalorder %s7546_s20, 1  ;;  %p142_p7 = scmp.eq.s32.totalorder %s139_s26, 0 }
   0xb   : > { %p7623_p8 = por %p161_p5, %p160_p3  ;;  %p212_p9 = scmp.lt.s32.totalorder %s7546_s20, 4 }
   0xc   : > { %s7629_s28 = scalar_select %p142_p7, %s7534_s17, %s144_s24  }
   0xd   : > { %p213_p10 = pnand %p5684_p6, %p212_p9 }
   0xe   : > { %v5690_v0 = vld [vmem:[%s8684_s2 + $0x2] sm:$0x3] (!%p213_p10)  ;;  %vm822_vm0 = vcmask (!%p213_p10), 1041408   ;;  %v5821_v1 = vld [vmem:[%s8684_s2 + $0x8] sm:$0x3] (!%p213_p10)  ;;  %s7638_s7 = sshll.u32 (!%p213_p10), %s7538_s18, 6 }
   0xf   : > { %216 = sbr.rel (%p213_p10) target bundleno = 847 (0x34f), region = 36  ;;  %7400 = vmatprep.subr.msk.bf16.mxu1 (!%p213_p10), %vm822_vm0, %v5690_v0  ;;  %7404 = vmatprep.subr.msk.bf16.mxu0 (!%p213_p10), %vm822_vm0, %v5821_v1  ;;  %v824_v2 = vsel (!%p213_p10), %vm822_vm0, %v5690_v0, 0  ;;  %v7644_v3 = vsel (!%p213_p10), %vm822_vm0, %v5821_v1, 0  ;;  %p252_p11 = scmp.lt.s32.totalorder (!%p213_p10), %s7638_s7, 255  ;;  %v7651_v4 = vld [vmem:[%s8684_s2] sm:$0x3] (!%p213_p10) }
  0x10   : > { %6293 = vmatpush3.bf16.msra.mxu1 (!%p213_p10), %v824_v2  ;;  %6557 = vmatpush3.bf16.msra.mxu0 (!%p213_p10), %v7644_v3  ;;  %v7656_v5 = vld [vmem:[%s8684_s2 + $0xa] sm:$0x3] (!%p213_p10)  ;;  %vm338_vm1 = vcmask (!%p213_p10), 31744   ;;  %v1212_v42 = vsel (!%p213_p10), %vm822_vm0, %v7651_v4, 0  ;;  %v7729_v53 = vld [vmem:[%s8684_s2 + $0xc] sm:$0x3] (!%p213_p10) }
  0x11   : > { %7401 = vmatprep.subr.msk.bf16.mxu1 (!%p213_p10), %vm822_vm0, %v7651_v4  ;;  %7406 = vmatprep.subr.msk.bf16.mxu0 (!%p213_p10), %vm822_vm0, %v7656_v5  ;;  %v3348_v44 = vsel (!%p213_p10), %vm822_vm0, %v7656_v5, 0  ;;  %s5993_s29 = sadd.s32 (!%p213_p10), 64, %s7638_s7  ;;  %s7548_s14 = smov (!%p213_p10), [#allocation3]  }
  0x12   : > { %p7801_p12 = scmp.lt.s32.totalorder (!%p213_p10), %s5993_s29, 255  ;;  %s7472_s21 = sshll.u32 (!%p213_p10), %s7548_s14, 4  ;;  %s7473_s21 = int_to_ptr.vmem [resolvable:$false] %s7472_s21 }
  0x16   : > { %s253_s12 = scalar_select %p252_p11, %s7638_s7, 255 }
  0x17   : > { %s8698_s29 = smov (!%p7801_p12, %s5993_s29), 255 }
  0x18   : > { %s5687_s13 = sshll.u32 %s253_s12, 3  ;;  %s5689_s5 = sshll.u32 %s8698_s29, 3 }
  0x19   : > { %s7666_s22 = scalar_lea.vmem %s8682_s0, %s5687_s13  ;;  %s7844_s8 = scalar_lea.vmem %s8683_s1, %s5689_s5 }
  0x1a   : > { %v274_v6 = vld [vmem:[%s7666_s22] sm:$0xff]  ;;  %v275_v7 = vld [vmem:[%s7666_s22 + $0x8] sm:$0xff]  ;;  %v276_v8 = vld [vmem:[%s7666_s22 + $0x10] sm:$0xff]  ;;  %s248_s29 = sand.u32 1, %s7530_s16  }
  0x1b   : > { %339 = vst.msk [vmem:[#allocation2] sm:$0xff] %vm338_vm1, %v274_v6  ;;  %340 = vst.msk [vmem:[#allocation2 + $0x8] sm:$0xff] %vm338_vm1, %v275_v7  ;;  %v277_v9 = vld [vmem:[%s7666_s22 + $0x18] sm:$0xff]  ;;  %v278_v10 = vld [vmem:[%s7666_s22 + $0x20] sm:$0xff]  ;;  %s5685_s6 = sshll.u32 %s248_s29, 9 }
  0x1c   : > { %341 = vst.msk [vmem:[#allocation2 + $0x10] sm:$0xff] %vm338_vm1, %v276_v8  ;;  %v279_v11 = vld [vmem:[%s7666_s22 + $0x28] sm:$0xff]  ;;  %342 = vst.msk [vmem:[#allocation2 + $0x18] sm:$0xff] %vm338_vm1, %v277_v9  ;;  %v280_v12 = vld [vmem:[%s7666_s22 + $0x30] sm:$0xff]  ;;  %s8475_s7 = scalar_lea.vmem [#allocation3], %s5685_s6 }
  0x1d   : > { %343 = vst.msk [vmem:[#allocation2 + $0x20] sm:$0xff] %vm338_vm1, %v278_v10  ;;  %344 = vst.msk [vmem:[#allocation2 + $0x28] sm:$0xff] %vm338_vm1, %v279_v11  ;;  %v281_v13 = vld [vmem:[%s7666_s22 + $0x38] sm:$0xff]  ;;  %v282_v14 = vld [vmem:[%s7666_s22 + $0x40] sm:$0xff]  ;;  %s5567_s9 = sshll.u32 %s8475_s7, 4  ;;  %s8629_s9 = int_to_ptr.vmem [resolvable:$true] %s5567_s9 }
  0x1e   : > { %345 = vst.msk [vmem:[#allocation2 + $0x30] sm:$0xff] %vm338_vm1, %v280_v12  ;;  %346 = vst.msk [vmem:[#allocation2 + $0x38] sm:$0xff] %vm338_vm1, %v281_v13  ;;  %v283_v15 = vld [vmem:[%s7666_s22 + $0x48] sm:$0xff]  ;;  %v284_v16 = vld [vmem:[%s7666_s22 + $0x50] sm:$0xff]  ;;  %s7468_s13 = scalar_lea.vmem %s8629_s9, 8192  ;;  %p7475_p2 = scmp.lt.s32.totalorder %s8629_s9, %s7473_s21 }
  0x1f   : > { %347 = vst.msk [vmem:[#allocation2 + $0x40] sm:$0xff] %vm338_vm1, %v282_v14  ;;  %v285_v17 = vld [vmem:[%s7666_s22 + $0x58] sm:$0xff]  ;;  %348 = vst.msk [vmem:[#allocation2 + $0x48] sm:$0xff] %vm338_vm1, %v283_v15  ;;  %v286_v18 = vld [vmem:[%s7666_s22 + $0x60] sm:$0xff]  ;;  %p7469_p13 = scmp.ne.s32.totalorder %s8629_s9, %s7468_s13 }
  0x20   : > { %349 = vst.msk [vmem:[#allocation2 + $0x50] sm:$0xff] %vm338_vm1, %v284_v16  ;;  %350 = vst.msk [vmem:[#allocation2 + $0x58] sm:$0xff] %vm338_vm1, %v285_v17  ;;  %v287_v19 = vld [vmem:[%s7666_s22 + $0x68] sm:$0xff]  ;;  %v288_v20 = vld [vmem:[%s7666_s22 + $0x70] sm:$0xff] }
  0x21   : > { %351 = vst.msk [vmem:[#allocation2 + $0x60] sm:$0xff] %vm338_vm1, %v286_v18  ;;  %352 = vst.msk [vmem:[#allocation2 + $0x68] sm:$0xff] %vm338_vm1, %v287_v19  ;;  %v289_v21 = vld [vmem:[%s7666_s22 + $0x78] sm:$0xff]  ;;  %v290_v22 = vld [vmem:[%s7666_s22 + $0x80] sm:$0xff]  ;;  %p7470_p0 = pnand %p7469_p13, %p7616_p4 }
  0x22   : > { %353 = vst.msk [vmem:[#allocation2 + $0x70] sm:$0xff] %vm338_vm1, %v288_v20  ;;  %v291_v23 = vld [vmem:[%s7666_s22 + $0x88] sm:$0xff]  ;;  %354 = vst.msk [vmem:[#allocation2 + $0x78] sm:$0xff] %vm338_vm1, %v289_v21  ;;  %v292_v24 = vld [vmem:[%s7666_s22 + $0x90] sm:$0xff] }
  0x23   : > { %355 = vst.msk [vmem:[#allocation2 + $0x80] sm:$0xff] %vm338_vm1, %v290_v22  ;;  %356 = vst.msk [vmem:[#allocation2 + $0x88] sm:$0xff] %vm338_vm1, %v291_v23  ;;  %v293_v25 = vld [vmem:[%s7666_s22 + $0x98] sm:$0xff]  ;;  %v294_v26 = vld [vmem:[%s7666_s22 + $0xa0] sm:$0xff]  ;;  %p7471_p1 = pneg %p7470_p0 }
  0x24   : > { %357 = vst.msk [vmem:[#allocation2 + $0x90] sm:$0xff] %vm338_vm1, %v292_v24  ;;  %358 = vst.msk [vmem:[#allocation2 + $0x98] sm:$0xff] %vm338_vm1, %v293_v25  ;;  %v295_v27 = vld [vmem:[%s7666_s22 + $0xa8] sm:$0xff]  ;;  %v296_v28 = vld [vmem:[%s7666_s22 + $0xb0] sm:$0xff] }
  0x25   : > { %359 = vst.msk [vmem:[#allocation2 + $0xa0] sm:$0xff] %vm338_vm1, %v294_v26  ;;  %v297_v29 = vld [vmem:[%s7666_s22 + $0xb8] sm:$0xff]  ;;  %v628_v30 = vld [vmem:[#allocation2 + $0x1] sm:$0xff]  ;;  %v629_v31 = vld [vmem:[#allocation2 + $0x9] sm:$0xff] }
  0x26   : > { %360 = vst.msk [vmem:[#allocation2 + $0xa8] sm:$0xff] %vm338_vm1, %v295_v27  ;;  %361 = vst.msk [vmem:[#allocation2 + $0xb0] sm:$0xff] %vm338_vm1, %v296_v28  ;;  %v298_v32 = vld [vmem:[%s7666_s22 + $0xc0] sm:$0xff]  ;;  %v692_v33 = vpack.c.bf16 %v629_v31, %v628_v30  ;;  %v2603_v34 = vld [vmem:[#allocation2 + $0x13] sm:$0xff] }
  0x27   : > { %362 = vst.msk [vmem:[#allocation2 + $0xb8] sm:$0xff] %vm338_vm1, %v297_v29  ;;  %v2604_v35 = vld [vmem:[#allocation2 + $0x1b] sm:$0xff]  ;;  %v630_v36 = vld [vmem:[#allocation2 + $0x11] sm:$0xff]  ;;  %363 = vst.msk [vmem:[#allocation2 + $0xc0] sm:$0xff] %vm338_vm1, %v298_v32 }
  0x28   : > { %v2667_v37 = vpack.c.bf16 %v2604_v35, %v2603_v34  ;;  %v631_v38 = vld [vmem:[#allocation2 + $0x19] sm:$0xff]  ;;  %v2605_v39 = vld [vmem:[#allocation2 + $0x23] sm:$0xff]  ;;  %v2606_v40 = vld [vmem:[#allocation2 + $0x2b] sm:$0xff]  ;;  %6294 = vmatprep.mubr.msk.bf16.mxu1 %vm338_vm1, %v692_v33 }
  0x29   : > { %v693_v41 = vpack.c.bf16 %v631_v38, %v630_v36  ;;  %v2668_v43 = vpack.c.bf16 %v2606_v40, %v2605_v39  ;;  %v632_v45 = vld [vmem:[#allocation2 + $0x21] sm:$0xff]  ;;  %v633_v46 = vld [vmem:[#allocation2 + $0x29] sm:$0xff]  ;;  %v2607_v47 = vld [vmem:[#allocation2 + $0x33] sm:$0xff] }
  0x2a   : > { %6558 = vmatprep.mubr.msk.bf16.mxu0 %vm338_vm1, %v2667_v37  ;;  %v694_v48 = vpack.c.bf16 %v633_v46, %v632_v45  ;;  %v2608_v49 = vld [vmem:[#allocation2 + $0x3b] sm:$0xff]  ;;  %v634_v51 = vld [vmem:[#allocation2 + $0x31] sm:$0xff]  ;;  %v2609_v54 = vld [vmem:[#allocation2 + $0x43] sm:$0xff] }
  0x2b   : > { %6295 = vmatmul.mubr.msk.bf16.vlgmr.msra.gmra.mrb[0].mxu1 %vm338_vm1, %v693_v41  ;;  %6559 = vmatmul.mubr.msk.bf16.vlgmr.msra.gmra.mrb[0].mxu0 %vm338_vm1, %v2668_v43  ;;  %v2669_v50 = vpack.c.bf16 %v2608_v49, %v2607_v47  ;;  %v635_v52 = vld [vmem:[#allocation2 + $0x39] sm:$0xff]  ;;  %v2610_v55 = vld [vmem:[#allocation2 + $0x4b] sm:$0xff]  ;;  %v636_v56 = vld [vmem:[#allocation2 + $0x41] sm:$0xff] }
  0x2c   : > { %6359 = vmatpush3.bf16.msra.mxu1 %v1212_v42  ;;  %6623 = vmatpush3.bf16.msra.mxu0 %v3348_v44  ;;  %v637_v57 = vld [vmem:[#allocation2 + $0x49] sm:$0xff]  ;;  %v2611_v58 = vld [vmem:[#allocation2 + $0x53] sm:$0xff]  ;;  %v2612_v59 = vld [vmem:[#allocation2 + $0x5b] sm:$0xff]  ;;  %v695_v60 = vpack.c.bf16 %v635_v52, %v634_v51  ;;  %v2670_v61 = vpack.c.bf16 %v2610_v55, %v2609_v54 }
  0x2d   : > { %6298 = vmatprep.mubr.msk.bf16.mxu1 %vm338_vm1, %v694_v48  ;;  %6562 = vmatprep.mubr.msk.bf16.mxu0 %vm338_vm1, %v2669_v50  ;;  %v696_v62 = vpack.c.bf16 %v637_v57, %v636_v56  ;;  %v2671_v63 = vpack.c.bf16 %v2612_v59, %v2611_v58  ;;  %v638_v0 = vld [vmem:[#allocation2 + $0x51] sm:$0xff]  ;;  %v639_v1 = vld [vmem:[#allocation2 + $0x59] sm:$0xff]  ;;  %v2613_v2 = vld [vmem:[#allocation2 + $0x63] sm:$0xff] }
  0x2e   : > { %7407 = vmatprep.subr.msk.bf16.mxu0 %vm822_vm0, %v7729_v53  ;;  %v2614_v4 = vld [vmem:[#allocation2 + $0x6b] sm:$0xff]  ;;  %v640_v5 = vld [vmem:[#allocation2 + $0x61] sm:$0xff]  ;;  %v2615_v7 = vld [vmem:[#allocation2 + $0x73] sm:$0xff]  ;;  %v697_v13 = vpack.c.bf16 %v639_v1, %v638_v0 }
  0x2f   : > { %v641_v6 = vld [vmem:[#allocation2 + $0x69] sm:$0xff]  ;;  %v2616_v8 = vld [vmem:[#allocation2 + $0x7b] sm:$0xff]  ;;  %v2672_v14 = vpack.c.bf16 %v2614_v4, %v2613_v2  ;;  %v642_v24 = vld [vmem:[#allocation2 + $0x71] sm:$0xff] }
  0x30   : > { %v299_v9 = vld [vmem:[%s7666_s22 + $0xc8] sm:$0xff]  ;;  %v300_v10 = vld [vmem:[%s7666_s22 + $0xd0] sm:$0xff]  ;;  %v301_v11 = vld [vmem:[%s7666_s22 + $0xd8] sm:$0xff]  ;;  %v698_v18 = vpack.c.bf16 %v641_v6, %v640_v5  ;;  %v2673_v19 = vpack.c.bf16 %v2616_v8, %v2615_v7 }
  0x31   : > { %364 = vst.msk [vmem:[#allocation2 + $0xc8] sm:$0xff] %vm338_vm1, %v299_v9  ;;  %v302_v12 = vld [vmem:[%s7666_s22 + $0xe0] sm:$0xff]  ;;  %365 = vst.msk [vmem:[#allocation2 + $0xd0] sm:$0xff] %vm338_vm1, %v300_v10  ;;  %v303_v15 = vld [vmem:[%s7666_s22 + $0xe8] sm:$0xff] }
  0x32   : > { %366 = vst.msk [vmem:[#allocation2 + $0xd8] sm:$0xff] %vm338_vm1, %v301_v11  ;;  %367 = vst.msk [vmem:[#allocation2 + $0xe0] sm:$0xff] %vm338_vm1, %v302_v12  ;;  %v304_v16 = vld [vmem:[%s7666_s22 + $0xf0] sm:$0xff]  ;;  %v305_v17 = vld [vmem:[%s7666_s22 + $0xf8] sm:$0xff] }
  0x33   : > { %6299 = vmatmul.mubr.msk.bf16.gmra.mrb[4].mxu1 %vm338_vm1, %v695_v60  ;;  %6563 = vmatmul.mubr.msk.bf16.gmra.mrb[4].mxu0 %vm338_vm1, %v2670_v61  ;;  %368 = vst.msk [vmem:[#allocation2 + $0xe8] sm:$0xff] %vm338_vm1, %v303_v15  ;;  %369 = vst.msk [vmem:[#allocation2 + $0xf0] sm:$0xff] %vm338_vm1, %v304_v16  ;;  %v306_v20 = vld [vmem:[%s7666_s22 + $0x100] sm:$0xff]  ;;  %v307_v21 = vld [vmem:[%s7666_s22 + $0x108] sm:$0xff] }
  0x34   : > { %6302 = vmatprep.mubr.msk.bf16.mxu1 %vm338_vm1, %v696_v62  ;;  %6566 = vmatprep.mubr.msk.bf16.mxu0 %vm338_vm1, %v2671_v63  ;;  %370 = vst.msk [vmem:[#allocation2 + $0xf8] sm:$0xff] %vm338_vm1, %v305_v17  ;;  %v308_v22 = vld [vmem:[%s7666_s22 + $0x110] sm:$0xff]  ;;  %371 = vst.msk [vmem:[#allocation2 + $0x100] sm:$0xff] %vm338_vm1, %v306_v20  ;;  %v309_v23 = vld [vmem:[%s7666_s22 + $0x118] sm:$0xff] }
  0x35   : > { %372 = vst.msk [vmem:[#allocation2 + $0x108] sm:$0xff] %vm338_vm1, %v307_v21  ;;  %373 = vst.msk [vmem:[#allocation2 + $0x110] sm:$0xff] %vm338_vm1, %v308_v22  ;;  %v643_v25 = vld [vmem:[#allocation2 + $0x79] sm:$0xff]  ;;  %v2617_v26 = vld [vmem:[#allocation2 + $0x83] sm:$0xff] }
  0x36   : > { %v310_v27 = vld [vmem:[%s7666_s22 + $0x120] sm:$0xff]  ;;  %374 = vst.msk [vmem:[#allocation2 + $0x118] sm:$0xff] %vm338_vm1, %v309_v23  ;;  %v2618_v28 = vld [vmem:[#allocation2 + $0x8b] sm:$0xff]  ;;  %v313_v32 = vld [vmem:[%s7666_s22 + $0x138] sm:$0xff]  ;;  %v699_v37 = vpack.c.bf16 %v643_v25, %v642_v24 }
  0x37   : > { %375 = vst.msk [vmem:[#allocation2 + $0x120] sm:$0xff] %vm338_vm1, %v310_v27  ;;  %v311_v29 = vld [vmem:[%s7666_s22 + $0x128] sm:$0xff]  ;;  %v312_v30 = vld [vmem:[%s7666_s22 + $0x130] sm:$0xff]  ;;  %v314_v33 = vld [vmem:[%s7666_s22 + $0x140] sm:$0xff]  ;;  %v2674_v38 = vpack.c.bf16 %v2618_v28, %v2617_v26 }
  0x38   : > { %v644_v31 = vld [vmem:[#allocation2 + $0x81] sm:$0xff]  ;;  %376 = vst.msk [vmem:[#allocation2 + $0x128] sm:$0xff] %vm338_vm1, %v311_v29  ;;  %377 = vst.msk [vmem:[#allocation2 + $0x130] sm:$0xff] %vm338_vm1, %v312_v30  ;;  %v645_v34 = vld [vmem:[#allocation2 + $0x89] sm:$0xff] }
  0x39   : > { %v2619_v35 = vld [vmem:[#allocation2 + $0x93] sm:$0xff]  ;;  %v2620_v36 = vld [vmem:[#allocation2 + $0x9b] sm:$0xff]  ;;  %378 = vst.msk [vmem:[#allocation2 + $0x138] sm:$0xff] %vm338_vm1, %v313_v32  ;;  %379 = vst.msk [vmem:[#allocation2 + $0x140] sm:$0xff] %vm338_vm1, %v314_v33  ;;  %v700_v39 = vpack.c.bf16 %v645_v34, %v644_v31 }
  0x3a   : > { %v2675_v40 = vpack.c.bf16 %v2620_v36, %v2619_v35  ;;  %v646_v41 = vld [vmem:[#allocation2 + $0x91] sm:$0xff]  ;;  %v647_v42 = vld [vmem:[#allocation2 + $0x99] sm:$0xff]  ;;  %v2621_v43 = vld [vmem:[#allocation2 + $0xa3] sm:$0xff] }
  0x3b   : > { %6303 = vmatmul.mubr.msk.bf16.gmra.mrb[8].mxu1 %vm338_vm1, %v697_v13  ;;  %6567 = vmatmul.mubr.msk.bf16.gmra.mrb[8].mxu0 %vm338_vm1, %v2672_v14  ;;  %v2622_v44 = vld [vmem:[#allocation2 + $0xab] sm:$0xff]  ;;  %v648_v45 = vld [vmem:[#allocation2 + $0xa1] sm:$0xff]  ;;  %v2623_v47 = vld [vmem:[#allocation2 + $0xb3] sm:$0xff]  ;;  %v701_v51 = vpack.c.bf16 %v647_v42, %v646_v41 }
  0x3c   : > { %6306 = vmatprep.mubr.msk.bf16.mxu1 %vm338_vm1, %v698_v18  ;;  %6570 = vmatprep.mubr.msk.bf16.mxu0 %vm338_vm1, %v2673_v19  ;;  %v649_v46 = vld [vmem:[#allocation2 + $0xa9] sm:$0xff]  ;;  %v2624_v48 = vld [vmem:[#allocation2 + $0xbb] sm:$0xff]  ;;  %v2676_v52 = vpack.c.bf16 %v2622_v44, %v2621_v43  ;;  %v650_v60 = vld [vmem:[#allocation2 + $0xb1] sm:$0xff] }
  0x3d   : > { %v315_v49 = vld [vmem:[%s7666_s22 + $0x148] sm:$0xff]  ;;  %v316_v50 = vld [vmem:[%s7666_s22 + $0x150] sm:$0xff]  ;;  %v317_v54 = vld [vmem:[%s7666_s22 + $0x158] sm:$0xff]  ;;  %v702_v55 = vpack.c.bf16 %v649_v46, %v648_v45  ;;  %v2677_v56 = vpack.c.bf16 %v2624_v48, %v2623_v47 }
  0x3e   : > { %380 = vst.msk [vmem:[#allocation2 + $0x148] sm:$0xff] %vm338_vm1, %v315_v49  ;;  %381 = vst.msk [vmem:[#allocation2 + $0x150] sm:$0xff] %vm338_vm1, %v316_v50  ;;  %v318_v57 = vld [vmem:[%s7666_s22 + $0x160] sm:$0xff]  ;;  %v319_v58 = vld [vmem:[%s7666_s22 + $0x168] sm:$0xff] }
  0x3f   : > { %382 = vst.msk [vmem:[#allocation2 + $0x158] sm:$0xff] %vm338_vm1, %v317_v54  ;;  %383 = vst.msk [vmem:[#allocation2 + $0x160] sm:$0xff] %vm338_vm1, %v318_v57  ;;  %v320_v59 = vld [vmem:[%s7666_s22 + $0x170] sm:$0xff]  ;;  %v651_v61 = vld [vmem:[#allocation2 + $0xb9] sm:$0xff] }
  0x40   : > { %v2625_v62 = vld [vmem:[#allocation2 + $0xc3] sm:$0xff]  ;;  %384 = vst.msk [vmem:[#allocation2 + $0x168] sm:$0xff] %vm338_vm1, %v319_v58  ;;  %385 = vst.msk [vmem:[#allocation2 + $0x170] sm:$0xff] %vm338_vm1, %v320_v59  ;;  %v321_v63 = vld [vmem:[%s7666_s22 + $0x178] sm:$0xff]  ;;  %v703_v11 = vpack.c.bf16 %v651_v61, %v650_v60 }
  0x41   : > { %v322_v0 = vld [vmem:[%s7666_s22 + $0x180] sm:$0xff]  ;;  %v2626_v1 = vld [vmem:[#allocation2 + $0xcb] sm:$0xff]  ;;  %386 = vst.msk [vmem:[#allocation2 + $0x178] sm:$0xff] %vm338_vm1, %v321_v63  ;;  %v2627_v6 = vld [vmem:[#allocation2 + $0xd3] sm:$0xff]  ;;  %v3898_v63 = vsel %vm822_vm0, %v7729_v53, 0 }
  0x42   : > { %v652_v2 = vld [vmem:[#allocation2 + $0xc1] sm:$0xff]  ;;  %387 = vst.msk [vmem:[#allocation2 + $0x180] sm:$0xff] %vm338_vm1, %v322_v0  ;;  %v653_v5 = vld [vmem:[#allocation2 + $0xc9] sm:$0xff]  ;;  %v325_v9 = vld [vmem:[%s7666_s22 + $0x198] sm:$0xff]  ;;  %v2678_v12 = vpack.c.bf16 %v2626_v1, %v2625_v62 }
  0x43   : > { %6307 = vmatmul.mubr.msk.bf16.gmra.mrb[12].mxu1 %vm338_vm1, %v699_v37  ;;  %6571 = vmatmul.mubr.msk.bf16.gmra.mrb[12].mxu0 %vm338_vm1, %v2674_v38  ;;  %v323_v4 = vld [vmem:[%s7666_s22 + $0x188] sm:$0xff]  ;;  %v324_v7 = vld [vmem:[%s7666_s22 + $0x190] sm:$0xff]  ;;  %v2628_v8 = vld [vmem:[#allocation2 + $0xdb] sm:$0xff]  ;;  %390 = vst.msk [vmem:[#allocation2 + $0x198] sm:$0xff] %vm338_vm1, %v325_v9  ;;  %v704_v15 = vpack.c.bf16 %v653_v5, %v652_v2 }
  0x44   : > { %6310 = vmatprep.mubr.msk.bf16.mxu1 %vm338_vm1, %v700_v39  ;;  %6574 = vmatprep.mubr.msk.bf16.mxu0 %vm338_vm1, %v2675_v40  ;;  %388 = vst.msk [vmem:[#allocation2 + $0x188] sm:$0xff] %vm338_vm1, %v323_v4  ;;  %389 = vst.msk [vmem:[#allocation2 + $0x190] sm:$0xff] %vm338_vm1, %v324_v7  ;;  %v326_v10 = vld [vmem:[%s7666_s22 + $0x1a0] sm:$0xff]  ;;  %v327_v13 = vld [vmem:[%s7666_s22 + $0x1a8] sm:$0xff]  ;;  %v2679_v16 = vpack.c.bf16 %v2628_v8, %v2627_v6 }
  0x45   : > { %391 = vst.msk [vmem:[#allocation2 + $0x1a0] sm:$0xff] %vm338_vm1, %v326_v10  ;;  %v328_v14 = vld [vmem:[%s7666_s22 + $0x1b0] sm:$0xff]  ;;  %392 = vst.msk [vmem:[#allocation2 + $0x1a8] sm:$0xff] %vm338_vm1, %v327_v13  ;;  %v329_v17 = vld [vmem:[%s7666_s22 + $0x1b8] sm:$0xff] }
  0x46   : > { %393 = vst.msk [vmem:[#allocation2 + $0x1b0] sm:$0xff] %vm338_vm1, %v328_v14  ;;  %v654_v18 = vld [vmem:[#allocation2 + $0xd1] sm:$0xff]  ;;  %v330_v19 = vld [vmem:[%s7666_s22 + $0x1c0] sm:$0xff]  ;;  %394 = vst.msk [vmem:[#allocation2 + $0x1b8] sm:$0xff] %vm338_vm1, %v329_v17 }
  0x47   : > { %v655_v20 = vld [vmem:[#allocation2 + $0xd9] sm:$0xff]  ;;  %v2629_v21 = vld [vmem:[#allocation2 + $0xe3] sm:$0xff]  ;;  %v2630_v22 = vld [vmem:[#allocation2 + $0xeb] sm:$0xff]  ;;  %395 = vst.msk [vmem:[#allocation2 + $0x1c0] sm:$0xff] %vm338_vm1, %v330_v19 }
  0x48   : > { %v656_v23 = vld [vmem:[#allocation2 + $0xe1] sm:$0xff]  ;;  %v332_v25 = vld [vmem:[%s7666_s22 + $0x1d0] sm:$0xff]  ;;  %v333_v29 = vld [vmem:[%s7666_s22 + $0x1d8] sm:$0xff]  ;;  %v705_v31 = vpack.c.bf16 %v655_v20, %v654_v18  ;;  %v2680_v32 = vpack.c.bf16 %v2630_v22, %v2629_v21 }
  0x49   : > { %v331_v24 = vld [vmem:[%s7666_s22 + $0x1c8] sm:$0xff]  ;;  %v2631_v27 = vld [vmem:[#allocation2 + $0xf3] sm:$0xff]  ;;  %v2632_v28 = vld [vmem:[#allocation2 + $0xfb] sm:$0xff]  ;;  %397 = vst.msk [vmem:[#allocation2 + $0x1d0] sm:$0xff] %vm338_vm1, %v332_v25 }
  0x4a   : > { %v657_v26 = vld [vmem:[#allocation2 + $0xe9] sm:$0xff]  ;;  %396 = vst.msk [vmem:[#allocation2 + $0x1c8] sm:$0xff] %vm338_vm1, %v331_v24  ;;  %v334_v30 = vld [vmem:[%s7666_s22 + $0x1e0] sm:$0xff]  ;;  %398 = vst.msk [vmem:[#allocation2 + $0x1d8] sm:$0xff] %vm338_vm1, %v333_v29  ;;  %v2681_v34 = vpack.c.bf16 %v2632_v28, %v2631_v27 }
  0x4b   : > { %6311 = vmatmul.mubr.msk.bf16.gmra.mrb[16].mxu1 %vm338_vm1, %v701_v51  ;;  %6575 = vmatmul.mubr.msk.bf16.gmra.mrb[16].mxu0 %vm338_vm1, %v2676_v52  ;;  %399 = vst.msk [vmem:[#allocation2 + $0x1e0] sm:$0xff] %vm338_vm1, %v334_v30  ;;  %v706_v33 = vpack.c.bf16 %v657_v26, %v656_v23  ;;  %v335_v35 = vld [vmem:[%s7666_s22 + $0x1e8] sm:$0xff]  ;;  %v336_v36 = vld [vmem:[%s7666_s22 + $0x1f0] sm:$0xff]  ;;  %v659_v38 = vld [vmem:[#allocation2 + $0xf9] sm:$0xff] }
  0x4c   : > { %6314 = vmatprep.mubr.msk.bf16.mxu1 %vm338_vm1, %v702_v55  ;;  %6578 = vmatprep.mubr.msk.bf16.mxu0 %vm338_vm1, %v2677_v56  ;;  %400 = vst.msk [vmem:[#allocation2 + $0x1e8] sm:$0xff] %vm338_vm1, %v335_v35  ;;  %401 = vst.msk [vmem:[#allocation2 + $0x1f0] sm:$0xff] %vm338_vm1, %v336_v36  ;;  %v658_v37 = vld [vmem:[#allocation2 + $0xf1] sm:$0xff]  ;;  %v2633_v39 = vld [vmem:[#allocation2 + $0x103] sm:$0xff] }
  0x4d   : > { %v2634_v40 = vld [vmem:[#allocation2 + $0x10b] sm:$0xff]  ;;  %v337_v41 = vld [vmem:[%s7666_s22 + $0x1f8] sm:$0xff]  ;;  %v403_v42 = vld [vmem:[%s7844_s8] sm:$0xff]  ;;  %v707_v47 = vpack.c.bf16 %v659_v38, %v658_v37  ;;  %s7474_s22 = scalar_lea.vmem %s7473_s21, 16384 }
  0x4e   : > { %v3153_v43 = vld [vmem:[#allocation2 + $0x14] sm:$0xff]  ;;  %v3154_v44 = vld [vmem:[#allocation2 + $0x1c] sm:$0xff]  ;;  %402 = vst.msk [vmem:[#allocation2 + $0x1f8] sm:$0xff] %vm338_vm1, %v337_v41  ;;  %467 = vst.msk [vmem:[#allocation2 + $0x200] sm:$0xff] %vm338_vm1, %v403_v42  ;;  %v2682_v48 = vpack.c.bf16 %v2634_v40, %v2633_v39  ;;  %p7476_p3 = scmp.lt.s32.totalorder %s7474_s22, %s7468_s13 }
  0x4f   : > { %v660_v45 = vld [vmem:[#allocation2 + $0x101] sm:$0xff]  ;;  %v661_v46 = vld [vmem:[#allocation2 + $0x109] sm:$0xff]  ;;  %v3217_v50 = vpack.c.bf16 %v3154_v44, %v3153_v43  ;;  %v662_v51 = vld [vmem:[#allocation2 + $0x111] sm:$0xff] }
  0x50   : > { %v708_v49 = vpack.c.bf16 %v661_v46, %v660_v45  ;;  %v663_v52 = vld [vmem:[#allocation2 + $0x119] sm:$0xff]  ;;  %v3155_v54 = vld [vmem:[#allocation2 + $0x24] sm:$0xff]  ;;  %v3156_v55 = vld [vmem:[#allocation2 + $0x2c] sm:$0xff]  ;;  %p7477_p5 = por %p7476_p3, %p7475_p2 }
  0x51   : > { %v664_v56 = vld [vmem:[#allocation2 + $0x121] sm:$0xff]  ;;  %v665_v57 = vld [vmem:[#allocation2 + $0x129] sm:$0xff]  ;;  %v3157_v58 = vld [vmem:[#allocation2 + $0x34] sm:$0xff]  ;;  %v709_v60 = vpack.c.bf16 %v663_v52, %v662_v51  ;;  %v7862_v61 = vpack.c.bf16 %v3156_v55, %v3155_v54 }
  0x52   : > { %v3158_v59 = vld [vmem:[#allocation2 + $0x3c] sm:$0xff]  ;;  %v710_v62 = vpack.c.bf16 %v665_v57, %v664_v56  ;;  %v666_v1 = vld [vmem:[#allocation2 + $0x131] sm:$0xff]  ;;  %v3159_v4 = vld [vmem:[#allocation2 + $0x44] sm:$0xff]  ;;  %p7478_p6 = pnand %p7477_p5, %p7471_p1 }
  0x53   : > { %6315 = vmatmul.mubr.msk.bf16.gmra.mrb[20].mxu1 %vm338_vm1, %v703_v11  ;;  %6579 = vmatmul.mubr.msk.bf16.gmra.mrb[20].mxu0 %vm338_vm1, %v2678_v12  ;;  %v7866_v0 = vpack.c.bf16 %v3158_v59, %v3157_v58  ;;  %v667_v2 = vld [vmem:[#allocation2 + $0x139] sm:$0xff]  ;;  %v3160_v5 = vld [vmem:[#allocation2 + $0x4c] sm:$0xff]  ;;  %v668_v6 = vld [vmem:[#allocation2 + $0x141] sm:$0xff] }
  0x54   : > { %6318 = vmatprep.mubr.msk.bf16.mxu1 %vm338_vm1, %v704_v15  ;;  %6582 = vmatprep.mubr.msk.bf16.mxu0 %vm338_vm1, %v2679_v16  ;;  %v669_v7 = vld [vmem:[#allocation2 + $0x149] sm:$0xff]  ;;  %v3161_v8 = vld [vmem:[#allocation2 + $0x54] sm:$0xff]  ;;  %v3162_v9 = vld [vmem:[#allocation2 + $0x5c] sm:$0xff]  ;;  %v711_v53 = vpack.c.bf16 %v667_v2, %v666_v1  ;;  %v7874_v10 = vpack.c.bf16 %v3160_v5, %v3159_v4 }
  0x55   : > { %v712_v11 = vpack.c.bf16 %v669_v7, %v668_v6  ;;  %v7876_v12 = vpack.c.bf16 %v3162_v9, %v3161_v8  ;;  %v7881_v13 = vld [vmem:[%s8684_s2 + $0x4] sm:$0x3]  ;;  %v3164_v15 = vld [vmem:[#allocation2 + $0x6c] sm:$0xff]  ;;  %v671_v17 = vld [vmem:[#allocation2 + $0x159] sm:$0xff] }
  0x56   : > { %v3163_v14 = vld [vmem:[#allocation2 + $0x64] sm:$0xff]  ;;  %v670_v16 = vld [vmem:[#allocation2 + $0x151] sm:$0xff]  ;;  %v3166_v21 = vld [vmem:[#allocation2 + $0x7c] sm:$0xff]  ;;  %7402 = vmatprep.subr.msk.bf16.mxu1 %vm822_vm0, %v7881_v13 }
  0x57   : > { %v3165_v18 = vld [vmem:[#allocation2 + $0x74] sm:$0xff]  ;;  %v672_v19 = vld [vmem:[#allocation2 + $0x161] sm:$0xff]  ;;  %v673_v20 = vld [vmem:[#allocation2 + $0x169] sm:$0xff]  ;;  %v713_v22 = vpack.c.bf16 %v671_v17, %v670_v16  ;;  %v7891_v23 = vpack.c.bf16 %v3164_v15, %v3163_v14 }
  0x58   : > { %v714_v24 = vpack.c.bf16 %v673_v20, %v672_v19  ;;  %v7893_v25 = vpack.c.bf16 %v3166_v21, %v3165_v18  ;;  %v3167_v26 = vld [vmem:[#allocation2 + $0x84] sm:$0xff]  ;;  %v3168_v27 = vld [vmem:[#allocation2 + $0x8c] sm:$0xff]  ;;  %v675_v29 = vld [vmem:[#allocation2 + $0x179] sm:$0xff] }
  0x59   : > { %v674_v28 = vld [vmem:[#allocation2 + $0x171] sm:$0xff]  ;;  %v7901_v35 = vpack.c.bf16 %v3168_v27, %v3167_v26  ;;  %v3171_v38 = vld [vmem:[#allocation2 + $0xa4] sm:$0xff]  ;;  %v679_v41 = vld [vmem:[#allocation2 + $0x199] sm:$0xff] }
  0x5a   : > { %v3169_v30 = vld [vmem:[#allocation2 + $0x94] sm:$0xff]  ;;  %v3172_v39 = vld [vmem:[#allocation2 + $0xac] sm:$0xff]  ;;  %v680_v43 = vld [vmem:[#allocation2 + $0x1a1] sm:$0xff] }
  0x5b   : > { %6319 = vmatmul.mubr.msk.bf16.gmra.mrb[24].mxu1 %vm338_vm1, %v705_v31  ;;  %6583 = vmatmul.mubr.msk.bf16.gmra.mrb[24].mxu0 %vm338_vm1, %v2680_v32  ;;  %v676_v31 = vld [vmem:[#allocation2 + $0x181] sm:$0xff]  ;;  %v677_v32 = vld [vmem:[#allocation2 + $0x189] sm:$0xff]  ;;  %v678_v40 = vld [vmem:[#allocation2 + $0x191] sm:$0xff] }
  0x5c   : > { %6322 = vmatprep.mubr.msk.bf16.mxu1 %vm338_vm1, %v706_v33  ;;  %6586 = vmatprep.mubr.msk.bf16.mxu0 %vm338_vm1, %v2681_v34  ;;  %v3170_v33 = vld [vmem:[#allocation2 + $0x9c] sm:$0xff]  ;;  %v715_v34 = vpack.c.bf16 %v675_v29, %v674_v28  ;;  %v716_v36 = vpack.c.bf16 %v677_v32, %v676_v31  ;;  %v3173_v42 = vld [vmem:[#allocation2 + $0xb4] sm:$0xff]  ;;  %v681_v44 = vld [vmem:[#allocation2 + $0x1a9] sm:$0xff]  ;;  %v717_v46 = vpack.c.bf16 %v679_v41, %v678_v40 }
  0x5d   : > { %v7903_v37 = vpack.c.bf16 %v3170_v33, %v3169_v30  ;;  %v3174_v45 = vld [vmem:[#allocation2 + $0xbc] sm:$0xff]  ;;  %v7922_v52 = vld [vmem:[%s8684_s2 + $0xe] sm:$0x3]  ;;  %v3175_v54 = vld [vmem:[#allocation2 + $0xc4] sm:$0xff] }
  0x5e   : > { %v7915_v51 = vpack.c.bf16 %v3174_v45, %v3173_v42  ;;  %v3176_v55 = vld [vmem:[#allocation2 + $0xcc] sm:$0xff]  ;;  %v683_v57 = vld [vmem:[#allocation2 + $0x1b9] sm:$0xff]  ;;  %v684_v59 = vld [vmem:[#allocation2 + $0x1c1] sm:$0xff] }
  0x5f   : > { %v682_v56 = vld [vmem:[#allocation2 + $0x1b1] sm:$0xff]  ;;  %v7932_v1 = vpack.c.bf16 %v3176_v55, %v3175_v54  ;;  %v3179_v5 = vld [vmem:[#allocation2 + $0xe4] sm:$0xff]  ;;  %v687_v8 = vld [vmem:[#allocation2 + $0x1d9] sm:$0xff] }
  0x60   : > { %v3177_v58 = vld [vmem:[#allocation2 + $0xd4] sm:$0xff]  ;;  %v3180_v6 = vld [vmem:[#allocation2 + $0xec] sm:$0xff]  ;;  %v3182_v14 = vld [vmem:[#allocation2 + $0xfc] sm:$0xff] }
  0x61   : > { %v686_v7 = vld [vmem:[#allocation2 + $0x1d1] sm:$0xff]  ;;  %v7942_v16 = vpack.c.bf16 %v3180_v6, %v3179_v5  ;;  %v691_v20 = vld [vmem:[#allocation2 + $0x1f9] sm:$0xff]  ;;  %v3183_v21 = vld [vmem:[#allocation2 + $0x104] sm:$0xff] }
  0x62   : > { %v3181_v9 = vld [vmem:[#allocation2 + $0xf4] sm:$0xff]  ;;  %v721_v15 = vpack.c.bf16 %v687_v8, %v686_v7  ;;  %v532_v26 = vld [vmem:[#allocation2 + $0x8] sm:$0xff]  ;;  %v3186_v28 = vld [vmem:[#allocation2 + $0x11c] sm:$0xff] }
  0x63   : > { %6323 = vmatmul.mubr.msk.bf16.gmra.mrb[28].mxu1 %vm338_vm1, %v707_v47  ;;  %6587 = vmatmul.mubr.msk.bf16.gmra.mrb[28].mxu0 %vm338_vm1, %v2682_v48  ;;  %v7911_v47 = vpack.c.bf16 %v3172_v39, %v3171_v38  ;;  %v404_v48 = vld [vmem:[%s7844_s8 + $0x8] sm:$0xff]  ;;  %v7944_v18 = vpack.c.bf16 %v3182_v14, %v3181_v9  ;;  %v690_v19 = vld [vmem:[#allocation2 + $0x1f1] sm:$0xff]  ;;  %v535_v39 = vld [vmem:[#allocation2 + $0x20] sm:$0xff] }
  0x64   : > { %6326 = vmatprep.mubr.msk.bf16.mxu1 %vm338_vm1, %v708_v49  ;;  %6624 = vmatprep.mubr.msk.bf16.mxu0 %vm338_vm1, %v3217_v50  ;;  %v405_v49 = vld [vmem:[%s7844_s8 + $0x10] sm:$0xff]  ;;  %v718_v50 = vpack.c.bf16 %v681_v44, %v680_v43  ;;  %468 = vst.msk [vmem:[#allocation2 + $0x208] sm:$0xff] %vm338_vm1, %v404_v48  ;;  %v723_v29 = vpack.c.bf16 %v691_v20, %v690_v19  ;;  %v536_v40 = vld [vmem:[#allocation2 + $0x28] sm:$0xff]  ;;  %v3190_v42 = vld [vmem:[#allocation2 + $0x13c] sm:$0xff] }
  0x65   : > { %469 = vst.msk [vmem:[#allocation2 + $0x210] sm:$0xff] %vm338_vm1, %v405_v49  ;;  %v3185_v27 = vld [vmem:[#allocation2 + $0x114] sm:$0xff]  ;;  %v3188_v38 = vld [vmem:[#allocation2 + $0x12c] sm:$0xff]  ;;  %v597_v45 = vpack.c.bf16 %v536_v40, %v535_v39  ;;  %v7971_v49 = vld [vmem:[%s8684_s2 + $0x6] sm:$0x3] }
  0x66   : > { %v7954_v32 = vpack.c.bf16 %v3186_v28, %v3185_v27  ;;  %v533_v33 = vld [vmem:[#allocation2 + $0x10] sm:$0xff]  ;;  %v538_v54 = vld [vmem:[#allocation2 + $0x38] sm:$0xff]  ;;  %v3191_v55 = vld [vmem:[#allocation2 + $0x144] sm:$0xff] }
  0x67   : > { %v3189_v41 = vld [vmem:[#allocation2 + $0x134] sm:$0xff]  ;;  %v3195_v7 = vld [vmem:[#allocation2 + $0x164] sm:$0xff]  ;;  %v3196_v8 = vld [vmem:[#allocation2 + $0x16c] sm:$0xff] }
  0x68   : > { %v7966_v48 = vpack.c.bf16 %v3190_v42, %v3189_v41  ;;  %v541_v5 = vld [vmem:[#allocation2 + $0x50] sm:$0xff]  ;;  %v542_v6 = vld [vmem:[#allocation2 + $0x58] sm:$0xff]  ;;  %v543_v9 = vld [vmem:[#allocation2 + $0x60] sm:$0xff] }
  0x69   : > { %v3198_v14 = vld [vmem:[#allocation2 + $0x17c] sm:$0xff]  ;;  %v548_v28 = vld [vmem:[#allocation2 + $0x88] sm:$0xff]  ;;  %v549_v39 = vld [vmem:[#allocation2 + $0x90] sm:$0xff] }
  0x6a   : > { %v547_v27 = vld [vmem:[#allocation2 + $0x80] sm:$0xff]  ;;  %v550_v40 = vld [vmem:[#allocation2 + $0x98] sm:$0xff]  ;;  %v3204_v42 = vld [vmem:[#allocation2 + $0x1ac] sm:$0xff] }
  0x6b   : > { %6327 = vmatmul.mubr.msk.bf16.gmra.mrb[32].mxu1 %vm338_vm1, %v709_v60  ;;  %6625 = vmatmul.mubr.msk.bf16.vlgmr.msra.gmra.mrb[0].mxu0 %vm338_vm1, %v7862_v61  ;;  %v685_v60 = vld [vmem:[#allocation2 + $0x1c9] sm:$0xff] }
  0x6c   : > { %6689 = vmatpush3.bf16.msra.mxu0 %v3898_v63  ;;  %6330 = vmatprep.mubr.msk.bf16.mxu1 %vm338_vm1, %v710_v62  ;;  %v3178_v62 = vld [vmem:[#allocation2 + $0xdc] sm:$0xff]  ;;  %v719_v63 = vpack.c.bf16 %v683_v57, %v682_v56  ;;  %v720_v2 = vpack.c.bf16 %v685_v60, %v684_v59  ;;  %v3192_v56 = vld [vmem:[#allocation2 + $0x14c] sm:$0xff]  ;;  %v3203_v41 = vld [vmem:[#allocation2 + $0x1a4] sm:$0xff] }
  0x6d   : > { %6628 = vmatprep.mubr.msk.bf16.mxu0 %vm338_vm1, %v7866_v0  ;;  %7408 = vmatprep.subr.msk.bf16.mxu0 %vm822_vm0, %v7922_v52  ;;  %v7934_v4 = vpack.c.bf16 %v3178_v62, %v3177_v58  ;;  %v540_v57 = vld [vmem:[#allocation2 + $0x48] sm:$0xff]  ;;  %v3193_v58 = vld [vmem:[#allocation2 + $0x154] sm:$0xff]  ;;  %v3194_v59 = vld [vmem:[#allocation2 + $0x15c] sm:$0xff]  ;;  %v7981_v62 = vpack.c.bf16 %v3192_v56, %v3191_v55  ;;  %v8011_v55 = vpack.c.bf16 %v3204_v42, %v3203_v41 }
  0x6e   : > { %v562_v41 = vld [vmem:[#allocation2 + $0xf8] sm:$0xff]  ;;  %v3215_v42 = vld [vmem:[#allocation2 + $0x204] sm:$0xff] }
  0x73   : > { %6331 = vmatmul.mubr.msk.bf16.gmra.mrb[36].mxu1 %vm338_vm1, %v711_v53  ;;  %6629 = vmatmul.mubr.msk.bf16.gmra.mrb[4].mxu0 %vm338_vm1, %v7874_v10  ;;  %v688_v53 = vld [vmem:[#allocation2 + $0x1e1] sm:$0xff] }
  0x74   : > { %6334 = vmatprep.mubr.msk.bf16.mxu1 %vm338_vm1, %v712_v11  ;;  %6632 = vmatprep.mubr.msk.bf16.mxu0 %vm338_vm1, %v7876_v12  ;;  %v689_v11 = vld [vmem:[#allocation2 + $0x1e9] sm:$0xff] }
  0x75   : > { %v722_v17 = vpack.c.bf16 %v689_v11, %v688_v53  ;;  %v544_v53 = vld [vmem:[#allocation2 + $0x68] sm:$0xff]  ;;  %v3197_v11 = vld [vmem:[#allocation2 + $0x174] sm:$0xff] }
  0x76   : > { %v601_v19 = vpack.c.bf16 %v544_v53, %v543_v9  ;;  %v7993_v20 = vpack.c.bf16 %v3198_v14, %v3197_v11  ;;  %v557_v14 = vld [vmem:[#allocation2 + $0xd0] sm:$0xff] }
  0x7b   : > { %6335 = vmatmul.mubr.msk.bf16.gmra.mrb[40].mxu1 %vm338_vm1, %v713_v22  ;;  %6633 = vmatmul.mubr.msk.bf16.gmra.mrb[8].mxu0 %vm338_vm1, %v7891_v23  ;;  %v3184_v22 = vld [vmem:[#allocation2 + $0x10c] sm:$0xff] }
  0x7c   : > { %6338 = vmatprep.mubr.msk.bf16.mxu1 %vm338_vm1, %v714_v24  ;;  %6636 = vmatprep.mubr.msk.bf16.mxu0 %vm338_vm1, %v7893_v25  ;;  %v531_v24 = vld [vmem:[#allocation2] sm:$0xff]  ;;  %v7952_v30 = vpack.c.bf16 %v3184_v22, %v3183_v21  ;;  %v545_v21 = vld [vmem:[#allocation2 + $0x70] sm:$0xff]  ;;  %v546_v22 = vld [vmem:[#allocation2 + $0x78] sm:$0xff] }
  0x7d   : > { %v595_v31 = vpack.c.bf16 %v532_v26, %v531_v24  ;;  %v3199_v24 = vld [vmem:[#allocation2 + $0x184] sm:$0xff]  ;;  %v3200_v26 = vld [vmem:[#allocation2 + $0x18c] sm:$0xff] }
  0x83   : > { %6339 = vmatmul.mubr.msk.bf16.gmra.mrb[44].mxu1 %vm338_vm1, %v715_v34  ;;  %6637 = vmatmul.mubr.msk.bf16.gmra.mrb[12].mxu0 %vm338_vm1, %v7901_v35  ;;  %v534_v34 = vld [vmem:[#allocation2 + $0x18] sm:$0xff] }
  0x84   : > { %6342 = vmatprep.mubr.msk.bf16.mxu1 %vm338_vm1, %v716_v36  ;;  %6640 = vmatprep.mubr.msk.bf16.mxu0 %vm338_vm1, %v7903_v37  ;;  %v3187_v36 = vld [vmem:[#allocation2 + $0x124] sm:$0xff]  ;;  %v596_v43 = vpack.c.bf16 %v534_v34, %v533_v33  ;;  %v602_v33 = vpack.c.bf16 %v546_v22, %v545_v21  ;;  %v8001_v34 = vpack.c.bf16 %v3200_v26, %v3199_v24  ;;  %v3212_v21 = vld [vmem:[#allocation2 + $0x1ec] sm:$0xff]  ;;  %v3213_v26 = vld [vmem:[#allocation2 + $0x1f4] sm:$0xff] }
  0x85   : > { %v7962_v44 = vpack.c.bf16 %v3188_v38, %v3187_v36  ;;  %v603_v36 = vpack.c.bf16 %v548_v28, %v547_v27  ;;  %v559_v22 = vld [vmem:[#allocation2 + $0xe0] sm:$0xff]  ;;  %v560_v24 = vld [vmem:[#allocation2 + $0xe8] sm:$0xff] }
  0x86   : > { %v3214_v27 = vld [vmem:[#allocation2 + $0x1fc] sm:$0xff] }
  0x8b   : > { %6343 = vmatmul.mubr.msk.bf16.gmra.mrb[48].mxu1 %vm338_vm1, %v717_v46  ;;  %6641 = vmatmul.mubr.msk.bf16.gmra.mrb[16].mxu0 %vm338_vm1, %v7911_v47  ;;  %v1698_v46 = vsel %vm822_vm0, %v7881_v13, 0  ;;  %v539_v13 = vld [vmem:[#allocation2 + $0x40] sm:$0xff] }
  0x8c   : > { %6346 = vmatprep.mubr.msk.bf16.mxu1 %vm338_vm1, %v718_v50  ;;  %6644 = vmatprep.mubr.msk.bf16.mxu0 %vm338_vm1, %v7915_v51  ;;  %v537_v50 = vld [vmem:[#allocation2 + $0x30] sm:$0xff] }
  0x8d   : > { %v598_v60 = vpack.c.bf16 %v538_v54, %v537_v50  ;;  %v3206_v50 = vld [vmem:[#allocation2 + $0x1bc] sm:$0xff]  ;;  %v604_v54 = vpack.c.bf16 %v550_v40, %v549_v39  ;;  %v561_v40 = vld [vmem:[#allocation2 + $0xf0] sm:$0xff] }
  0x8e   : > { %v407_v39 = vld [vmem:[%s7844_s8 + $0x20] sm:$0xff] }
  0x8f   : > { %471 = vst.msk [vmem:[#allocation2 + $0x220] sm:$0xff] %vm338_vm1, %v407_v39  ;;  %v583_v39 = vld [vmem:[#allocation2 + $0x1a0] sm:$0xff] }
  0x93   : > { %6347 = vmatmul.mubr.msk.bf16.gmra.mrb[52].mxu1 %vm338_vm1, %v719_v63  ;;  %6645 = vmatmul.mubr.msk.bf16.gmra.mrb[20].mxu0 %vm338_vm1, %v7932_v1  ;;  %v599_v63 = vpack.c.bf16 %v540_v57, %v539_v13  ;;  %v553_v57 = vld [vmem:[#allocation2 + $0xb0] sm:$0xff] }
  0x94   : > { %6350 = vmatprep.mubr.msk.bf16.mxu1 %vm338_vm1, %v720_v2  ;;  %6648 = vmatprep.mubr.msk.bf16.mxu0 %vm338_vm1, %v7934_v4  ;;  %v7983_v2 = vpack.c.bf16 %v3194_v59, %v3193_v58  ;;  %v554_v58 = vld [vmem:[#allocation2 + $0xb8] sm:$0xff]  ;;  %v3207_v59 = vld [vmem:[#allocation2 + $0x1c4] sm:$0xff] }
  0x9b   : > { %6351 = vmatmul.mubr.msk.bf16.gmra.mrb[56].mxu1 %vm338_vm1, %v721_v15  ;;  %6649 = vmatmul.mubr.msk.bf16.gmra.mrb[24].mxu0 %vm338_vm1, %v7942_v16  ;;  %v600_v15 = vpack.c.bf16 %v542_v6, %v541_v5  ;;  %v556_v5 = vld [vmem:[#allocation2 + $0xc8] sm:$0xff]  ;;  %v3209_v6 = vld [vmem:[#allocation2 + $0x1d4] sm:$0xff] }
  0x9c   : > { %6354 = vmatprep.mubr.msk.bf16.mxu1 %vm338_vm1, %v722_v17  ;;  %6652 = vmatprep.mubr.msk.bf16.mxu0 %vm338_vm1, %v7944_v18  ;;  %v7991_v17 = vpack.c.bf16 %v3196_v8, %v3195_v7  ;;  %v3210_v7 = vld [vmem:[#allocation2 + $0x1dc] sm:$0xff]  ;;  %v606_v8 = vpack.c.bf16 %v554_v58, %v553_v57  ;;  %v565_v57 = vld [vmem:[#allocation2 + $0x110] sm:$0xff] }
  0x9d   : > { %v8023_v11 = vpack.c.bf16 %v3210_v7, %v3209_v6  ;;  %v566_v58 = vld [vmem:[#allocation2 + $0x118] sm:$0xff]  ;;  %v4448_v6 = vsel %vm822_vm0, %v7922_v52, 0  ;;  %v8058_v7 = vld [vmem:[%s8684_s2 + $0x10] sm:$0x3]  ;;  %v572_v52 = vld [vmem:[#allocation2 + $0x148] sm:$0xff] }
  0xa3   : > { %6355 = vmatmul.mubr.msk.bf16.gmra.mrb[60].mxu1 %vm338_vm1, %v723_v29  ;;  %6653 = vmatmul.mubr.msk.bf16.gmra.mrb[28].mxu0 %vm338_vm1, %v7952_v30  ;;  %v3201_v29 = vld [vmem:[#allocation2 + $0x194] sm:$0xff] }
  0xa4   : > { %6360 = vmatprep.mubr.msk.bf16.mxu1 %vm338_vm1, %v595_v31  ;;  %6656 = vmatprep.mubr.msk.bf16.mxu0 %vm338_vm1, %v7954_v32  ;;  %v3202_v31 = vld [vmem:[#allocation2 + $0x19c] sm:$0xff] }
  0xa5   : > { %v8003_v38 = vpack.c.bf16 %v3202_v31, %v3201_v29  ;;  %v609_v31 = vpack.c.bf16 %v560_v24, %v559_v22 }
  0xab   : > { %6361 = vmatmul.mubr.msk.bf16.vlgmr.msra.gmra.mrb[0].mxu1 %vm338_vm1, %v596_v43  ;;  %6657 = vmatmul.mubr.msk.bf16.gmra.mrb[32].mxu0 %vm338_vm1, %v7962_v44  ;;  %v551_v43 = vld [vmem:[#allocation2 + $0xa0] sm:$0xff] }
  0xac   : > { %6425 = vmatpush3.bf16.msra.mxu1 %v1698_v46  ;;  %6364 = vmatprep.mubr.msk.bf16.mxu1 %vm338_vm1, %v597_v45  ;;  %v552_v45 = vld [vmem:[#allocation2 + $0xa8] sm:$0xff]  ;;  %v3205_v46 = vld [vmem:[#allocation2 + $0x1b4] sm:$0xff] }
  0xad   : > { %6660 = vmatprep.mubr.msk.bf16.mxu0 %vm338_vm1, %v7966_v48  ;;  %7403 = vmatprep.subr.msk.bf16.mxu1 %vm822_vm0, %v7971_v49  ;;  %v605_v56 = vpack.c.bf16 %v552_v45, %v551_v43  ;;  %v8013_v13 = vpack.c.bf16 %v3206_v50, %v3205_v46  ;;  %v3216_v43 = vld [vmem:[#allocation2 + $0x20c] sm:$0xff]  ;;  %v563_v45 = vld [vmem:[#allocation2 + $0x100] sm:$0xff]  ;;  %v610_v50 = vpack.c.bf16 %v562_v41, %v561_v40 }
  0xae   : > { %v564_v46 = vld [vmem:[#allocation2 + $0x108] sm:$0xff] }
  0xb3   : > { %6365 = vmatmul.mubr.msk.bf16.gmra.mrb[4].mxu1 %vm338_vm1, %v598_v60  ;;  %6661 = vmatmul.mubr.msk.bf16.gmra.mrb[36].mxu0 %vm338_vm1, %v7981_v62  ;;  %v3208_v60 = vld [vmem:[#allocation2 + $0x1cc] sm:$0xff] }
  0xb4   : > { %6368 = vmatprep.mubr.msk.bf16.mxu1 %vm338_vm1, %v599_v63  ;;  %6664 = vmatprep.mubr.msk.bf16.mxu0 %vm338_vm1, %v7983_v2  ;;  %v555_v63 = vld [vmem:[#allocation2 + $0xc0] sm:$0xff]  ;;  %v8021_v9 = vpack.c.bf16 %v3208_v60, %v3207_v59  ;;  %v568_v60 = vld [vmem:[#allocation2 + $0x128] sm:$0xff] }
  0xb5   : > { %v607_v53 = vpack.c.bf16 %v556_v5, %v555_v63  ;;  %v567_v59 = vld [vmem:[#allocation2 + $0x120] sm:$0xff]  ;;  %v612_v63 = vpack.c.bf16 %v566_v58, %v565_v57 }
  0xb6   : > { %v613_v5 = vpack.c.bf16 %v568_v60, %v567_v59  ;;  %v594_v59 = vld [vmem:[#allocation2 + $0x1f8] sm:$0xff]  ;;  %v1503_v60 = vld [vmem:[#allocation2 + $0x2] sm:$0xff] }
  0xbb   : > { %6369 = vmatmul.mubr.msk.bf16.gmra.mrb[8].mxu1 %vm338_vm1, %v600_v15  ;;  %6665 = vmatmul.mubr.msk.bf16.gmra.mrb[40].mxu0 %vm338_vm1, %v7991_v17  ;;  %v558_v15 = vld [vmem:[#allocation2 + $0xd8] sm:$0xff] }
  0xbc   : > { %6372 = vmatprep.mubr.msk.bf16.mxu1 %vm338_vm1, %v601_v19  ;;  %6668 = vmatprep.mubr.msk.bf16.mxu0 %vm338_vm1, %v7993_v20  ;;  %v3211_v19 = vld [vmem:[#allocation2 + $0x1e4] sm:$0xff]  ;;  %v608_v28 = vpack.c.bf16 %v558_v15, %v557_v14 }
  0xbd   : > { %v8031_v29 = vpack.c.bf16 %v3212_v21, %v3211_v19  ;;  %v574_v19 = vld [vmem:[#allocation2 + $0x158] sm:$0xff]  ;;  %v576_v21 = vld [vmem:[#allocation2 + $0x168] sm:$0xff] }
  0xc3   : > { %6373 = vmatmul.mubr.msk.bf16.gmra.mrb[12].mxu1 %vm338_vm1, %v602_v33  ;;  %6669 = vmatmul.mubr.msk.bf16.gmra.mrb[44].mxu0 %vm338_vm1, %v8001_v34  ;;  %v8033_v33 = vpack.c.bf16 %v3214_v27, %v3213_v26  ;;  %v578_v26 = vld [vmem:[#allocation2 + $0x178] sm:$0xff]  ;;  %v579_v27 = vld [vmem:[#allocation2 + $0x180] sm:$0xff] }
  0xc4   : > { %6376 = vmatprep.mubr.msk.bf16.mxu1 %vm338_vm1, %v603_v36  ;;  %6672 = vmatprep.mubr.msk.bf16.mxu0 %vm338_vm1, %v8003_v38  ;;  %v406_v36 = vld [vmem:[%s7844_s8 + $0x18] sm:$0xff]  ;;  %s5994_s8 = sshll.u32 %s7538_s18, 13  ;;  %s8636_s18 = scalar_lea.sflag [#allocation4], %s248_s29 }
  0xc5   : > { %470 = vst.msk [vmem:[#allocation2 + $0x218] sm:$0xff] %vm338_vm1, %v406_v36  ;;  %v582_v36 = vld [vmem:[#allocation2 + $0x198] sm:$0xff]  ;;  %s8627_s12 = scalar_lea.hbm %s8686_s4, %s5994_s8 }
  0xcb   : > { %6377 = vmatmul.mubr.msk.bf16.gmra.mrb[16].mxu1 %vm338_vm1, %v604_v54  ;;  %6673 = vmatmul.mubr.msk.bf16.gmra.mrb[48].mxu0 %vm338_vm1, %v8011_v55  ;;  %v8045_v54 = vpack.c.bf16 %v3216_v43, %v3215_v42  ;;  %v586_v42 = vld [vmem:[#allocation2 + $0x1b8] sm:$0xff]  ;;  %v587_v43 = vld [vmem:[#allocation2 + $0x1c0] sm:$0xff] }
  0xcc   : > { %6380 = vmatprep.mubr.msk.bf16.mxu1 %vm338_vm1, %v605_v56  ;;  %6676 = vmatprep.mubr.msk.bf16.mxu0 %vm338_vm1, %v8013_v13  ;;  %v611_v56 = vpack.c.bf16 %v564_v46, %v563_v45 }
  0xd3   : > { %6381 = vmatmul.mubr.msk.bf16.gmra.mrb[20].mxu1 %vm338_vm1, %v606_v8  ;;  %6677 = vmatmul.mubr.msk.bf16.gmra.mrb[52].mxu0 %vm338_vm1, %v8021_v9  ;;  %v570_v8 = vld [vmem:[#allocation2 + $0x138] sm:$0xff] }
  0xd4   : > { %6384 = vmatprep.mubr.msk.bf16.mxu1 %vm338_vm1, %v607_v53  ;;  %6680 = vmatprep.mubr.msk.bf16.mxu0 %vm338_vm1, %v8023_v11  ;;  %v571_v53 = vld [vmem:[#allocation2 + $0x140] sm:$0xff] }
  0xd5   : > { %v615_v15 = vpack.c.bf16 %v572_v52, %v571_v53  ;;  %v2248_v52 = vsel %vm822_vm0, %v7971_v49, 0  ;;  %v7467_v49 = vld [vmem:[%s8684_s2 + $0x8] sm:$0x3] }
  0xdb   : > { %6385 = vmatmul.mubr.msk.bf16.gmra.mrb[24].mxu1 %vm338_vm1, %v608_v28  ;;  %6681 = vmatmul.mubr.msk.bf16.gmra.mrb[56].mxu0 %vm338_vm1, %v8031_v29 }
  0xdc   : > { %6388 = vmatprep.mubr.msk.bf16.mxu1 %vm338_vm1, %v609_v31  ;;  %6684 = vmatprep.mubr.msk.bf16.mxu0 %vm338_vm1, %v8033_v33 }
  0xe3   : > { %6389 = vmatmul.mubr.msk.bf16.gmra.mrb[28].mxu1 %vm338_vm1, %v610_v50  ;;  %6685 = vmatmul.mubr.msk.bf16.gmra.mrb[60].mxu0 %vm338_vm1, %v8045_v54  ;;  %v590_v50 = vld [vmem:[#allocation2 + $0x1d8] sm:$0xff] }
  0xe4   : > { %6392 = vmatprep.mubr.msk.bf16.mxu1 %vm338_vm1, %v611_v56  ;;  %6690 = vmatprep.mubr.msk.bf16.mxu0 %vm338_vm1, %v7862_v61  ;;  %v569_v61 = vld [vmem:[#allocation2 + $0x130] sm:$0xff]  ;;  %v591_v56 = vld [vmem:[#allocation2 + $0x1e0] sm:$0xff] }
  0xe5   : > { %v614_v14 = vpack.c.bf16 %v570_v8, %v569_v61  ;;  %v1507_v61 = vld [vmem:[#allocation2 + $0x22] sm:$0xff] }
  0xeb   : > { %6393 = vmatmul.mubr.msk.bf16.gmra.mrb[32].mxu1 %vm338_vm1, %v612_v63  ;;  %6691 = vmatmul.mubr.msk.bf16.vlgmr.msra.gmra.mrb[0].mxu0 %vm338_vm1, %v7866_v0  ;;  %v573_v0 = vld [vmem:[#allocation2 + $0x150] sm:$0xff] }
  0xec   : > { %6755 = vmatpush3.bf16.msra.mxu0 %v4448_v6  ;;  %6396 = vmatprep.mubr.msk.bf16.mxu1 %vm338_vm1, %v613_v5  ;;  %v616_v22 = vpack.c.bf16 %v574_v19, %v573_v0  ;;  %v1506_v6 = vld [vmem:[#allocation2 + $0x1a] sm:$0xff] }
  0xed   : > { %6694 = vmatprep.mubr.msk.bf16.mxu0 %vm338_vm1, %v7874_v10  ;;  %7409 = vmatprep.subr.msk.bf16.mxu0 %vm822_vm0, %v8058_v7  ;;  %v575_v10 = vld [vmem:[#allocation2 + $0x160] sm:$0xff] }
  0xee   : > { %v617_v24 = vpack.c.bf16 %v576_v21, %v575_v10  ;;  %v1514_v19 = vld [vmem:[#allocation2 + $0x5a] sm:$0xff]  ;;  %v1515_v10 = vld [vmem:[#allocation2 + $0x62] sm:$0xff]  ;;  %v1516_v21 = vld [vmem:[#allocation2 + $0x6a] sm:$0xff] }
  0xf3   : > { %6397 = vmatmul.mubr.msk.bf16.gmra.mrb[36].mxu1 %vm338_vm1, %v614_v14  ;;  %6695 = vmatmul.mubr.msk.bf16.gmra.mrb[4].mxu0 %vm338_vm1, %v7876_v12  ;;  %v577_v12 = vld [vmem:[#allocation2 + $0x170] sm:$0xff]  ;;  %v1511_v14 = vld [vmem:[#allocation2 + $0x42] sm:$0xff] }
  0xf4   : > { %6400 = vmatprep.mubr.msk.bf16.mxu1 %vm338_vm1, %v615_v15  ;;  %6698 = vmatprep.mubr.msk.bf16.mxu0 %vm338_vm1, %v7891_v23  ;;  %v580_v23 = vld [vmem:[#allocation2 + $0x188] sm:$0xff]  ;;  %v618_v28 = vpack.c.bf16 %v578_v26, %v577_v12 }
  0xf5   : > { %v619_v31 = vpack.c.bf16 %v580_v23, %v579_v27  ;;  %v1512_v15 = vld [vmem:[#allocation2 + $0x4a] sm:$0xff]  ;;  %v1519_v12 = vld [vmem:[#allocation2 + $0x82] sm:$0xff] }
  0xf6   : > { %v1520_v26 = vld [vmem:[#allocation2 + $0x8a] sm:$0xff] }
  0xf7   : > { %v8154_v23 = vpack.c.bf16 %v1520_v26, %v1519_v12 }
  0xfb   : > { %6401 = vmatmul.mubr.msk.bf16.gmra.mrb[40].mxu1 %vm338_vm1, %v616_v22  ;;  %6699 = vmatmul.mubr.msk.bf16.gmra.mrb[8].mxu0 %vm338_vm1, %v7893_v25  ;;  %v581_v25 = vld [vmem:[#allocation2 + $0x190] sm:$0xff] }
  0xfc   : > { %6404 = vmatprep.mubr.msk.bf16.mxu1 %vm338_vm1, %v617_v24  ;;  %6702 = vmatprep.mubr.msk.bf16.mxu0 %vm338_vm1, %v7901_v35  ;;  %v584_v35 = vld [vmem:[#allocation2 + $0x1a8] sm:$0xff]  ;;  %v620_v40 = vpack.c.bf16 %v582_v36, %v581_v25  ;;  %v8142_v24 = vpack.c.bf16 %v1516_v21, %v1515_v10 }
  0xfd   : > { %v621_v41 = vpack.c.bf16 %v584_v35, %v583_v39  ;;  %v1527_v39 = vld [vmem:[#allocation2 + $0xc2] sm:$0xff]  ;;  %v1528_v35 = vld [vmem:[#allocation2 + $0xca] sm:$0xff] }
  0xfe   : > { %v1544_v10 = vld [vmem:[#allocation2 + $0x14a] sm:$0xff] }
  0xff   : > { %v4261_v21 = vld [vmem:[#allocation2 + $0x65] sm:$0xff] }
 0x103   : > { %6405 = vmatmul.mubr.msk.bf16.gmra.mrb[44].mxu1 %vm338_vm1, %v618_v28  ;;  %6703 = vmatmul.mubr.msk.bf16.gmra.mrb[12].mxu0 %vm338_vm1, %v7903_v37  ;;  %v585_v37 = vld [vmem:[#allocation2 + $0x1b0] sm:$0xff]  ;;  %v1523_v28 = vld [vmem:[#allocation2 + $0xa2] sm:$0xff] }
 0x104   : > { %6408 = vmatprep.mubr.msk.bf16.mxu1 %vm338_vm1, %v619_v31  ;;  %6706 = vmatprep.mubr.msk.bf16.mxu0 %vm338_vm1, %v7911_v47  ;;  %v588_v47 = vld [vmem:[#allocation2 + $0x1c8] sm:$0xff]  ;;  %v622_v45 = vpack.c.bf16 %v586_v42, %v585_v37 }
 0x105   : > { %v623_v46 = vpack.c.bf16 %v588_v47, %v587_v43  ;;  %v1524_v31 = vld [vmem:[#allocation2 + $0xaa] sm:$0xff]  ;;  %v1531_v37 = vld [vmem:[#allocation2 + $0xe2] sm:$0xff] }
 0x106   : > { %v8166_v36 = vpack.c.bf16 %v1524_v31, %v1523_v28  ;;  %v1532_v42 = vld [vmem:[#allocation2 + $0xea] sm:$0xff]  ;;  %v4263_v28 = vld [vmem:[#allocation2 + $0x75] sm:$0xff]  ;;  %v4264_v31 = vld [vmem:[#allocation2 + $0x7d] sm:$0xff] }
 0x107   : > { %v8190_v47 = vpack.c.bf16 %v1532_v42, %v1531_v37 }
 0x10b   : > { %6409 = vmatmul.mubr.msk.bf16.gmra.mrb[48].mxu1 %vm338_vm1, %v620_v40  ;;  %6707 = vmatmul.mubr.msk.bf16.gmra.mrb[16].mxu0 %vm338_vm1, %v7915_v51  ;;  %v589_v51 = vld [vmem:[#allocation2 + $0x1d0] sm:$0xff] }
 0x10c   : > { %6412 = vmatprep.mubr.msk.bf16.mxu1 %vm338_vm1, %v621_v41  ;;  %6710 = vmatprep.mubr.msk.bf16.mxu0 %vm338_vm1, %v7932_v1  ;;  %v592_v1 = vld [vmem:[#allocation2 + $0x1e8] sm:$0xff]  ;;  %v624_v57 = vpack.c.bf16 %v590_v50, %v589_v51  ;;  %v8178_v41 = vpack.c.bf16 %v1528_v35, %v1527_v39 }
 0x10d   : > { %v625_v58 = vpack.c.bf16 %v592_v1, %v591_v56  ;;  %v1535_v51 = vld [vmem:[#allocation2 + $0x102] sm:$0xff]  ;;  %v1536_v50 = vld [vmem:[#allocation2 + $0x10a] sm:$0xff] }
 0x10e   : > { %v4253_v56 = vld [vmem:[#allocation2 + $0x25] sm:$0xff]  ;;  %v4254_v1 = vld [vmem:[#allocation2 + $0x2d] sm:$0xff] }
 0x10f   : > { %v4265_v39 = vld [vmem:[#allocation2 + $0x85] sm:$0xff]  ;;  %v4266_v35 = vld [vmem:[#allocation2 + $0x8d] sm:$0xff] }
 0x110   : > { %v4323_v42 = vpack.c.bf16 %v4266_v35, %v4265_v39  ;;  %v1562_v39 = vld [vmem:[#allocation2 + $0x1da] sm:$0xff] }
 0x111   : > { %v4279_v35 = vld [vmem:[#allocation2 + $0xf5] sm:$0xff] }
 0x113   : > { %6413 = vmatmul.mubr.msk.bf16.gmra.mrb[52].mxu1 %vm338_vm1, %v622_v45  ;;  %6711 = vmatmul.mubr.msk.bf16.gmra.mrb[20].mxu0 %vm338_vm1, %v7934_v4  ;;  %v593_v4 = vld [vmem:[#allocation2 + $0x1f0] sm:$0xff]  ;;  %v1534_v45 = vld [vmem:[#allocation2 + $0xfa] sm:$0xff] }
 0x114   : > { %6416 = vmatprep.mubr.msk.bf16.mxu1 %vm338_vm1, %v623_v46  ;;  %6714 = vmatprep.mubr.msk.bf16.mxu0 %vm338_vm1, %v7942_v16  ;;  %v1504_v16 = vld [vmem:[#allocation2 + $0xa] sm:$0xff]  ;;  %v626_v63 = vpack.c.bf16 %v594_v59, %v593_v4  ;;  %v3766_v46 = vld [vmem:[#allocation2 + $0x21c] sm:$0xff]  ;;  %v8202_v4 = vpack.c.bf16 %v1536_v50, %v1535_v51  ;;  %v1537_v59 = vld [vmem:[#allocation2 + $0x112] sm:$0xff] }
 0x115   : > { %v1567_v5 = vpack.c.bf16 %v1504_v16, %v1503_v60  ;;  %v4255_v60 = vld [vmem:[#allocation2 + $0x35] sm:$0xff]  ;;  %v4256_v16 = vld [vmem:[#allocation2 + $0x3d] sm:$0xff]  ;;  %v1552_v50 = vld [vmem:[#allocation2 + $0x18a] sm:$0xff] }
 0x116   : > { %v1551_v51 = vld [vmem:[#allocation2 + $0x182] sm:$0xff] }
 0x11b   : > { %6417 = vmatmul.mubr.msk.bf16.gmra.mrb[56].mxu1 %vm338_vm1, %v624_v57  ;;  %6715 = vmatmul.mubr.msk.bf16.gmra.mrb[24].mxu0 %vm338_vm1, %v7944_v18  ;;  %v1505_v18 = vld [vmem:[#allocation2 + $0x12] sm:$0xff] }
 0x11c   : > { %6420 = vmatprep.mubr.msk.bf16.mxu1 %vm338_vm1, %v625_v58  ;;  %6718 = vmatprep.mubr.msk.bf16.mxu0 %vm338_vm1, %v7952_v30  ;;  %v1508_v30 = vld [vmem:[#allocation2 + $0x2a] sm:$0xff]  ;;  %v8110_v8 = vpack.c.bf16 %v1506_v6, %v1505_v18 }
 0x11d   : > { %v8112_v53 = vpack.c.bf16 %v1508_v30, %v1507_v61  ;;  %v4257_v18 = vld [vmem:[#allocation2 + $0x45] sm:$0xff]  ;;  %v4258_v6 = vld [vmem:[#allocation2 + $0x4d] sm:$0xff]  ;;  %v4318_v30 = vpack.c.bf16 %v4256_v16, %v4255_v60  ;;  %v1554_v16 = vld [vmem:[#allocation2 + $0x19a] sm:$0xff] }
 0x11e   : > { %v1553_v60 = vld [vmem:[#allocation2 + $0x192] sm:$0xff] }
 0x123   : > { %6421 = vmatmul.mubr.msk.bf16.gmra.mrb[60].mxu1 %vm338_vm1, %v626_v63  ;;  %6719 = vmatmul.mubr.msk.bf16.gmra.mrb[28].mxu0 %vm338_vm1, %v7954_v32  ;;  %v1509_v32 = vld [vmem:[#allocation2 + $0x32] sm:$0xff]  ;;  %v1539_v63 = vld [vmem:[#allocation2 + $0x122] sm:$0xff] }
 0x124   : > { %6426 = vmatprep.mubr.msk.bf16.mxu1 %vm338_vm1, %v1567_v5  ;;  %6722 = vmatprep.mubr.msk.bf16.mxu0 %vm338_vm1, %v7962_v44  ;;  %v1510_v44 = vld [vmem:[#allocation2 + $0x3a] sm:$0xff]  ;;  %v1540_v5 = vld [vmem:[#allocation2 + $0x12a] sm:$0xff] }
 0x125   : > { %v8128_v0 = vpack.c.bf16 %v1510_v44, %v1509_v32  ;;  %v4998_v32 = vsel %vm822_vm0, %v8058_v7, 0  ;;  %v4319_v44 = vpack.c.bf16 %v4258_v6, %v4257_v18  ;;  %v4262_v7 = vld [vmem:[#allocation2 + $0x6d] sm:$0xff]  ;;  %v1555_v18 = vld [vmem:[#allocation2 + $0x1a2] sm:$0xff] }
 0x126   : > { %v4321_v26 = vpack.c.bf16 %v4262_v7, %v4261_v21  ;;  %v1556_v6 = vld [vmem:[#allocation2 + $0x1aa] sm:$0xff]  ;;  %v4276_v21 = vld [vmem:[#allocation2 + $0xdd] sm:$0xff] }
 0x127   : > { %v1559_v7 = vld [vmem:[#allocation2 + $0x1c2] sm:$0xff] }
 0x12b   : > { %6427 = vmatmul.mubr.msk.bf16.vlgmr.msra.gmra.mrb[0].mxu1 %vm338_vm1, %v8110_v8  ;;  %6723 = vmatmul.mubr.msk.bf16.gmra.mrb[32].mxu0 %vm338_vm1, %v7966_v48  ;;  %v8130_v48 = vpack.c.bf16 %v1512_v15, %v1511_v14  ;;  %v1541_v14 = vld [vmem:[#allocation2 + $0x132] sm:$0xff]  ;;  %v1542_v15 = vld [vmem:[#allocation2 + $0x13a] sm:$0xff] }
 0x12c   : > { %6491 = vmatpush3.bf16.msra.mxu1 %v2248_v52  ;;  %6430 = vmatprep.mubr.msk.bf16.mxu1 %vm338_vm1, %v8112_v53  ;;  %v8212_v52 = vpack.c.bf16 %v1540_v5, %v1539_v63  ;;  %v4271_v63 = vld [vmem:[#allocation2 + $0xb5] sm:$0xff]  ;;  %v4272_v5 = vld [vmem:[#allocation2 + $0xbd] sm:$0xff] }
 0x12d   : > { %6726 = vmatprep.mubr.msk.bf16.mxu0 %vm338_vm1, %v7981_v62  ;;  %7405 = vmatprep.subr.msk.bf16.mxu1 %vm822_vm0, %v7467_v49  ;;  %v1513_v62 = vld [vmem:[#allocation2 + $0x52] sm:$0xff] }
 0x12e   : > { %v8140_v22 = vpack.c.bf16 %v1514_v19, %v1513_v62  ;;  %v4259_v49 = vld [vmem:[#allocation2 + $0x55] sm:$0xff]  ;;  %v4260_v62 = vld [vmem:[#allocation2 + $0x5d] sm:$0xff] }
 0x12f   : > { %v1543_v19 = vld [vmem:[#allocation2 + $0x142] sm:$0xff] }
 0x130   : > { %v8224_v12 = vpack.c.bf16 %v1544_v10, %v1543_v19  ;;  %v1558_v19 = vld [vmem:[#allocation2 + $0x1ba] sm:$0xff] }
 0x131   : > { %v4275_v10 = vld [vmem:[#allocation2 + $0xd5] sm:$0xff] }
 0x133   : > { %6431 = vmatmul.mubr.msk.bf16.gmra.mrb[4].mxu1 %vm338_vm1, %v8128_v0  ;;  %6727 = vmatmul.mubr.msk.bf16.gmra.mrb[36].mxu0 %vm338_vm1, %v7983_v2  ;;  %v1517_v2 = vld [vmem:[#allocation2 + $0x72] sm:$0xff] }
 0x134   : > { %6434 = vmatprep.mubr.msk.bf16.mxu1 %vm338_vm1, %v8130_v48  ;;  %6730 = vmatprep.mubr.msk.bf16.mxu0 %vm338_vm1, %v7991_v17  ;;  %v1518_v17 = vld [vmem:[#allocation2 + $0x7a] sm:$0xff] }
 0x135   : > { %v8152_v27 = vpack.c.bf16 %v1518_v17, %v1517_v2  ;;  %v8222_v2 = vpack.c.bf16 %v1542_v15, %v1541_v14  ;;  %v4320_v17 = vpack.c.bf16 %v4260_v62, %v4259_v49  ;;  %v4326_v14 = vpack.c.bf16 %v4272_v5, %v4271_v63  ;;  %v1557_v62 = vld [vmem:[#allocation2 + $0x1b2] sm:$0xff] }
 0x136   : > { %v8254_v15 = vpack.c.bf16 %v1556_v6, %v1555_v18  ;;  %v4286_v63 = vld [vmem:[#allocation2 + $0x12d] sm:$0xff] }
 0x13b   : > { %6435 = vmatmul.mubr.msk.bf16.gmra.mrb[8].mxu1 %vm338_vm1, %v8140_v22  ;;  %6731 = vmatmul.mubr.msk.bf16.gmra.mrb[40].mxu0 %vm338_vm1, %v7993_v20  ;;  %v1521_v20 = vld [vmem:[#allocation2 + $0x92] sm:$0xff] }
 0x13c   : > { %6438 = vmatprep.mubr.msk.bf16.mxu1 %vm338_vm1, %v8142_v24  ;;  %6734 = vmatprep.mubr.msk.bf16.mxu0 %vm338_vm1, %v8001_v34  ;;  %v1522_v34 = vld [vmem:[#allocation2 + $0x9a] sm:$0xff] }
 0x13d   : > { %v8164_v25 = vpack.c.bf16 %v1522_v34, %v1521_v20  ;;  %v1545_v20 = vld [vmem:[#allocation2 + $0x152] sm:$0xff]  ;;  %v1546_v34 = vld [vmem:[#allocation2 + $0x15a] sm:$0xff] }
 0x143   : > { %6439 = vmatmul.mubr.msk.bf16.gmra.mrb[12].mxu1 %vm338_vm1, %v8152_v27  ;;  %6735 = vmatmul.mubr.msk.bf16.gmra.mrb[44].mxu0 %vm338_vm1, %v8003_v38  ;;  %v1525_v38 = vld [vmem:[#allocation2 + $0xb2] sm:$0xff] }
 0x144   : > { %6442 = vmatprep.mubr.msk.bf16.mxu1 %vm338_vm1, %v8154_v23  ;;  %6738 = vmatprep.mubr.msk.bf16.mxu0 %vm338_vm1, %v8011_v55  ;;  %v1526_v55 = vld [vmem:[#allocation2 + $0xba] sm:$0xff] }
 0x145   : > { %v8176_v40 = vpack.c.bf16 %v1526_v55, %v1525_v38  ;;  %v1547_v38 = vld [vmem:[#allocation2 + $0x162] sm:$0xff]  ;;  %v1548_v55 = vld [vmem:[#allocation2 + $0x16a] sm:$0xff] }
 0x146   : > { %v8234_v37 = vpack.c.bf16 %v1548_v55, %v1547_v38  ;;  %v1561_v55 = vld [vmem:[#allocation2 + $0x1d2] sm:$0xff] }
 0x14b   : > { %6443 = vmatmul.mubr.msk.bf16.gmra.mrb[16].mxu1 %vm338_vm1, %v8164_v25  ;;  %6739 = vmatmul.mubr.msk.bf16.gmra.mrb[48].mxu0 %vm338_vm1, %v8013_v13  ;;  %v1529_v13 = vld [vmem:[#allocation2 + $0xd2] sm:$0xff] }
 0x14c   : > { %6446 = vmatprep.mubr.msk.bf16.mxu1 %vm338_vm1, %v8166_v36  ;;  %6742 = vmatprep.mubr.msk.bf16.mxu0 %vm338_vm1, %v8021_v9  ;;  %v1530_v9 = vld [vmem:[#allocation2 + $0xda] sm:$0xff] }
 0x14d   : > { %v8188_v43 = vpack.c.bf16 %v1530_v9, %v1529_v13  ;;  %v8232_v13 = vpack.c.bf16 %v1546_v34, %v1545_v20  ;;  %v4322_v9 = vpack.c.bf16 %v4264_v31, %v4263_v28  ;;  %v4278_v20 = vld [vmem:[#allocation2 + $0xed] sm:$0xff]  ;;  %v8262_v34 = vpack.c.bf16 %v1558_v19, %v1557_v62 }
 0x14e   : > { %v4328_v28 = vpack.c.bf16 %v4276_v21, %v4275_v10  ;;  %v4291_v10 = vld [vmem:[#allocation2 + $0x155] sm:$0xff]  ;;  %v4293_v21 = vld [vmem:[#allocation2 + $0x165] sm:$0xff] }
 0x153   : > { %6447 = vmatmul.mubr.msk.bf16.gmra.mrb[20].mxu1 %vm338_vm1, %v8176_v40  ;;  %6743 = vmatmul.mubr.msk.bf16.gmra.mrb[52].mxu0 %vm338_vm1, %v8023_v11  ;;  %v1533_v11 = vld [vmem:[#allocation2 + $0xf2] sm:$0xff] }
 0x154   : > { %6450 = vmatprep.mubr.msk.bf16.mxu1 %vm338_vm1, %v8178_v41  ;;  %6746 = vmatprep.mubr.msk.bf16.mxu0 %vm338_vm1, %v8031_v29  ;;  %v3765_v29 = vld [vmem:[#allocation2 + $0x214] sm:$0xff]  ;;  %v8200_v57 = vpack.c.bf16 %v1534_v45, %v1533_v11 }
 0x155   : > { %v3798_v58 = vpack.c.bf16 %v3766_v46, %v3765_v29  ;;  %v1549_v11 = vld [vmem:[#allocation2 + $0x172] sm:$0xff]  ;;  %v1550_v45 = vld [vmem:[#allocation2 + $0x17a] sm:$0xff] }
 0x156   : > { %v4267_v29 = vld [vmem:[#allocation2 + $0x95] sm:$0xff]  ;;  %v4268_v46 = vld [vmem:[#allocation2 + $0x9d] sm:$0xff] }
 0x15b   : > { %6451 = vmatmul.mubr.msk.bf16.gmra.mrb[24].mxu1 %vm338_vm1, %v8188_v43  ;;  %6747 = vmatmul.mubr.msk.bf16.gmra.mrb[56].mxu0 %vm338_vm1, %v8033_v33  ;;  %v4317_v33 = vpack.c.bf16 %v4254_v1, %v4253_v56  ;;  %v4269_v56 = vld [vmem:[#allocation2 + $0xa5] sm:$0xff]  ;;  %v4270_v1 = vld [vmem:[#allocation2 + $0xad] sm:$0xff] }
 0x15c   : > { %6454 = vmatprep.mubr.msk.bf16.mxu1 %vm338_vm1, %v8190_v47  ;;  %6750 = vmatprep.mubr.msk.bf16.mxu0 %vm338_vm1, %v8045_v54  ;;  %v1538_v54 = vld [vmem:[#allocation2 + $0x11a] sm:$0xff] }
 0x15d   : > { %v8210_v61 = vpack.c.bf16 %v1538_v54, %v1537_v59  ;;  %v8244_v59 = vpack.c.bf16 %v1552_v50, %v1551_v51  ;;  %v4325_v54 = vpack.c.bf16 %v4270_v1, %v4269_v56  ;;  %v1565_v1 = vld [vmem:[#allocation2 + $0x1f2] sm:$0xff] }
 0x163   : > { %6455 = vmatmul.mubr.msk.bf16.gmra.mrb[28].mxu1 %vm338_vm1, %v8200_v57  ;;  %6751 = vmatmul.mubr.msk.bf16.gmra.mrb[60].mxu0 %vm338_vm1, %v3798_v58  ;;  %v8242_v58 = vpack.c.bf16 %v1550_v45, %v1549_v11  ;;  %v1564_v11 = vld [vmem:[#allocation2 + $0x1ea] sm:$0xff] }
 0x164   : > { %6458 = vmatprep.mubr.msk.bf16.mxu1 %vm338_vm1, %v8202_v4  ;;  %6756 = vmatprep.mubr.msk.bf16.mxu0 %vm338_vm1, %v4317_v33  ;;  %v4324_v33 = vpack.c.bf16 %v4268_v46, %v4267_v29  ;;  %v4281_v45 = vld [vmem:[#allocation2 + $0x105] sm:$0xff]  ;;  %v4282_v29 = vld [vmem:[#allocation2 + $0x10d] sm:$0xff]  ;;  %v8272_v46 = vpack.c.bf16 %v1562_v39, %v1561_v55 }
 0x165   : > { %v4331_v56 = vpack.c.bf16 %v4282_v29, %v4281_v45  ;;  %v4301_v55 = vld [vmem:[#allocation2 + $0x1a5] sm:$0xff]  ;;  %v4302_v39 = vld [vmem:[#allocation2 + $0x1ad] sm:$0xff] }
 0x16b   : > { %6459 = vmatmul.mubr.msk.bf16.gmra.mrb[32].mxu1 %vm338_vm1, %v8210_v61  ;;  %6757 = vmatmul.mubr.msk.bf16.vlgmr.msra.gmra.mrb[0].mxu0 %vm338_vm1, %v4318_v30  ;;  %v4273_v30 = vld [vmem:[#allocation2 + $0xc5] sm:$0xff] }
 0x16c   : > { %6821 = vmatpush3.bf16.msra.mxu0 %v4998_v32  ;;  %6462 = vmatprep.mubr.msk.bf16.mxu1 %vm338_vm1, %v8212_v52  ;;  %v4274_v32 = vld [vmem:[#allocation2 + $0xcd] sm:$0xff] }
 0x16d   : > { %6760 = vmatprep.mubr.msk.bf16.mxu0 %vm338_vm1, %v4319_v44  ;;  %v8252_v44 = vpack.c.bf16 %v1554_v16, %v1553_v60  ;;  %v4327_v49 = vpack.c.bf16 %v4274_v32, %v4273_v30  ;;  %v4284_v60 = vld [vmem:[#allocation2 + $0x11d] sm:$0xff]  ;;  %v4285_v16 = vld [vmem:[#allocation2 + $0x125] sm:$0xff]  ;;  %v4287_v30 = vld [vmem:[#allocation2 + $0x135] sm:$0xff] }
 0x16e   : > { %v4333_v6 = vpack.c.bf16 %v4286_v63, %v4285_v16  ;;  %v4288_v32 = vld [vmem:[#allocation2 + $0x13d] sm:$0xff] }
 0x16f   : > { %v4334_v62 = vpack.c.bf16 %v4288_v32, %v4287_v30 }
 0x173   : > { %6463 = vmatmul.mubr.msk.bf16.gmra.mrb[36].mxu1 %vm338_vm1, %v8222_v2  ;;  %6761 = vmatmul.mubr.msk.bf16.gmra.mrb[4].mxu0 %vm338_vm1, %v4320_v17  ;;  %v1560_v17 = vld [vmem:[#allocation2 + $0x1ca] sm:$0xff] }
 0x174   : > { %6466 = vmatprep.mubr.msk.bf16.mxu1 %vm338_vm1, %v8224_v12  ;;  %6764 = vmatprep.mubr.msk.bf16.mxu0 %vm338_vm1, %v4321_v26  ;;  %v4277_v26 = vld [vmem:[#allocation2 + $0xe5] sm:$0xff]  ;;  %v8264_v31 = vpack.c.bf16 %v1560_v17, %v1559_v7  ;;  %v4294_v7 = vld [vmem:[#allocation2 + $0x16d] sm:$0xff] }
 0x175   : > { %v4329_v38 = vpack.c.bf16 %v4278_v20, %v4277_v26  ;;  %v4337_v26 = vpack.c.bf16 %v4294_v7, %v4293_v21  ;;  %v4298_v20 = vld [vmem:[#allocation2 + $0x18d] sm:$0xff] }
 0x17b   : > { %6467 = vmatmul.mubr.msk.bf16.gmra.mrb[40].mxu1 %vm338_vm1, %v8232_v13  ;;  %6765 = vmatmul.mubr.msk.bf16.gmra.mrb[8].mxu0 %vm338_vm1, %v4322_v9  ;;  %v4280_v9 = vld [vmem:[#allocation2 + $0xfd] sm:$0xff] }
 0x17c   : > { %6470 = vmatprep.mubr.msk.bf16.mxu1 %vm338_vm1, %v8234_v37  ;;  %6768 = vmatprep.mubr.msk.bf16.mxu0 %vm338_vm1, %v4323_v42  ;;  %v1563_v42 = vld [vmem:[#allocation2 + $0x1e2] sm:$0xff]  ;;  %v4330_v51 = vpack.c.bf16 %v4280_v9, %v4279_v35  ;;  %v4341_v9 = vpack.c.bf16 %v4302_v39, %v4301_v55 }
 0x17d   : > { %v8274_v50 = vpack.c.bf16 %v1564_v11, %v1563_v42  ;;  %v4305_v42 = vld [vmem:[#allocation2 + $0x1c5] sm:$0xff]  ;;  %v4306_v11 = vld [vmem:[#allocation2 + $0x1cd] sm:$0xff] }
 0x17e   : > { %v4343_v29 = vpack.c.bf16 %v4306_v11, %v4305_v42  ;;  %v4831_v42 = vld [vmem:[#allocation2 + $0x106] sm:$0xff]  ;;  %v4832_v11 = vld [vmem:[#allocation2 + $0x10e] sm:$0xff] }
 0x183   : > { %6471 = vmatmul.mubr.msk.bf16.gmra.mrb[44].mxu1 %vm338_vm1, %v8242_v58  ;;  %6769 = vmatmul.mubr.msk.bf16.gmra.mrb[12].mxu0 %vm338_vm1, %v4324_v33  ;;  %v1566_v33 = vld [vmem:[#allocation2 + $0x1fa] sm:$0xff] }
 0x184   : > { %6474 = vmatprep.mubr.msk.bf16.mxu1 %vm338_vm1, %v8244_v59  ;;  %6772 = vmatprep.mubr.msk.bf16.mxu0 %vm338_vm1, %v4325_v54  ;;  %v4283_v54 = vld [vmem:[#allocation2 + $0x115] sm:$0xff]  ;;  %v8282_v5 = vpack.c.bf16 %v1566_v33, %v1565_v1 }
 0x185   : > { %v4332_v18 = vpack.c.bf16 %v4284_v60, %v4283_v54  ;;  %v4313_v54 = vld [vmem:[#allocation2 + $0x205] sm:$0xff]  ;;  %v4314_v60 = vld [vmem:[#allocation2 + $0x20d] sm:$0xff] }
 0x186   : > { %v4347_v63 = vpack.c.bf16 %v4314_v60, %v4313_v54 }
 0x18b   : > { %6475 = vmatmul.mubr.msk.bf16.gmra.mrb[48].mxu1 %vm338_vm1, %v8252_v44  ;;  %6773 = vmatmul.mubr.msk.bf16.gmra.mrb[16].mxu0 %vm338_vm1, %v4326_v14  ;;  %v4289_v14 = vld [vmem:[#allocation2 + $0x145] sm:$0xff] }
 0x18c   : > { %6478 = vmatprep.mubr.msk.bf16.mxu1 %vm338_vm1, %v8254_v15  ;;  %6776 = vmatprep.mubr.msk.bf16.mxu0 %vm338_vm1, %v4327_v49  ;;  %v4290_v49 = vld [vmem:[#allocation2 + $0x14d] sm:$0xff] }
 0x18d   : > { %v4335_v19 = vpack.c.bf16 %v4290_v49, %v4289_v14  ;;  %v4807_v14 = vld [vmem:[#allocation2 + $0x46] sm:$0xff]  ;;  %v4808_v49 = vld [vmem:[#allocation2 + $0x4e] sm:$0xff] }
 0x193   : > { %6479 = vmatmul.mubr.msk.bf16.gmra.mrb[52].mxu1 %vm338_vm1, %v8262_v34  ;;  %6777 = vmatmul.mubr.msk.bf16.gmra.mrb[20].mxu0 %vm338_vm1, %v4328_v28 }
 0x194   : > { %6482 = vmatprep.mubr.msk.bf16.mxu1 %vm338_vm1, %v8264_v31  ;;  %6780 = vmatprep.mubr.msk.bf16.mxu0 %vm338_vm1, %v4329_v38 }
 0x19b   : > { %6483 = vmatmul.mubr.msk.bf16.gmra.mrb[56].mxu1 %vm338_vm1, %v8272_v46  ;;  %6781 = vmatmul.mubr.msk.bf16.gmra.mrb[24].mxu0 %vm338_vm1, %v4330_v51  ;;  %v4309_v51 = vld [vmem:[#allocation2 + $0x1e5] sm:$0xff] }
 0x19c   : > { %6486 = vmatprep.mubr.msk.bf16.mxu1 %vm338_vm1, %v8274_v50  ;;  %6784 = vmatprep.mubr.msk.bf16.mxu0 %vm338_vm1, %v4331_v56  ;;  %v4310_v56 = vld [vmem:[#allocation2 + $0x1ed] sm:$0xff] }
 0x19d   : > { %v4345_v33 = vpack.c.bf16 %v4310_v56, %v4309_v51  ;;  %v2635_v51 = vld [vmem:[#allocation2 + $0x113] sm:$0xff]  ;;  %v2636_v56 = vld [vmem:[#allocation2 + $0x11b] sm:$0xff] }
 0x19e   : > { %v2683_v54 = vpack.c.bf16 %v2636_v56, %v2635_v51 }
 0x1a3   : > { %6487 = vmatmul.mubr.msk.bf16.gmra.mrb[60].mxu1 %vm338_vm1, %v8282_v5  ;;  %6785 = vmatmul.mubr.msk.bf16.gmra.mrb[28].mxu0 %vm338_vm1, %v4332_v18  ;;  %v4803_v18 = vld [vmem:[#allocation2 + $0x26] sm:$0xff] }
 0x1a4   : > { %6492 = vmatprep.mubr.msk.bf16.mxu1 %vm338_vm1, %v8110_v8  ;;  %6788 = vmatprep.mubr.msk.bf16.mxu0 %vm338_vm1, %v4333_v6  ;;  %v4292_v8 = vld [vmem:[#allocation2 + $0x15d] sm:$0xff]  ;;  %v4804_v6 = vld [vmem:[#allocation2 + $0x2e] sm:$0xff] }
 0x1a5   : > { %v4336_v17 = vpack.c.bf16 %v4292_v8, %v4291_v10  ;;  %v4867_v32 = vpack.c.bf16 %v4804_v6, %v4803_v18  ;;  %v4811_v10 = vld [vmem:[#allocation2 + $0x66] sm:$0xff]  ;;  %v4812_v8 = vld [vmem:[#allocation2 + $0x6e] sm:$0xff] }
 0x1a6   : > { %v4871_v7 = vpack.c.bf16 %v4812_v8, %v4811_v10  ;;  %v4839_v18 = vld [vmem:[#allocation2 + $0x146] sm:$0xff]  ;;  %v4840_v6 = vld [vmem:[#allocation2 + $0x14e] sm:$0xff] }
 0x1a7   : > { %v4843_v10 = vld [vmem:[#allocation2 + $0x166] sm:$0xff]  ;;  %v4844_v8 = vld [vmem:[#allocation2 + $0x16e] sm:$0xff] }
 0x1ab   : > { %6493 = vmatmul.mubr.msk.bf16.vlgmr.msra.gmra.mrb[0].mxu1 %vm338_vm1, %v8112_v53  ;;  %6789 = vmatmul.mubr.msk.bf16.gmra.mrb[32].mxu0 %vm338_vm1, %v4334_v62  ;;  %v4296_v53 = vld [vmem:[#allocation2 + $0x17d] sm:$0xff] }
 0x1ac   : > { %6887 = vmatpush3.bf16.msra.mxu1 %v7644_v3  ;;  %6496 = vmatprep.mubr.msk.bf16.mxu1 %vm338_vm1, %v8128_v0  ;;  %v4295_v3 = vld [vmem:[#allocation2 + $0x175] sm:$0xff]  ;;  %v4297_v0 = vld [vmem:[#allocation2 + $0x185] sm:$0xff] }
 0x1ad   : > { %6792 = vmatprep.mubr.msk.bf16.mxu0 %vm338_vm1, %v4335_v19  ;;  %v4338_v28 = vpack.c.bf16 %v4296_v53, %v4295_v3  ;;  %v4339_v38 = vpack.c.bf16 %v4298_v20, %v4297_v0  ;;  %v4869_v19 = vpack.c.bf16 %v4808_v49, %v4807_v14  ;;  %v4819_v0 = vld [vmem:[#allocation2 + $0xa6] sm:$0xff]  ;;  %v4820_v20 = vld [vmem:[#allocation2 + $0xae] sm:$0xff] }
 0x1ae   : > { %v2641_v14 = vld [vmem:[#allocation2 + $0x143] sm:$0xff]  ;;  %v2642_v49 = vld [vmem:[#allocation2 + $0x14b] sm:$0xff] }
 0x1b3   : > { %6497 = vmatmul.mubr.msk.bf16.gmra.mrb[4].mxu1 %vm338_vm1, %v8130_v48  ;;  %6793 = vmatmul.mubr.msk.bf16.gmra.mrb[36].mxu0 %vm338_vm1, %v4336_v17  ;;  %v4299_v48 = vld [vmem:[#allocation2 + $0x195] sm:$0xff]  ;;  %v4815_v17 = vld [vmem:[#allocation2 + $0x86] sm:$0xff] }
 0x1b4   : > { %6500 = vmatprep.mubr.msk.bf16.mxu1 %vm338_vm1, %v8140_v22  ;;  %6796 = vmatprep.mubr.msk.bf16.mxu0 %vm338_vm1, %v4337_v26  ;;  %v4300_v22 = vld [vmem:[#allocation2 + $0x19d] sm:$0xff]  ;;  %v4816_v26 = vld [vmem:[#allocation2 + $0x8e] sm:$0xff] }
 0x1b5   : > { %v4340_v35 = vpack.c.bf16 %v4300_v22, %v4299_v48  ;;  %v4873_v53 = vpack.c.bf16 %v4816_v26, %v4815_v17  ;;  %v4823_v48 = vld [vmem:[#allocation2 + $0xc6] sm:$0xff]  ;;  %v4824_v22 = vld [vmem:[#allocation2 + $0xce] sm:$0xff] }
 0x1b6   : > { %v4877_v39 = vpack.c.bf16 %v4824_v22, %v4823_v48  ;;  %v2645_v17 = vld [vmem:[#allocation2 + $0x163] sm:$0xff]  ;;  %v2646_v26 = vld [vmem:[#allocation2 + $0x16b] sm:$0xff] }
 0x1b7   : > { %v2649_v48 = vld [vmem:[#allocation2 + $0x183] sm:$0xff]  ;;  %v2650_v22 = vld [vmem:[#allocation2 + $0x18b] sm:$0xff] }
 0x1bb   : > { %6501 = vmatmul.mubr.msk.bf16.gmra.mrb[8].mxu1 %vm338_vm1, %v8142_v24  ;;  %6797 = vmatmul.mubr.msk.bf16.gmra.mrb[40].mxu0 %vm338_vm1, %v4338_v28  ;;  %v4303_v24 = vld [vmem:[#allocation2 + $0x1b5] sm:$0xff] }
 0x1bc   : > { %6504 = vmatprep.mubr.msk.bf16.mxu1 %vm338_vm1, %v8152_v27  ;;  %6800 = vmatprep.mubr.msk.bf16.mxu0 %vm338_vm1, %v4339_v38  ;;  %v4304_v27 = vld [vmem:[#allocation2 + $0x1bd] sm:$0xff]  ;;  %v4875_v38 = vpack.c.bf16 %v4820_v20, %v4819_v0  ;;  %v4847_v0 = vld [vmem:[#allocation2 + $0x186] sm:$0xff]  ;;  %v4848_v20 = vld [vmem:[#allocation2 + $0x18e] sm:$0xff] }
 0x1bd   : > { %v4342_v45 = vpack.c.bf16 %v4304_v27, %v4303_v24 }
 0x1c3   : > { %6505 = vmatmul.mubr.msk.bf16.gmra.mrb[12].mxu1 %vm338_vm1, %v8154_v23  ;;  %6801 = vmatmul.mubr.msk.bf16.gmra.mrb[44].mxu0 %vm338_vm1, %v4340_v35  ;;  %v4307_v23 = vld [vmem:[#allocation2 + $0x1d5] sm:$0xff]  ;;  %v4827_v35 = vld [vmem:[#allocation2 + $0xe6] sm:$0xff] }
 0x1c4   : > { %6508 = vmatprep.mubr.msk.bf16.mxu1 %vm338_vm1, %v8164_v25  ;;  %6804 = vmatprep.mubr.msk.bf16.mxu0 %vm338_vm1, %v4341_v9  ;;  %v4308_v25 = vld [vmem:[#allocation2 + $0x1dd] sm:$0xff]  ;;  %v4828_v9 = vld [vmem:[#allocation2 + $0xee] sm:$0xff] }
 0x1c5   : > { %v4344_v1 = vpack.c.bf16 %v4308_v25, %v4307_v23  ;;  %v4879_v27 = vpack.c.bf16 %v4828_v9, %v4827_v35  ;;  %v2115_v23 = vld [vmem:[#allocation2 + $0x202] sm:$0xff]  ;;  %v4852_v9 = vld [vmem:[#allocation2 + $0x1ae] sm:$0xff] }
 0x1c6   : > { %v4834_v25 = vld [vmem:[#allocation2 + $0x11e] sm:$0xff]  ;;  %v4851_v35 = vld [vmem:[#allocation2 + $0x1a6] sm:$0xff] }
 0x1cb   : > { %6509 = vmatmul.mubr.msk.bf16.gmra.mrb[16].mxu1 %vm338_vm1, %v8166_v36  ;;  %6805 = vmatmul.mubr.msk.bf16.gmra.mrb[48].mxu0 %vm338_vm1, %v4342_v45  ;;  %v4311_v36 = vld [vmem:[#allocation2 + $0x1f5] sm:$0xff] }
 0x1cc   : > { %6512 = vmatprep.mubr.msk.bf16.mxu1 %vm338_vm1, %v8176_v40  ;;  %6808 = vmatprep.mubr.msk.bf16.mxu0 %vm338_vm1, %v4343_v29  ;;  %v4312_v40 = vld [vmem:[#allocation2 + $0x1fd] sm:$0xff]  ;;  %v4881_v29 = vpack.c.bf16 %v4832_v11, %v4831_v42  ;;  %v2654_v11 = vld [vmem:[#allocation2 + $0x1ab] sm:$0xff] }
 0x1cd   : > { %v4346_v16 = vpack.c.bf16 %v4312_v40, %v4311_v36  ;;  %v2653_v42 = vld [vmem:[#allocation2 + $0x1a3] sm:$0xff] }
 0x1ce   : > { %v2692_v51 = vpack.c.bf16 %v2654_v11, %v2653_v42 }
 0x1d3   : > { %6513 = vmatmul.mubr.msk.bf16.gmra.mrb[20].mxu1 %vm338_vm1, %v8178_v41  ;;  %6809 = vmatmul.mubr.msk.bf16.gmra.mrb[52].mxu0 %vm338_vm1, %v4344_v1  ;;  %v4315_v41 = vld [vmem:[#allocation2 + $0x215] sm:$0xff]  ;;  %v4835_v1 = vld [vmem:[#allocation2 + $0x126] sm:$0xff] }
 0x1d4   : > { %6516 = vmatprep.mubr.msk.bf16.mxu1 %vm338_vm1, %v8188_v43  ;;  %6812 = vmatprep.mubr.msk.bf16.mxu0 %vm338_vm1, %v4345_v33  ;;  %v4316_v43 = vld [vmem:[#allocation2 + $0x21d] sm:$0xff]  ;;  %v4836_v33 = vld [vmem:[#allocation2 + $0x12e] sm:$0xff] }
 0x1d5   : > { %v4348_v30 = vpack.c.bf16 %v4316_v43, %v4315_v41  ;;  %v4883_v60 = vpack.c.bf16 %v4836_v33, %v4835_v1  ;;  %v2639_v41 = vld [vmem:[#allocation2 + $0x133] sm:$0xff]  ;;  %v2640_v43 = vld [vmem:[#allocation2 + $0x13b] sm:$0xff] }
 0x1db   : > { %6517 = vmatmul.mubr.msk.bf16.gmra.mrb[24].mxu1 %vm338_vm1, %v8190_v47  ;;  %6813 = vmatmul.mubr.msk.bf16.gmra.mrb[56].mxu0 %vm338_vm1, %v4346_v16  ;;  %v4805_v47 = vld [vmem:[#allocation2 + $0x36] sm:$0xff]  ;;  %v2638_v16 = vld [vmem:[#allocation2 + $0x12b] sm:$0xff] }
 0x1dc   : > { %6520 = vmatprep.mubr.msk.bf16.mxu1 %vm338_vm1, %v8200_v57  ;;  %6816 = vmatprep.mubr.msk.bf16.mxu0 %vm338_vm1, %v4347_v63  ;;  %v4806_v57 = vld [vmem:[#allocation2 + $0x3e] sm:$0xff] }
 0x1dd   : > { %v4868_v62 = vpack.c.bf16 %v4806_v57, %v4805_v47  ;;  %v4838_v63 = vld [vmem:[#allocation2 + $0x13e] sm:$0xff]  ;;  %v2685_v47 = vpack.c.bf16 %v2640_v43, %v2639_v41  ;;  %v4885_v57 = vpack.c.bf16 %v4840_v6, %v4839_v18 }
 0x1e3   : > { %6521 = vmatmul.mubr.msk.bf16.gmra.mrb[28].mxu1 %vm338_vm1, %v8202_v4  ;;  %6817 = vmatmul.mubr.msk.bf16.gmra.mrb[60].mxu0 %vm338_vm1, %v4348_v30  ;;  %v4809_v4 = vld [vmem:[#allocation2 + $0x56] sm:$0xff] }
 0x1e4   : > { %6524 = vmatprep.mubr.msk.bf16.mxu1 %vm338_vm1, %v8210_v61  ;;  %6822 = vmatprep.mubr.msk.bf16.mxu0 %vm338_vm1, %v4867_v32  ;;  %v4810_v61 = vld [vmem:[#allocation2 + $0x5e] sm:$0xff] }
 0x1e5   : > { %v4870_v21 = vpack.c.bf16 %v4810_v61, %v4809_v4  ;;  %v2643_v4 = vld [vmem:[#allocation2 + $0x153] sm:$0xff]  ;;  %v2644_v61 = vld [vmem:[#allocation2 + $0x15b] sm:$0xff] }
 0x1eb   : > { %6525 = vmatmul.mubr.msk.bf16.gmra.mrb[32].mxu1 %vm338_vm1, %v8212_v52  ;;  %6823 = vmatmul.mubr.msk.bf16.vlgmr.msra.gmra.mrb[0].mxu0 %vm338_vm1, %v4868_v62  ;;  %v4813_v52 = vld [vmem:[#allocation2 + $0x76] sm:$0xff] }
 0x1ec   : > { %6528 = vmatprep.mubr.msk.bf16.mxu1 %vm338_vm1, %v8222_v2  ;;  %6826 = vmatprep.mubr.msk.bf16.mxu0 %vm338_vm1, %v4869_v19  ;;  %v4814_v2 = vld [vmem:[#allocation2 + $0x7e] sm:$0xff]  ;;  %v4841_v62 = vld [vmem:[#allocation2 + $0x156] sm:$0xff] }
 0x1ed   : > { %v4872_v3 = vpack.c.bf16 %v4814_v2, %v4813_v52  ;;  %v4842_v19 = vld [vmem:[#allocation2 + $0x15e] sm:$0xff]  ;;  %v2687_v52 = vpack.c.bf16 %v2644_v61, %v2643_v4  ;;  %v4887_v2 = vpack.c.bf16 %v4844_v8, %v4843_v10 }
 0x1f3   : > { %6529 = vmatmul.mubr.msk.bf16.gmra.mrb[36].mxu1 %vm338_vm1, %v8224_v12  ;;  %6827 = vmatmul.mubr.msk.bf16.gmra.mrb[4].mxu0 %vm338_vm1, %v4870_v21  ;;  %v4817_v12 = vld [vmem:[#allocation2 + $0x96] sm:$0xff]  ;;  %v2686_v21 = vpack.c.bf16 %v2642_v49, %v2641_v14 }
 0x1f4   : > { %6532 = vmatprep.mubr.msk.bf16.mxu1 %vm338_vm1, %v8232_v13  ;;  %6830 = vmatprep.mubr.msk.bf16.mxu0 %vm338_vm1, %v4871_v7  ;;  %v4818_v13 = vld [vmem:[#allocation2 + $0x9e] sm:$0xff]  ;;  %v4886_v7 = vpack.c.bf16 %v4842_v19, %v4841_v62  ;;  %v2663_v14 = vld [vmem:[#allocation2 + $0x1f3] sm:$0xff]  ;;  %v4863_v62 = vld [vmem:[#allocation2 + $0x206] sm:$0xff] }
 0x1f5   : > { %v4874_v28 = vpack.c.bf16 %v4818_v13, %v4817_v12  ;;  %v2647_v12 = vld [vmem:[#allocation2 + $0x173] sm:$0xff]  ;;  %v2648_v13 = vld [vmem:[#allocation2 + $0x17b] sm:$0xff] }
 0x1f6   : > { %v2664_v49 = vld [vmem:[#allocation2 + $0x1fb] sm:$0xff]  ;;  %v4864_v19 = vld [vmem:[#allocation2 + $0x20e] sm:$0xff] }
 0x1f7   : > { %v2697_v10 = vpack.c.bf16 %v2664_v49, %v2663_v14  ;;  %v4897_v8 = vpack.c.bf16 %v4864_v19, %v4863_v62 }
 0x1fb   : > { %6533 = vmatmul.mubr.msk.bf16.gmra.mrb[40].mxu1 %vm338_vm1, %v8234_v37  ;;  %6831 = vmatmul.mubr.msk.bf16.gmra.mrb[8].mxu0 %vm338_vm1, %v4872_v3  ;;  %v4821_v37 = vld [vmem:[#allocation2 + $0xb6] sm:$0xff] }
 0x1fc   : > { %6536 = vmatprep.mubr.msk.bf16.mxu1 %vm338_vm1, %v8242_v58  ;;  %6834 = vmatprep.mubr.msk.bf16.mxu0 %vm338_vm1, %v4873_v53  ;;  %v4822_v58 = vld [vmem:[#allocation2 + $0xbe] sm:$0xff]  ;;  %v4845_v3 = vld [vmem:[#allocation2 + $0x176] sm:$0xff] }
 0x1fd   : > { %v4876_v55 = vpack.c.bf16 %v4822_v58, %v4821_v37  ;;  %v4846_v53 = vld [vmem:[#allocation2 + $0x17e] sm:$0xff]  ;;  %v2689_v37 = vpack.c.bf16 %v2648_v13, %v2647_v12  ;;  %v4889_v58 = vpack.c.bf16 %v4848_v20, %v4847_v0 }
 0x203   : > { %6537 = vmatmul.mubr.msk.bf16.gmra.mrb[44].mxu1 %vm338_vm1, %v8244_v59  ;;  %6835 = vmatmul.mubr.msk.bf16.gmra.mrb[12].mxu0 %vm338_vm1, %v4874_v28  ;;  %v4825_v59 = vld [vmem:[#allocation2 + $0xd6] sm:$0xff]  ;;  %v2688_v28 = vpack.c.bf16 %v2646_v26, %v2645_v17 }
 0x204   : > { %6540 = vmatprep.mubr.msk.bf16.mxu1 %vm338_vm1, %v8252_v44  ;;  %6838 = vmatprep.mubr.msk.bf16.mxu0 %vm338_vm1, %v4875_v38  ;;  %v4826_v44 = vld [vmem:[#allocation2 + $0xde] sm:$0xff]  ;;  %v4888_v38 = vpack.c.bf16 %v4846_v53, %v4845_v3 }
 0x205   : > { %v4878_v24 = vpack.c.bf16 %v4826_v44, %v4825_v59  ;;  %v2651_v59 = vld [vmem:[#allocation2 + $0x193] sm:$0xff]  ;;  %v2652_v44 = vld [vmem:[#allocation2 + $0x19b] sm:$0xff] }
 0x20b   : > { %6541 = vmatmul.mubr.msk.bf16.gmra.mrb[48].mxu1 %vm338_vm1, %v8254_v15  ;;  %6839 = vmatmul.mubr.msk.bf16.gmra.mrb[16].mxu0 %vm338_vm1, %v4876_v55  ;;  %v4829_v15 = vld [vmem:[#allocation2 + $0xf6] sm:$0xff] }
 0x20c   : > { %6544 = vmatprep.mubr.msk.bf16.mxu1 %vm338_vm1, %v8262_v34  ;;  %6842 = vmatprep.mubr.msk.bf16.mxu0 %vm338_vm1, %v4877_v39  ;;  %v4830_v34 = vld [vmem:[#allocation2 + $0xfe] sm:$0xff]  ;;  %v4849_v55 = vld [vmem:[#allocation2 + $0x196] sm:$0xff] }
 0x20d   : > { %v4880_v45 = vpack.c.bf16 %v4830_v34, %v4829_v15  ;;  %v4850_v39 = vld [vmem:[#allocation2 + $0x19e] sm:$0xff]  ;;  %v2691_v15 = vpack.c.bf16 %v2652_v44, %v2651_v59  ;;  %v4891_v34 = vpack.c.bf16 %v4852_v9, %v4851_v35 }
 0x213   : > { %6545 = vmatmul.mubr.msk.bf16.gmra.mrb[52].mxu1 %vm338_vm1, %v8264_v31  ;;  %6843 = vmatmul.mubr.msk.bf16.gmra.mrb[20].mxu0 %vm338_vm1, %v4878_v24  ;;  %v2116_v31 = vld [vmem:[#allocation2 + $0x20a] sm:$0xff]  ;;  %v2690_v24 = vpack.c.bf16 %v2650_v22, %v2649_v48 }
 0x214   : > { %6548 = vmatprep.mubr.msk.bf16.mxu1 %vm338_vm1, %v8272_v46  ;;  %6846 = vmatprep.mubr.msk.bf16.mxu0 %vm338_vm1, %v4879_v27  ;;  %v4833_v46 = vld [vmem:[#allocation2 + $0x116] sm:$0xff]  ;;  %v2148_v36 = vpack.c.bf16 %v2116_v31, %v2115_v23  ;;  %v4890_v27 = vpack.c.bf16 %v4850_v39, %v4849_v55 }
 0x215   : > { %v4882_v40 = vpack.c.bf16 %v4834_v25, %v4833_v46  ;;  %v2655_v23 = vld [vmem:[#allocation2 + $0x1b3] sm:$0xff]  ;;  %v2656_v31 = vld [vmem:[#allocation2 + $0x1bb] sm:$0xff]  ;;  %v4855_v46 = vld [vmem:[#allocation2 + $0x1c6] sm:$0xff] }
 0x216   : > { %v4856_v25 = vld [vmem:[#allocation2 + $0x1ce] sm:$0xff]  ;;  %v2693_v1 = vpack.c.bf16 %v2656_v31, %v2655_v23 }
 0x217   : > { %v4893_v33 = vpack.c.bf16 %v4856_v25, %v4855_v46 }
 0x21b   : > { %6549 = vmatmul.mubr.msk.bf16.gmra.mrb[56].mxu1 %vm338_vm1, %v8274_v50  ;;  %6847 = vmatmul.mubr.msk.bf16.gmra.mrb[24].mxu0 %vm338_vm1, %v4880_v45  ;;  %v2637_v50 = vld [vmem:[#allocation2 + $0x123] sm:$0xff]  ;;  %v4853_v45 = vld [vmem:[#allocation2 + $0x1b6] sm:$0xff] }
 0x21c   : > { %6552 = vmatprep.mubr.msk.bf16.mxu1 %vm338_vm1, %v8282_v5  ;;  %6850 = vmatprep.mubr.msk.bf16.mxu0 %vm338_vm1, %v4881_v29  ;;  %v4837_v5 = vld [vmem:[#allocation2 + $0x136] sm:$0xff]  ;;  %v2684_v30 = vpack.c.bf16 %v2638_v16, %v2637_v50  ;;  %v4854_v29 = vld [vmem:[#allocation2 + $0x1be] sm:$0xff] }
 0x21d   : > { %v4884_v32 = vpack.c.bf16 %v4838_v63, %v4837_v5  ;;  %v4892_v56 = vpack.c.bf16 %v4854_v29, %v4853_v45  ;;  %v2659_v50 = vld [vmem:[#allocation2 + $0x1d3] sm:$0xff]  ;;  %v2660_v16 = vld [vmem:[#allocation2 + $0x1db] sm:$0xff]  ;;  %v4859_v5 = vld [vmem:[#allocation2 + $0x1e6] sm:$0xff] }
 0x21e   : > { %v4860_v63 = vld [vmem:[#allocation2 + $0x1ee] sm:$0xff]  ;;  %v2695_v18 = vpack.c.bf16 %v2660_v16, %v2659_v50 }
 0x21f   : > { %v4895_v6 = vpack.c.bf16 %v4860_v63, %v4859_v5 }
 0x223   : > { %6553 = vmatmul.mubr.msk.bf16.gmra.mrb[60].mxu1 %vm338_vm1, %v2148_v36  ;;  %6851 = vmatmul.mubr.msk.bf16.gmra.mrb[28].mxu0 %vm338_vm1, %v4882_v40  ;;  %v2657_v36 = vld [vmem:[#allocation2 + $0x1c3] sm:$0xff]  ;;  %v2658_v40 = vld [vmem:[#allocation2 + $0x1cb] sm:$0xff] }
 0x224   : > { %6590 = vmatprep.mubr.msk.bf16.mxu1 %vm338_vm1, %v2683_v54  ;;  %6854 = vmatprep.mubr.msk.bf16.mxu0 %vm338_vm1, %v4883_v60  ;;  %v4857_v54 = vld [vmem:[#allocation2 + $0x1d6] sm:$0xff]  ;;  %v4858_v60 = vld [vmem:[#allocation2 + $0x1de] sm:$0xff]  ;;  %v2694_v41 = vpack.c.bf16 %v2658_v40, %v2657_v36 }
 0x225   : > { %v4894_v43 = vpack.c.bf16 %v4858_v60, %v4857_v54 }
 0x22b   : > { %6591 = vmatmul.mubr.msk.bf16.vlgmr.msra.gmra.mrb[32].mxu1 %vm338_vm1, %v2684_v30  ;;  %6855 = vmatmul.mubr.msk.bf16.gmra.mrb[32].mxu0 %vm338_vm1, %v4884_v32  ;;  %v2661_v30 = vld [vmem:[#allocation2 + $0x1e3] sm:$0xff]  ;;  %v2662_v32 = vld [vmem:[#allocation2 + $0x1eb] sm:$0xff] }
 0x22c   : > { %6594 = vmatprep.mubr.msk.bf16.mxu1 %vm338_vm1, %v2685_v47  ;;  %6858 = vmatprep.mubr.msk.bf16.mxu0 %vm338_vm1, %v4885_v57  ;;  %v4861_v47 = vld [vmem:[#allocation2 + $0x1f6] sm:$0xff]  ;;  %v4862_v57 = vld [vmem:[#allocation2 + $0x1fe] sm:$0xff]  ;;  %v2696_v4 = vpack.c.bf16 %v2662_v32, %v2661_v30 }
 0x22d   : > { %v4896_v61 = vpack.c.bf16 %v4862_v57, %v4861_v47 }
 0x233   : > { %6595 = vmatmul.mubr.msk.bf16.gmra.mrb[36].mxu1 %vm338_vm1, %v2686_v21  ;;  %6859 = vmatmul.mubr.msk.bf16.gmra.mrb[36].mxu0 %vm338_vm1, %v4886_v7  ;;  %v2665_v21 = vld [vmem:[#allocation2 + $0x203] sm:$0xff]  ;;  %v2666_v7 = vld [vmem:[#allocation2 + $0x20b] sm:$0xff] }
 0x234   : > { %6598 = vmatprep.mubr.msk.bf16.mxu1 %vm338_vm1, %v2687_v52  ;;  %6862 = vmatprep.mubr.msk.bf16.mxu0 %vm338_vm1, %v4887_v2  ;;  %v4865_v52 = vld [vmem:[#allocation2 + $0x216] sm:$0xff]  ;;  %v4866_v2 = vld [vmem:[#allocation2 + $0x21e] sm:$0xff]  ;;  %v2698_v17 = vpack.c.bf16 %v2666_v7, %v2665_v21 }
 0x235   : > { %v4898_v26 = vpack.c.bf16 %v4866_v2, %v4865_v52 }
 0x23b   : > { %6599 = vmatmul.mubr.msk.bf16.gmra.mrb[40].mxu1 %vm338_vm1, %v2688_v28  ;;  %6863 = vmatmul.mubr.msk.bf16.gmra.mrb[40].mxu0 %vm338_vm1, %v4888_v38 }
 0x23c   : > { %6602 = vmatprep.mubr.msk.bf16.mxu1 %vm338_vm1, %v2689_v37  ;;  %6866 = vmatprep.mubr.msk.bf16.mxu0 %vm338_vm1, %v4889_v58 }
 0x243   : > { %6603 = vmatmul.mubr.msk.bf16.gmra.mrb[44].mxu1 %vm338_vm1, %v2690_v24  ;;  %6867 = vmatmul.mubr.msk.bf16.gmra.mrb[44].mxu0 %vm338_vm1, %v4890_v27 }
 0x244   : > { %6606 = vmatprep.mubr.msk.bf16.mxu1 %vm338_vm1, %v2691_v15  ;;  %6870 = vmatprep.mubr.msk.bf16.mxu0 %vm338_vm1, %v4891_v34 }
 0x24b   : > { %6607 = vmatmul.mubr.msk.bf16.gmra.mrb[48].mxu1 %vm338_vm1, %v2692_v51  ;;  %6871 = vmatmul.mubr.msk.bf16.gmra.mrb[48].mxu0 %vm338_vm1, %v4892_v56 }
 0x24c   : > { %6610 = vmatprep.mubr.msk.bf16.mxu1 %vm338_vm1, %v2693_v1  ;;  %6874 = vmatprep.mubr.msk.bf16.mxu0 %vm338_vm1, %v4893_v33  ;;  %v8467_v33 = vld [vmem:[%s8685_s3] ss:$0 sm:$0xff] }
 0x253   : > { %6611 = vmatmul.mubr.msk.bf16.gmra.mrb[52].mxu1 %vm338_vm1, %v2694_v41  ;;  %6875 = vmatmul.mubr.msk.bf16.gmra.mrb[52].mxu0 %vm338_vm1, %v4894_v43 }
 0x254   : > { %6614 = vmatprep.mubr.msk.bf16.mxu1 %vm338_vm1, %v2695_v18  ;;  %6878 = vmatprep.mubr.msk.bf16.mxu0 %vm338_vm1, %v4895_v6 }
 0x25b   : > { %6615 = vmatmul.mubr.msk.bf16.gmra.mrb[56].mxu1 %vm338_vm1, %v2696_v4  ;;  %6879 = vmatmul.mubr.msk.bf16.gmra.mrb[56].mxu0 %vm338_vm1, %v4896_v61 }
 0x25c   : > { %6618 = vmatprep.mubr.msk.bf16.mxu1 %vm338_vm1, %v2697_v10  ;;  %6882 = vmatprep.mubr.msk.bf16.mxu0 %vm338_vm1, %v4897_v8 }
 0x263   : > { %6619 = vmatmul.mubr.msk.bf16.gmra.mrb[60].mxu1 %vm338_vm1, %v2698_v17  ;;  %6883 = vmatmul.mubr.msk.bf16.gmra.mrb[60].mxu0 %vm338_vm1, %v4898_v26 }
 0x27e   : > { %v6494_v3 = vpop.f32.mrb[0].mxu1 }
 0x27f   : > { %v2284_v53 = vpop.f32.mrb[1].mxu1 }
 0x280   : > { %v6495_v12 = vpop.f32.mrb[2].mxu1 }
 0x281   : > { %v2287_v13 = vpop.f32.mrb[3].mxu1 }
 0x286   : > { %v6498_v0 = vpop.f32.mrb[4].mxu1 }
 0x287   : > { %v2300_v20 = vpop.f32.mrb[5].mxu1 }
 0x288   : > { %v6499_v28 = vpop.f32.mrb[6].mxu1 }
 0x289   : > { %v2303_v38 = vpop.f32.mrb[7].mxu1 }
 0x28e   : > { %v8415_v37 = vpop.f32.mrb[8].mxu1 }
 0x28f   : > { %v8417_v58 = vpop.f32.mrb[9].mxu1 }
 0x290   : > { %v8419_v48 = vpop.f32.mrb[10].mxu1 }
 0x291   : > { %v8421_v22 = vpop.f32.mrb[11].mxu1 }
 0x296   : > { %v8423_v55 = vpop.f32.mrb[12].mxu1 }
 0x297   : > { %v8425_v39 = vpop.f32.mrb[13].mxu1 }
 0x298   : > { %v8427_v59 = vpop.f32.mrb[14].mxu1 }
 0x299   : > { %v8429_v44 = vpop.f32.mrb[15].mxu1 }
 0x29e   : > { %v8431_v35 = vpop.f32.mrb[16].mxu1 }
 0x29f   : > { %v8433_v9 = vpop.f32.mrb[17].mxu1 }
 0x2a0   : > { %v8435_v24 = vpop.f32.mrb[18].mxu1 }
 0x2a1   : > { %v8437_v27 = vpop.f32.mrb[19].mxu1 }
 0x2a6   : > { %v8439_v15 = vpop.f32.mrb[20].mxu1 }
 0x2a7   : > { %v8441_v34 = vpop.f32.mrb[21].mxu1 }
 0x2a8   : > { %v8443_v42 = vpop.f32.mrb[22].mxu1 }
 0x2a9   : > { %v8445_v11 = vpop.f32.mrb[23].mxu1 }
 0x2ae   : > { %v8447_v45 = vpop.f32.mrb[24].mxu1 }
 0x2af   : > { %v8449_v29 = vpop.f32.mrb[25].mxu1 }
 0x2b0   : > { %v8451_v23 = vpop.f32.mrb[26].mxu1 }
 0x2b1   : > { %v8453_v31 = vpop.f32.mrb[27].mxu1 }
 0x2b6   : > { %v8455_v46 = vpop.f32.mrb[28].mxu1 }
 0x2b7   : > { %v8457_v25 = vpop.f32.mrb[29].mxu1 }
 0x2b8   : > { %v8459_v51 = vpop.f32.mrb[30].mxu1 }
 0x2b9   : > { %v8461_v56 = vpop.f32.mrb[31].mxu1 }
 0x2be   : > { %v6824_v1 = vpop.f32.mrb[0].mxu0 }
 0x2bf   : > { %v6888_v36 = vadd.f32 %v6824_v1, %v6494_v3  ;;  %v5034_v40 = vpop.f32.mrb[1].mxu0 }
 0x2c0   : > { %v6889_v54 = vadd.f32 %v5034_v40, %v2284_v53  ;;  %v6825_v60 = vpop.f32.mrb[2].mxu0 }
 0x2c1   : > { %v5362_v50 = vadd.f32 %v6888_v36, %v8467_v33  ;;  %v6890_v16 = vadd.f32 %v6825_v60, %v6495_v12  ;;  %v5037_v5 = vpop.f32.mrb[3].mxu0 }
 0x2c2   : > { %v5360_v63 = vadd.f32 %v6889_v54, %v8467_v33  ;;  %v6891_v41 = vadd.f32 %v5037_v5, %v2287_v13 }
 0x2c3   : > { %v5426_v43 = vmax.f32 %v5362_v50, 0.0  ;;  %v5363_v18 = vadd.f32 %v6890_v16, %v8467_v33 }
 0x2c4   : > { %v5424_v6 = vmax.f32 %v5360_v63, 0.0  ;;  %v5361_v30 = vadd.f32 %v6891_v41, %v8467_v33 }
 0x2c5   : > { %5490 = vst [vmem:[%s8475_s7 + $0x10] sm:$0xff] %v5426_v43  ;;  %v5427_v32 = vmax.f32 %v5363_v18, 0.0 }
 0x2c6   : > { %5488 = vst [vmem:[%s8475_s7] sm:$0xff] %v5424_v6  ;;  %v5425_v47 = vmax.f32 %v5361_v30, 0.0  ;;  %v6828_v57 = vpop.f32.mrb[4].mxu0 }
 0x2c7   : > { %5491 = vst [vmem:[%s8475_s7 + $0x18] sm:$0xff] %v5427_v32  ;;  %v6892_v14 = vadd.f32 %v6828_v57, %v6498_v0  ;;  %v5050_v49 = vpop.f32.mrb[5].mxu0 }
 0x2c8   : > { %5489 = vst [vmem:[%s8475_s7 + $0x8] sm:$0xff] %v5425_v47  ;;  %v6893_v62 = vadd.f32 %v5050_v49, %v2300_v20  ;;  %v6829_v19 = vpop.f32.mrb[6].mxu0 }
 0x2c9   : > { %v5366_v4 = vadd.f32 %v6892_v14, %v8467_v33  ;;  %v6894_v61 = vadd.f32 %v6829_v19, %v6499_v28  ;;  %v5053_v10 = vpop.f32.mrb[7].mxu0 }
 0x2ca   : > { %v5364_v8 = vadd.f32 %v6893_v62, %v8467_v33  ;;  %v6895_v21 = vadd.f32 %v5053_v10, %v2303_v38 }
 0x2cb   : > { %v5430_v7 = vmax.f32 %v5366_v4, 0.0  ;;  %v5367_v52 = vadd.f32 %v6894_v61, %v8467_v33 }
 0x2cc   : > { %v5428_v2 = vmax.f32 %v5364_v8, 0.0  ;;  %v5365_v17 = vadd.f32 %v6895_v21, %v8467_v33 }
 0x2cd   : > { %5494 = vst [vmem:[%s8475_s7 + $0x30] sm:$0xff] %v5430_v7  ;;  %v5431_v26 = vmax.f32 %v5367_v52, 0.0 }
 0x2ce   : > { %5492 = vst [vmem:[%s8475_s7 + $0x20] sm:$0xff] %v5428_v2  ;;  %v5429_v3 = vmax.f32 %v5365_v17, 0.0  ;;  %v6832_v53 = vpop.f32.mrb[8].mxu0 }
 0x2cf   : > { %5495 = vst [vmem:[%s8475_s7 + $0x38] sm:$0xff] %v5431_v26  ;;  %v6896_v12 = vadd.f32 %v6832_v53, %v8415_v37  ;;  %v5066_v13 = vpop.f32.mrb[9].mxu0 }
 0x2d0   : > { %5493 = vst [vmem:[%s8475_s7 + $0x28] sm:$0xff] %v5429_v3  ;;  %v6897_v0 = vadd.f32 %v5066_v13, %v8417_v58  ;;  %v6833_v20 = vpop.f32.mrb[10].mxu0 }
 0x2d1   : > { %v5370_v28 = vadd.f32 %v6896_v12, %v8467_v33  ;;  %v6898_v38 = vadd.f32 %v6833_v20, %v8419_v48  ;;  %v5069_v1 = vpop.f32.mrb[11].mxu0 }
 0x2d2   : > { %v5368_v36 = vadd.f32 %v6897_v0, %v8467_v33  ;;  %v6899_v40 = vadd.f32 %v5069_v1, %v8421_v22 }
 0x2d3   : > { %v5434_v54 = vmax.f32 %v5370_v28, 0.0  ;;  %v5371_v37 = vadd.f32 %v6898_v38, %v8467_v33 }
 0x2d4   : > { %v5432_v60 = vmax.f32 %v5368_v36, 0.0  ;;  %v5369_v50 = vadd.f32 %v6899_v40, %v8467_v33 }
 0x2d5   : > { %5498 = vst [vmem:[%s8475_s7 + $0x50] sm:$0xff] %v5434_v54  ;;  %v5435_v58 = vmax.f32 %v5371_v37, 0.0 }
 0x2d6   : > { %5496 = vst [vmem:[%s8475_s7 + $0x40] sm:$0xff] %v5432_v60  ;;  %v5433_v16 = vmax.f32 %v5369_v50, 0.0  ;;  %v6836_v5 = vpop.f32.mrb[12].mxu0 }
 0x2d7   : > { %5499 = vst [vmem:[%s8475_s7 + $0x58] sm:$0xff] %v5435_v58  ;;  %v6900_v48 = vadd.f32 %v6836_v5, %v8423_v55  ;;  %v5082_v63 = vpop.f32.mrb[13].mxu0 }
 0x2d8   : > { %5497 = vst [vmem:[%s8475_s7 + $0x48] sm:$0xff] %v5433_v16  ;;  %v6901_v22 = vadd.f32 %v5082_v63, %v8425_v39  ;;  %v6837_v41 = vpop.f32.mrb[14].mxu0 }
 0x2d9   : > { %v5374_v43 = vadd.f32 %v6900_v48, %v8467_v33  ;;  %v6902_v18 = vadd.f32 %v6837_v41, %v8427_v59  ;;  %v5085_v6 = vpop.f32.mrb[15].mxu0 }
 0x2da   : > { %v5372_v30 = vadd.f32 %v6901_v22, %v8467_v33  ;;  %v6903_v32 = vadd.f32 %v5085_v6, %v8429_v44 }
 0x2db   : > { %v5438_v47 = vmax.f32 %v5374_v43, 0.0  ;;  %v5375_v55 = vadd.f32 %v6902_v18, %v8467_v33 }
 0x2dc   : > { %v5436_v57 = vmax.f32 %v5372_v30, 0.0  ;;  %v5373_v14 = vadd.f32 %v6903_v32, %v8467_v33 }
 0x2dd   : > { %5502 = vst [vmem:[%s8475_s7 + $0x70] sm:$0xff] %v5438_v47  ;;  %v5439_v39 = vmax.f32 %v5375_v55, 0.0 }
 0x2de   : > { %5500 = vst [vmem:[%s8475_s7 + $0x60] sm:$0xff] %v5436_v57  ;;  %v5437_v49 = vmax.f32 %v5373_v14, 0.0  ;;  %v6840_v62 = vpop.f32.mrb[16].mxu0 }
 0x2df   : > { %5503 = vst [vmem:[%s8475_s7 + $0x78] sm:$0xff] %v5439_v39  ;;  %v6904_v59 = vadd.f32 %v6840_v62, %v8431_v35  ;;  %v5098_v19 = vpop.f32.mrb[17].mxu0 }
 0x2e0   : > { %5501 = vst [vmem:[%s8475_s7 + $0x68] sm:$0xff] %v5437_v49  ;;  %v6905_v44 = vadd.f32 %v5098_v19, %v8433_v9  ;;  %v6841_v4 = vpop.f32.mrb[18].mxu0 }
 0x2e1   : > { %v5378_v61 = vadd.f32 %v6904_v59, %v8467_v33  ;;  %v6906_v10 = vadd.f32 %v6841_v4, %v8435_v24  ;;  %v5101_v8 = vpop.f32.mrb[19].mxu0 }
 0x2e2   : > { %v5376_v21 = vadd.f32 %v6905_v44, %v8467_v33  ;;  %v6907_v7 = vadd.f32 %v5101_v8, %v8437_v27 }
 0x2e3   : > { %v5442_v52 = vmax.f32 %v5378_v61, 0.0  ;;  %v5379_v35 = vadd.f32 %v6906_v10, %v8467_v33 }
 0x2e4   : > { %v5440_v2 = vmax.f32 %v5376_v21, 0.0  ;;  %v5377_v17 = vadd.f32 %v6907_v7, %v8467_v33 }
 0x2e5   : > { %5506 = vst [vmem:[%s8475_s7 + $0x90] sm:$0xff] %v5442_v52  ;;  %v5443_v9 = vmax.f32 %v5379_v35, 0.0 }
 0x2e6   : > { %5504 = vst [vmem:[%s8475_s7 + $0x80] sm:$0xff] %v5440_v2  ;;  %v5441_v26 = vmax.f32 %v5377_v17, 0.0  ;;  %v6844_v3 = vpop.f32.mrb[20].mxu0 }
 0x2e7   : > { %5507 = vst [vmem:[%s8475_s7 + $0x98] sm:$0xff] %v5443_v9  ;;  %v6908_v24 = vadd.f32 %v6844_v3, %v8439_v15  ;;  %v5114_v53 = vpop.f32.mrb[21].mxu0 }
 0x2e8   : > { %5505 = vst [vmem:[%s8475_s7 + $0x88] sm:$0xff] %v5441_v26  ;;  %v6909_v27 = vadd.f32 %v5114_v53, %v8441_v34  ;;  %v6845_v12 = vpop.f32.mrb[22].mxu0 }
 0x2e9   : > { %v5382_v13 = vadd.f32 %v6908_v24, %v8467_v33  ;;  %v6910_v0 = vadd.f32 %v6845_v12, %v8443_v42  ;;  %v5117_v20 = vpop.f32.mrb[23].mxu0 }
 0x2ea   : > { %v5380_v28 = vadd.f32 %v6909_v27, %v8467_v33  ;;  %v6911_v38 = vadd.f32 %v5117_v20, %v8445_v11 }
 0x2eb   : > { %v5446_v1 = vmax.f32 %v5382_v13, 0.0  ;;  %v5383_v15 = vadd.f32 %v6910_v0, %v8467_v33 }
 0x2ec   : > { %v5444_v36 = vmax.f32 %v5380_v28, 0.0  ;;  %v5381_v40 = vadd.f32 %v6911_v38, %v8467_v33 }
 0x2ed   : > { %5510 = vst [vmem:[%s8475_s7 + $0xb0] sm:$0xff] %v5446_v1  ;;  %v5447_v34 = vmax.f32 %v5383_v15, 0.0 }
 0x2ee   : > { %5508 = vst [vmem:[%s8475_s7 + $0xa0] sm:$0xff] %v5444_v36  ;;  %v5445_v54 = vmax.f32 %v5381_v40, 0.0  ;;  %v6848_v37 = vpop.f32.mrb[24].mxu0 }
 0x2ef   : > { %5511 = vst [vmem:[%s8475_s7 + $0xb8] sm:$0xff] %v5447_v34  ;;  %v6912_v42 = vadd.f32 %v6848_v37, %v8447_v45  ;;  %v5130_v60 = vpop.f32.mrb[25].mxu0 }
 0x2f0   : > { %5509 = vst [vmem:[%s8475_s7 + $0xa8] sm:$0xff] %v5445_v54  ;;  %v6913_v11 = vadd.f32 %v5130_v60, %v8449_v29  ;;  %v6849_v50 = vpop.f32.mrb[26].mxu0 }
 0x2f1   : > { %v5386_v58 = vadd.f32 %v6912_v42, %v8467_v33  ;;  %v6914_v16 = vadd.f32 %v6849_v50, %v8451_v23  ;;  %v5133_v5 = vpop.f32.mrb[27].mxu0 }
 0x2f2   : > { %v5384_v48 = vadd.f32 %v6913_v11, %v8467_v33  ;;  %v6915_v63 = vadd.f32 %v5133_v5, %v8453_v31 }
 0x2f3   : > { %v5450_v22 = vmax.f32 %v5386_v58, 0.0  ;;  %v5387_v45 = vadd.f32 %v6914_v16, %v8467_v33 }
 0x2f4   : > { %v5448_v41 = vmax.f32 %v5384_v48, 0.0  ;;  %v5385_v43 = vadd.f32 %v6915_v63, %v8467_v33 }
 0x2f5   : > { %5514 = vst [vmem:[%s8475_s7 + $0xd0] sm:$0xff] %v5450_v22  ;;  %v5451_v29 = vmax.f32 %v5387_v45, 0.0 }
 0x2f6   : > { %5512 = vst [vmem:[%s8475_s7 + $0xc0] sm:$0xff] %v5448_v41  ;;  %v5449_v18 = vmax.f32 %v5385_v43, 0.0  ;;  %v6852_v6 = vpop.f32.mrb[28].mxu0 }
 0x2f7   : > { %5515 = vst [vmem:[%s8475_s7 + $0xd8] sm:$0xff] %v5451_v29  ;;  %v6916_v23 = vadd.f32 %v6852_v6, %v8455_v46  ;;  %v5146_v30 = vpop.f32.mrb[29].mxu0 }
 0x2f8   : > { %5513 = vst [vmem:[%s8475_s7 + $0xc8] sm:$0xff] %v5449_v18  ;;  %v6917_v31 = vadd.f32 %v5146_v30, %v8457_v25  ;;  %v6853_v32 = vpop.f32.mrb[30].mxu0 }
 0x2f9   : > { %v5390_v47 = vadd.f32 %v6916_v23, %v8467_v33  ;;  %v6918_v55 = vadd.f32 %v6853_v32, %v8459_v51  ;;  %v5149_v57 = vpop.f32.mrb[31].mxu0 }
 0x2fa   : > { %v5388_v14 = vadd.f32 %v6917_v31, %v8467_v33  ;;  %v6919_v39 = vadd.f32 %v5149_v57, %v8461_v56 }
 0x2fb   : > { %v5454_v49 = vmax.f32 %v5390_v47, 0.0  ;;  %v5391_v46 = vadd.f32 %v6918_v55, %v8467_v33 }
 0x2fc   : > { %v5452_v62 = vmax.f32 %v5388_v14, 0.0  ;;  %v5389_v59 = vadd.f32 %v6919_v39, %v8467_v33 }
 0x2fd   : > { %5518 = vst [vmem:[%s8475_s7 + $0xf0] sm:$0xff] %v5454_v49  ;;  %v5455_v25 = vmax.f32 %v5391_v46, 0.0 }
 0x2fe   : > { %5516 = vst [vmem:[%s8475_s7 + $0xe0] sm:$0xff] %v5452_v62  ;;  %v5453_v19 = vmax.f32 %v5389_v59, 0.0  ;;  %v6592_v44 = vpop.f32.mrb[32].mxu1  ;;  %v6856_v4 = vpop.f32.mrb[32].mxu0 }
 0x2ff   : > { %5519 = vst [vmem:[%s8475_s7 + $0xf8] sm:$0xff] %v5455_v25  ;;  %v6920_v51 = vadd.f32 %v6856_v4, %v6592_v44  ;;  %v2962_v61 = vpop.f32.mrb[33].mxu1  ;;  %v5162_v10 = vpop.f32.mrb[33].mxu0 }
 0x300   : > { %5517 = vst [vmem:[%s8475_s7 + $0xe8] sm:$0xff] %v5453_v19  ;;  %v6921_v56 = vadd.f32 %v5162_v10, %v2962_v61  ;;  %v6593_v8 = vpop.f32.mrb[34].mxu1  ;;  %v6857_v21 = vpop.f32.mrb[34].mxu0 }
 0x301   : > { %v5394_v7 = vadd.f32 %v6920_v51, %v8467_v33  ;;  %v6922_v52 = vadd.f32 %v6857_v21, %v6593_v8  ;;  %v2965_v35 = vpop.f32.mrb[35].mxu1  ;;  %v5165_v2 = vpop.f32.mrb[35].mxu0 }
 0x302   : > { %v5392_v17 = vadd.f32 %v6921_v56, %v8467_v33  ;;  %v6923_v9 = vadd.f32 %v5165_v2, %v2965_v35 }
 0x303   : > { %v5458_v26 = vmax.f32 %v5394_v7, 0.0  ;;  %v5395_v3 = vadd.f32 %v6922_v52, %v8467_v33 }
 0x304   : > { %v5456_v24 = vmax.f32 %v5392_v17, 0.0  ;;  %v5393_v53 = vadd.f32 %v6923_v9, %v8467_v33 }
 0x305   : > { %5522 = vst [vmem:[%s8475_s7 + $0x110] sm:$0xff] %v5458_v26  ;;  %v5459_v27 = vmax.f32 %v5395_v3, 0.0 }
 0x306   : > { %5520 = vst [vmem:[%s8475_s7 + $0x100] sm:$0xff] %v5456_v24  ;;  %v5457_v12 = vmax.f32 %v5393_v53, 0.0  ;;  %v6596_v13 = vpop.f32.mrb[36].mxu1  ;;  %v6860_v0 = vpop.f32.mrb[36].mxu0 }
 0x307   : > { %5523 = vst [vmem:[%s8475_s7 + $0x118] sm:$0xff] %v5459_v27  ;;  %v6924_v20 = vadd.f32 %v6860_v0, %v6596_v13  ;;  %v2978_v28 = vpop.f32.mrb[37].mxu1  ;;  %v5178_v38 = vpop.f32.mrb[37].mxu0 }
 0x308   : > { %5521 = vst [vmem:[%s8475_s7 + $0x108] sm:$0xff] %v5457_v12  ;;  %v6925_v1 = vadd.f32 %v5178_v38, %v2978_v28  ;;  %v6597_v15 = vpop.f32.mrb[38].mxu1  ;;  %v6861_v36 = vpop.f32.mrb[38].mxu0 }
 0x309   : > { %v5398_v40 = vadd.f32 %v6924_v20, %v8467_v33  ;;  %v6926_v34 = vadd.f32 %v6861_v36, %v6597_v15  ;;  %v2981_v54 = vpop.f32.mrb[39].mxu1  ;;  %v5181_v37 = vpop.f32.mrb[39].mxu0 }
 0x30a   : > { %v5396_v42 = vadd.f32 %v6925_v1, %v8467_v33  ;;  %v6927_v60 = vadd.f32 %v5181_v37, %v2981_v54 }
 0x30b   : > { %v5462_v11 = vmax.f32 %v5398_v40, 0.0  ;;  %v5399_v50 = vadd.f32 %v6926_v34, %v8467_v33 }
 0x30c   : > { %v5460_v58 = vmax.f32 %v5396_v42, 0.0  ;;  %v5397_v16 = vadd.f32 %v6927_v60, %v8467_v33 }
 0x30d   : > { %5526 = vst [vmem:[%s8475_s7 + $0x130] sm:$0xff] %v5462_v11  ;;  %v5463_v5 = vmax.f32 %v5399_v50, 0.0 }
 0x30e   : > { %5524 = vst [vmem:[%s8475_s7 + $0x120] sm:$0xff] %v5460_v58  ;;  %v5461_v48 = vmax.f32 %v5397_v16, 0.0  ;;  %v6600_v63 = vpop.f32.mrb[40].mxu1  ;;  %v6864_v22 = vpop.f32.mrb[40].mxu0 }
 0x30f   : > { %5527 = vst [vmem:[%s8475_s7 + $0x138] sm:$0xff] %v5463_v5  ;;  %v6928_v45 = vadd.f32 %v6864_v22, %v6600_v63  ;;  %v2994_v41 = vpop.f32.mrb[41].mxu1  ;;  %v5194_v43 = vpop.f32.mrb[41].mxu0 }
 0x310   : > { %5525 = vst [vmem:[%s8475_s7 + $0x128] sm:$0xff] %v5461_v48  ;;  %v6929_v29 = vadd.f32 %v5194_v43, %v2994_v41  ;;  %v6601_v18 = vpop.f32.mrb[42].mxu1  ;;  %v6865_v6 = vpop.f32.mrb[42].mxu0 }
 0x311   : > { %v5402_v23 = vadd.f32 %v6928_v45, %v8467_v33  ;;  %v6930_v30 = vadd.f32 %v6865_v6, %v6601_v18  ;;  %v2997_v31 = vpop.f32.mrb[43].mxu1  ;;  %v5197_v32 = vpop.f32.mrb[43].mxu0 }
 0x312   : > { %v5400_v47 = vadd.f32 %v6929_v29, %v8467_v33  ;;  %v6931_v55 = vadd.f32 %v5197_v32, %v2997_v31 }
 0x313   : > { %v5466_v57 = vmax.f32 %v5402_v23, 0.0  ;;  %v5403_v14 = vadd.f32 %v6930_v30, %v8467_v33 }
 0x314   : > { %v5464_v39 = vmax.f32 %v5400_v47, 0.0  ;;  %v5401_v49 = vadd.f32 %v6931_v55, %v8467_v33 }
 0x315   : > { %5530 = vst [vmem:[%s8475_s7 + $0x150] sm:$0xff] %v5466_v57  ;;  %v5467_v46 = vmax.f32 %v5403_v14, 0.0 }
 0x316   : > { %5528 = vst [vmem:[%s8475_s7 + $0x140] sm:$0xff] %v5464_v39  ;;  %v5465_v62 = vmax.f32 %v5401_v49, 0.0  ;;  %v6604_v59 = vpop.f32.mrb[44].mxu1  ;;  %v6868_v25 = vpop.f32.mrb[44].mxu0 }
 0x317   : > { %5531 = vst [vmem:[%s8475_s7 + $0x158] sm:$0xff] %v5467_v46  ;;  %v6932_v19 = vadd.f32 %v6868_v25, %v6604_v59  ;;  %v3010_v44 = vpop.f32.mrb[45].mxu1  ;;  %v5210_v4 = vpop.f32.mrb[45].mxu0 }
 0x318   : > { %5529 = vst [vmem:[%s8475_s7 + $0x148] sm:$0xff] %v5465_v62  ;;  %v6933_v51 = vadd.f32 %v5210_v4, %v3010_v44  ;;  %v6605_v61 = vpop.f32.mrb[46].mxu1  ;;  %v6869_v10 = vpop.f32.mrb[46].mxu0 }
 0x319   : > { %v5406_v56 = vadd.f32 %v6932_v19, %v8467_v33  ;;  %v6934_v8 = vadd.f32 %v6869_v10, %v6605_v61  ;;  %v3013_v21 = vpop.f32.mrb[47].mxu1  ;;  %v5213_v7 = vpop.f32.mrb[47].mxu0 }
 0x31a   : > { %v5404_v52 = vadd.f32 %v6933_v51, %v8467_v33  ;;  %v6935_v35 = vadd.f32 %v5213_v7, %v3013_v21 }
 0x31b   : > { %v5470_v2 = vmax.f32 %v5406_v56, 0.0  ;;  %v5407_v17 = vadd.f32 %v6934_v8, %v8467_v33 }
 0x31c   : > { %v5468_v9 = vmax.f32 %v5404_v52, 0.0  ;;  %v5405_v26 = vadd.f32 %v6935_v35, %v8467_v33 }
 0x31d   : > { %5534 = vst [vmem:[%s8475_s7 + $0x170] sm:$0xff] %v5470_v2  ;;  %v5471_v3 = vmax.f32 %v5407_v17, 0.0 }
 0x31e   : > { %5532 = vst [vmem:[%s8475_s7 + $0x160] sm:$0xff] %v5468_v9  ;;  %v5469_v24 = vmax.f32 %v5405_v26, 0.0  ;;  %v6608_v53 = vpop.f32.mrb[48].mxu1  ;;  %v6872_v27 = vpop.f32.mrb[48].mxu0 }
 0x31f   : > { %5535 = vst [vmem:[%s8475_s7 + $0x178] sm:$0xff] %v5471_v3  ;;  %v6936_v12 = vadd.f32 %v6872_v27, %v6608_v53  ;;  %v3026_v13 = vpop.f32.mrb[49].mxu1  ;;  %v5226_v0 = vpop.f32.mrb[49].mxu0 }
 0x320   : > { %5533 = vst [vmem:[%s8475_s7 + $0x168] sm:$0xff] %v5469_v24  ;;  %v6937_v20 = vadd.f32 %v5226_v0, %v3026_v13  ;;  %v6609_v28 = vpop.f32.mrb[50].mxu1  ;;  %v6873_v38 = vpop.f32.mrb[50].mxu0 }
 0x321   : > { %v5410_v1 = vadd.f32 %v6936_v12, %v8467_v33  ;;  %v6938_v15 = vadd.f32 %v6873_v38, %v6609_v28  ;;  %v3029_v36 = vpop.f32.mrb[51].mxu1  ;;  %v5229_v40 = vpop.f32.mrb[51].mxu0 }
 0x322   : > { %v5408_v34 = vadd.f32 %v6937_v20, %v8467_v33  ;;  %v6939_v54 = vadd.f32 %v5229_v40, %v3029_v36 }
 0x323   : > { %v5474_v37 = vmax.f32 %v5410_v1, 0.0  ;;  %v5411_v42 = vadd.f32 %v6938_v15, %v8467_v33 }
 0x324   : > { %v5472_v60 = vmax.f32 %v5408_v34, 0.0  ;;  %v5409_v11 = vadd.f32 %v6939_v54, %v8467_v33 }
 0x325   : > { %5538 = vst [vmem:[%s8475_s7 + $0x190] sm:$0xff] %v5474_v37  ;;  %v5475_v50 = vmax.f32 %v5411_v42, 0.0 }
 0x326   : > { %5536 = vst [vmem:[%s8475_s7 + $0x180] sm:$0xff] %v5472_v60  ;;  %v5473_v58 = vmax.f32 %v5409_v11, 0.0  ;;  %v6612_v16 = vpop.f32.mrb[52].mxu1  ;;  %v6876_v5 = vpop.f32.mrb[52].mxu0 }
 0x327   : > { %5539 = vst [vmem:[%s8475_s7 + $0x198] sm:$0xff] %v5475_v50  ;;  %v6940_v48 = vadd.f32 %v6876_v5, %v6612_v16  ;;  %v3042_v63 = vpop.f32.mrb[53].mxu1  ;;  %v5242_v22 = vpop.f32.mrb[53].mxu0 }
 0x328   : > { %5537 = vst [vmem:[%s8475_s7 + $0x188] sm:$0xff] %v5473_v58  ;;  %v6941_v45 = vadd.f32 %v5242_v22, %v3042_v63  ;;  %v6613_v41 = vpop.f32.mrb[54].mxu1  ;;  %v6877_v43 = vpop.f32.mrb[54].mxu0 }
 0x329   : > { %v5414_v29 = vadd.f32 %v6940_v48, %v8467_v33  ;;  %v6942_v18 = vadd.f32 %v6877_v43, %v6613_v41  ;;  %v3045_v6 = vpop.f32.mrb[55].mxu1  ;;  %v5245_v23 = vpop.f32.mrb[55].mxu0 }
 0x32a   : > { %v5412_v30 = vadd.f32 %v6941_v45, %v8467_v33  ;;  %v6943_v31 = vadd.f32 %v5245_v23, %v3045_v6 }
 0x32b   : > { %v5478_v32 = vmax.f32 %v5414_v29, 0.0  ;;  %v5415_v47 = vadd.f32 %v6942_v18, %v8467_v33 }
 0x32c   : > { %v5476_v55 = vmax.f32 %v5412_v30, 0.0  ;;  %v5413_v57 = vadd.f32 %v6943_v31, %v8467_v33 }
 0x32d   : > { %5542 = vst [vmem:[%s8475_s7 + $0x1b0] sm:$0xff] %v5478_v32  ;;  %v5479_v14 = vmax.f32 %v5415_v47, 0.0 }
 0x32e   : > { %5540 = vst [vmem:[%s8475_s7 + $0x1a0] sm:$0xff] %v5476_v55  ;;  %v5477_v39 = vmax.f32 %v5413_v57, 0.0  ;;  %v6616_v49 = vpop.f32.mrb[56].mxu1  ;;  %v6880_v46 = vpop.f32.mrb[56].mxu0 }
 0x32f   : > { %5543 = vst [vmem:[%s8475_s7 + $0x1b8] sm:$0xff] %v5479_v14  ;;  %v6944_v62 = vadd.f32 %v6880_v46, %v6616_v49  ;;  %v3058_v59 = vpop.f32.mrb[57].mxu1  ;;  %v5258_v25 = vpop.f32.mrb[57].mxu0 }
 0x330   : > { %5541 = vst [vmem:[%s8475_s7 + $0x1a8] sm:$0xff] %v5477_v39  ;;  %v6945_v19 = vadd.f32 %v5258_v25, %v3058_v59  ;;  %v6617_v44 = vpop.f32.mrb[58].mxu1  ;;  %v6881_v4 = vpop.f32.mrb[58].mxu0 }
 0x331   : > { %v5418_v51 = vadd.f32 %v6944_v62, %v8467_v33  ;;  %v6946_v61 = vadd.f32 %v6881_v4, %v6617_v44  ;;  %v3061_v10 = vpop.f32.mrb[59].mxu1  ;;  %v5261_v56 = vpop.f32.mrb[59].mxu0 }
 0x332   : > { %v5416_v8 = vadd.f32 %v6945_v19, %v8467_v33  ;;  %v6947_v21 = vadd.f32 %v5261_v56, %v3061_v10 }
 0x333   : > { %v5482_v7 = vmax.f32 %v5418_v51, 0.0  ;;  %v5419_v52 = vadd.f32 %v6946_v61, %v8467_v33 }
 0x334   : > { %v5480_v35 = vmax.f32 %v5416_v8, 0.0  ;;  %v5417_v2 = vadd.f32 %v6947_v21, %v8467_v33 }
 0x335   : > { %5546 = vst [vmem:[%s8475_s7 + $0x1d0] sm:$0xff] %v5482_v7  ;;  %v5483_v17 = vmax.f32 %v5419_v52, 0.0 }
 0x336   : > { %5544 = vst [vmem:[%s8475_s7 + $0x1c0] sm:$0xff] %v5480_v35  ;;  %v5481_v9 = vmax.f32 %v5417_v2, 0.0  ;;  %v6620_v26 = vpop.f32.mrb[60].mxu1  ;;  %v6884_v3 = vpop.f32.mrb[60].mxu0 }
 0x337   : > { %5547 = vst [vmem:[%s8475_s7 + $0x1d8] sm:$0xff] %v5483_v17  ;;  %v6948_v24 = vadd.f32 %v6884_v3, %v6620_v26  ;;  %v3074_v53 = vpop.f32.mrb[61].mxu1  ;;  %v5274_v27 = vpop.f32.mrb[61].mxu0 }
 0x338   : > { %5545 = vst [vmem:[%s8475_s7 + $0x1c8] sm:$0xff] %v5481_v9  ;;  %v6949_v12 = vadd.f32 %v5274_v27, %v3074_v53  ;;  %v6621_v13 = vpop.f32.mrb[62].mxu1  ;;  %v6885_v0 = vpop.f32.mrb[62].mxu0 }
 0x339   : > { %v5422_v20 = vadd.f32 %v6948_v24, %v8467_v33  ;;  %v6950_v28 = vadd.f32 %v6885_v0, %v6621_v13  ;;  %v3077_v38 = vpop.f32.mrb[63].mxu1  ;;  %v5277_v1 = vpop.f32.mrb[63].mxu0 }
 0x33a   : > { %v5420_v15 = vadd.f32 %v6949_v12, %v8467_v33  ;;  %v6951_v36 = vadd.f32 %v5277_v1, %v3077_v38 }
 0x33b   : > { %v5486_v40 = vmax.f32 %v5422_v20, 0.0  ;;  %v5423_v34 = vadd.f32 %v6950_v28, %v8467_v33 }
 0x33c   : > { %v5484_v54 = vmax.f32 %v5420_v15, 0.0  ;;  %v5421_v37 = vadd.f32 %v6951_v36, %v8467_v33 }
 0x33d   : > { %5550 = vst [vmem:[%s8475_s7 + $0x1f0] sm:$0xff] %v5486_v40  ;;  %v5487_v42 = vmax.f32 %v5423_v34, 0.0 }
 0x33e   : > { %5548 = vst [vmem:[%s8475_s7 + $0x1e0] sm:$0xff] %v5484_v54  ;;  %v5485_v60 = vmax.f32 %v5421_v37, 0.0 }
 0x33f   : > { %5551 = vst [vmem:[%s8475_s7 + $0x1f8] sm:$0xff] %v5487_v42 }
 0x340   : > { %5549 = vst [vmem:[%s8475_s7 + $0x1e8] sm:$0xff] %v5485_v60 }
 0x341   : > { %7481 = shalt.err (!%p7478_p6)
}
 0x342   : > { %s7482_s24 = scalar_lea.hbm %s8627_s12, 8192  ;;  %s7486_s30 = scalar_lea.hbm %s8686_s4, 24576 }
 0x343   : > { %p7483_p7 = scmp.ne.s32.totalorder %s8627_s12, %s7482_s24  ;;  %p7487_p11 = scmp.lt.u32.totalorder %s8627_s12, %s8686_s4 }
 0x344   : > { %p7488_p12 = scmp.lt.u32.totalorder %s7486_s30, %s7482_s24  ;;  %p7490_p0 = scmp.lt.u32.totalorder %s7482_s24, %s8627_s12 }
 0x345   : > { %p7484_p9 = pnand %p7483_p7, %p7616_p4 }
 0x346   : > { %p7489_p13 = por %p7488_p12, %p7487_p11 }
 0x347   : > { %p7485_p10 = pneg %p7484_p9 }
 0x348   : > { %p7491_p1 = por %p7490_p0, %p7489_p13 }
 0x34a   : > { %p7492_p2 = pnand %p7491_p1, %p7485_p10 }
 0x34c   : > { %7495 = shalt.err (!%p7492_p2)
}
 0x34d   : > { %s7549_s7 = smov 128   ;;  %s7550_s8 = smov 8  }
 0x34e   : > { %7410 = dma.vmem_to_hbm [thread:$0]  (%p7616_p4), %s8629_s9, 8192, %s8627_s12, %s8636_s18, %s7549_s7, %s7549_s7, %s7550_s8  }
 0x34f PF: > { %p7416_p3 = scmp.ge.s32.totalorder %s7546_s20, 2  ;;  %s5582_s10 = sand.u32 1, %s7526_s15  }
 0x350   : > { %s5583_s11 = scalar_lea.sflag [#allocation4], %s5582_s10 }
 0x351   : > { %p7413_p5 = pnand %p7416_p3, %p7623_p8 }
 0x353   : > { %7521 = dma.done.wait (!%p7413_p5), %s5583_s11, 8192  }
 0x354   : > { %7523 = vsyncadd (!%p7413_p5), %s5583_s11, 4294959104  ;;  %s17_s20 = sadd.s32 1, %s7546_s20   ;;  %s8690_s15 = smov %s7530_s16 }
 0x355   : > { %p14_p6 = scmp.ge.s32.totalorder %s17_s20, 5   ;;  %s8691_s16 = smov %s7534_s17 }
 0x356   : > { %s8692_s17 = smov %s7629_s28  ;;  %s8693_s18 = smov %s7542_s19 }
 0x357   : > { %s8694_s19 = smov %s8696_s23  ;;  %16 = sbr.rel (!%p14_p6) target bundleno = 4 (0x4), region = 88 }
 0x35e   :  { %5588 = vsyncpa [#allocation4], 1 }
 0x35f   :  { %5590 = vsyncpa [#allocation4 + $0x1], 1 }

</bundles_post_ra>
